<compile_context>
chip_gen: v5e
topology: v5e:2x2
jax: 0.10.0
libtpu: 0.0.40
codegen_flags: <defaults>
</compile_context>

<pallas_src>
import math

import jax
import jax.numpy as jnp
from jax.experimental import pallas as pl
from jax.experimental.pallas import tpu as pltpu

EPS = 1e-5  # RMSNorm eps


# ----------------------------------------------------------------------------
# elementwise helpers (used inside kernels)
# ----------------------------------------------------------------------------
def _gelu_exact(x):
    # matches torch.nn.GELU() default (erf based)
    return 0.5 * x * (1.0 + jax.lax.erf(x * 0.7071067811865476))


def _softplus(x):
    return jnp.where(x > 20.0, x, jnp.log1p(jnp.exp(jnp.minimum(x, 20.0))))


def _silu(x):
    return x * jax.nn.sigmoid(x)


def _rmsnorm_add(x, res, g):
    # RMSNorm(x + res) * g ; x/res: (L, D), g: (1, D)
    s = x + res
    ms = jnp.mean(s * s, axis=-1, keepdims=True)
    return s * jax.lax.rsqrt(ms + EPS) * g


def _shift_matrix(L, s):
    # M[t, u] = 1 iff u == t - s  -> (M @ x)[t] = x[t - s], zero for t < s (causal pad)
    r = jax.lax.broadcasted_iota(jnp.int32, (L, L), 0)
    c = jax.lax.broadcasted_iota(jnp.int32, (L, L), 1)
    return (c == r - s).astype(jnp.float32)


def _mlp(x, w1_ref, b1_ref, w2_ref, b2_ref):
    # Linear -> GELU -> Linear ; matmuls in bf16, accumulate f32
    h = jnp.dot(x.astype(jnp.bfloat16), w1_ref[...],
                preferred_element_type=jnp.float32) + b1_ref[...]
    h = _gelu_exact(h)
    return jnp.dot(h.astype(jnp.bfloat16), w2_ref[...],
                   preferred_element_type=jnp.float32) + b2_ref[...]


# ----------------------------------------------------------------------------
# Fused per-sequence Mamba body (runs inside a pallas kernel)
# ----------------------------------------------------------------------------
def _mamba_seq(x, wx_ref, wz_ref, cw_ref, cb_ref, wb_ref, wc_ref,
               wdl_ref, dtb_ref, at_ref, d_ref, wo_ref, y_scr):
    """x: (L, d_model) f32.  Returns (L, d_model) f32.  y_scr: VMEM (L, d_inner) f32."""
    L, _ = x.shape
    cw = cw_ref[...]                      # (K, C) conv weights
    K, C = cw.shape
    At = at_ref[...]                      # (S, C) = (-exp(A_log)).T
    S = At.shape[0]

    xb = x.astype(jnp.bfloat16)
    xin = jnp.dot(xb, wx_ref[...], preferred_element_type=jnp.float32)   # (L, C)
    zg = jnp.dot(xb, wz_ref[...], preferred_element_type=jnp.float32)    # (L, C) gate

    # causal depthwise conv1d (kernel K) via shift matrices on the MXU, then SiLU
    conv = xin * cw[K - 1:K, :]                       # shift 0 tap
    for k in range(K - 1):
        s = K - 1 - k                                  # shift amount 1..K-1
        shifted = jnp.dot(_shift_matrix(L, s), xin,
                          preferred_element_type=jnp.float32)
        conv = conv + shifted * cw[k:k + 1, :]
    xc = _silu(conv + cb_ref[...])                     # (L, C)

    xcb = xc.astype(jnp.bfloat16)
    Bc = jnp.dot(xcb, wb_ref[...], preferred_element_type=jnp.float32)   # (L, S)
    Cc = jnp.dot(xcb, wc_ref[...], preferred_element_type=jnp.float32)   # (L, S)
    # fused delta projection:  softplus(xc @ (x_proj_dt @ dt_proj) + dt_bias)
    delta = _softplus(jnp.dot(xcb, wdl_ref[...],
                              preferred_element_type=jnp.float32) + dtb_ref[...])  # (L, C)
    Dp = d_ref[...]                                    # (1, C)

    # selective state-space scan (sequential over L, statically unrolled; L <= 8)
    h = jnp.zeros((S, C), jnp.float32)                 # lane-dense: d_inner on lanes
    for t in range(L):
        dt_row = delta[t:t + 1, :]                     # (1, C)
        u_row = xc[t:t + 1, :]                         # (1, C)
        b_row = Bc[t:t + 1, :]                         # (1, S)
        c_row = Cc[t:t + 1, :]                         # (1, S)
        dA = jnp.exp(dt_row * At)                      # (S, C)
        dBu = ((dt_row * u_row)[:, None, :] * b_row[:, :, None])[0]      # (S, C)
        h = dA * h + dBu
        y_row = jnp.dot(c_row, h, preferred_element_type=jnp.float32) + Dp * u_row
        y_scr[pl.ds(t, 1), :] = y_row * _silu(zg[t:t + 1, :])
    y = y_scr[...]                                     # (L, C)
    return jnp.dot(y.astype(jnp.bfloat16), wo_ref[...],
                   preferred_element_type=jnp.float32)  # (L, d_model)


# ----------------------------------------------------------------------------
# Fused kernels
# ----------------------------------------------------------------------------
def _mammlp_kernel(z_ref,
                   wx_ref, wz_ref, cw_ref, cb_ref, wb_ref, wc_ref,
                   wdl_ref, dtb_ref, at_ref, d_ref, wo_ref,
                   g1_ref, w1_ref, b1_ref, w2_ref, b2_ref,
                   o_ref, y_scr):
    z = z_ref[0]                                       # (L, d_model)
    m = _mamba_seq(z, wx_ref, wz_ref, cw_ref, cb_ref, wb_ref, wc_ref,
                   wdl_ref, dtb_ref, at_ref, d_ref, wo_ref, y_scr)
    g1 = g1_ref[...]
    z_mam = _rmsnorm_add(m, z, g1)
    mo = _mlp(z_mam, w1_ref, b1_ref, w2_ref, b2_ref)
    # NOTE: the PyTorch module applies norm1 (not norm2) for the second normalization.
    o_ref[0] = _rmsnorm_add(mo, z_mam, g1).astype(o_ref.dtype)


def _decoder_tail_kernel(zcat_ref, zdec_ref,
                         wx_ref, wz_ref, cw_ref, cb_ref, wb_ref, wc_ref,
                         wdl_ref, dtb_ref, at_ref, d_ref, wo_ref,
                         g1_ref, w1_ref, b1_ref, w2_ref, b2_ref,
                         g2_ref, pw_ref, pb_ref,
                         dec_ref, pred_ref, y_scr):
    zcat = zcat_ref[0]                                 # (Lc, d_model)
    zdec = zdec_ref[0]                                 # (Lo, d_model)
    Lc = zcat.shape[0]
    Lo = zdec.shape[0]
    m = _mamba_seq(zcat, wx_ref, wz_ref, cw_ref, cb_ref, wb_ref, wc_ref,
                   wdl_ref, dtb_ref, at_ref, d_ref, wo_ref, y_scr)
    z_split = m[Lc - Lo:, :]                           # last Lo timesteps
    z_tmp = _rmsnorm_add(zdec, z_split, g1_ref[...])
    mo = _mlp(z_tmp, w1_ref, b1_ref, w2_ref, b2_ref)
    dec = _rmsnorm_add(z_tmp, mo, g2_ref[...])
    dec_ref[0] = dec.astype(dec_ref.dtype)
    pred = jnp.dot(dec.astype(jnp.bfloat16), pw_ref[...],
                   preferred_element_type=jnp.float32) + pb_ref[...]
    pred_ref[0] = pred.astype(pred_ref.dtype)


# ----------------------------------------------------------------------------
# Wrappers (param repacking + pallas_call plumbing)
# ----------------------------------------------------------------------------
def _bcast_specs(arrs):
    # full-array blocks, block index constant across the grid -> stay VMEM-resident
    return [pl.BlockSpec(a.shape, lambda i, _nd=a.ndim: (0,) * _nd) for a in arrs]


def _mamba_kernel_weights(p):
    """Repack raw (PyTorch-layout) Mamba params into kernel-ready arrays."""
    d_inner = p["D"].shape[1]
    d_state = p["A_log"].shape[1]
    dt_rank = p["dt_proj_w"].shape[0]
    bf = jnp.bfloat16
    wx = p["in_proj_w"][:, :d_inner].astype(bf)
    wz = p["in_proj_w"][:, d_inner:].astype(bf)
    wb = p["x_proj_w"][:, dt_rank:dt_rank + d_state].astype(bf)
    wc = p["x_proj_w"][:, dt_rank + d_state:].astype(bf)
    # algebraic fusion of the dt_rank-wide delta projection
    wdl = jnp.dot(p["x_proj_w"][:, :dt_rank], p["dt_proj_w"]).astype(bf)
    at = jnp.transpose(-jnp.exp(p["A_log"]))          # (S, d_inner) f32
    wo = p["out_proj_w"].astype(bf)
    return [wx, wz, p["conv_w"], p["conv_b"], wb, wc, wdl,
            p["dt_proj_b"], at, p["D"], wo]


def mammlp_forward(Z, p):
    """MamMLP forward.  Z: (Bsz, L, d_model)."""
    Bsz, L, dm = Z.shape
    d_inner = p["mamba"]["D"].shape[1]
    bf = jnp.bfloat16
    mw = _mamba_kernel_weights(p["mamba"])
    extra = [p["norm1_w"], p["mlp_w1"].astype(bf), p["mlp_b1"],
             p["mlp_w2"].astype(bf), p["mlp_b2"]]
    ins = [Z] + mw + extra
    in_specs = ([pl.BlockSpec((1, L, dm), lambda i: (i, 0, 0))]
                + _bcast_specs(mw + extra))
    return pl.pallas_call(
        _mammlp_kernel,
        out_shape=jax.ShapeDtypeStruct((Bsz, L, dm), jnp.float32),
        grid=(Bsz,),
        in_specs=in_specs,
        out_specs=pl.BlockSpec((1, L, dm), lambda i: (i, 0, 0)),
        scratch_shapes=[pltpu.VMEM((L, d_inner), jnp.float32)],
        compiler_params=pltpu.CompilerParams(dimension_semantics=("parallel",)),
    )(*ins)


def fdse_forward(x, p):
    # x: (b, ts_d, cycle_num, d_model)
    b, ts_d, cyc, dm = x.shape
    time_in = x.reshape(b * ts_d, cyc, dm)
    dim_in = mammlp_forward(time_in, p["time"])
    # TODO(synk): the (0,2,1,3) relayouts between the two MamMLPs stay in XLA; folding
    # them into the next kernel's index_map would need sub-(8,128) second-minor blocks.
    dim_in = dim_in.reshape(b, ts_d, cyc, dm).transpose(0, 2, 1, 3).reshape(b * cyc, ts_d, dm)
    dim_enc = mammlp_forward(dim_in, p["dim"])
    return dim_enc.reshape(b, cyc, ts_d, dm).transpose(0, 2, 1, 3)


def decoder_layer_forward(E_dec, Z_enc, p):
    b, ts_d, out_cyc, dm = E_dec.shape
    in_cyc = Z_enc.shape[2]

    Z_dec4 = fdse_forward(E_dec, p["fdse"])
    Z_dec = Z_dec4.reshape(b * ts_d, out_cyc, dm)
    cross = Z_enc.reshape(b * ts_d, in_cyc, dm)
    Z_cat = jnp.concatenate([cross, Z_dec], axis=1)

    Bsz = b * ts_d
    Lc = in_cyc + out_cyc
    Lo = out_cyc
    t_cycle = p["pred_w"].shape[1]
    d_inner = p["mamba"]["D"].shape[1]
    bf = jnp.bfloat16

    mw = _mamba_kernel_weights(p["mamba"])
    extra = [p["norm1_w"], p["mlp_w1"].astype(bf), p["mlp_b1"],
             p["mlp_w2"].astype(bf), p["mlp_b2"], p["norm2_w"],
             p["pred_w"].astype(bf), p["pred_b"]]
    ins = [Z_cat, Z_dec] + mw + extra
    in_specs = ([pl.BlockSpec((1, Lc, dm), lambda i: (i, 0, 0)),
                 pl.BlockSpec((1, Lo, dm), lambda i: (i, 0, 0))]
                + _bcast_specs(mw + extra))

    dec_flat, pred_flat = pl.pallas_call(
        _decoder_tail_kernel,
        out_shape=(jax.ShapeDtypeStruct((Bsz, Lo, dm), jnp.float32),
                   jax.ShapeDtypeStruct((Bsz, Lo, t_cycle), jnp.float32)),
        grid=(Bsz,),
        in_specs=in_specs,
        out_specs=(pl.BlockSpec((1, Lo, dm), lambda i: (i, 0, 0)),
                   pl.BlockSpec((1, Lo, t_cycle), lambda i: (i, 0, 0))),
        scratch_shapes=[pltpu.VMEM((Lc, d_inner), jnp.float32)],
        compiler_params=pltpu.CompilerParams(dimension_semantics=("parallel",)),
    )(*ins)

    dec_output = dec_flat.reshape(b, ts_d, out_cyc, dm)
    layer_predict = pred_flat.reshape(b, ts_d * out_cyc, t_cycle)
    return dec_output, layer_predict


# ----------------------------------------------------------------------------
# Deterministic parameter init (shapes follow the PyTorch __init__)
# ----------------------------------------------------------------------------
def _w(key, shape, scale=0.05):
    return scale * jax.random.normal(key, shape, dtype=jnp.float32)


def init_mamba_params(key, d_model, d_state, d_conv=4, expand=2):
    d_inner = expand * d_model
    dt_rank = math.ceil(d_model / 16)
    ks = jax.random.split(key, 5)
    A = jnp.tile(jnp.arange(1, d_state + 1, dtype=jnp.float32)[None, :], (d_inner, 1))
    return dict(
        in_proj_w=_w(ks[0], (d_model, 2 * d_inner)),       # Linear(d_model, 2*d_inner, bias=False)
        conv_w=_w(ks[1], (d_conv, d_inner)),                # depthwise Conv1d weight (k, c)
        conv_b=jnp.zeros((1, d_inner), jnp.float32),
        x_proj_w=_w(ks[2], (d_inner, dt_rank + 2 * d_state)),
        dt_proj_w=_w(ks[3], (dt_rank, d_inner)),
        dt_proj_b=0.01 * jnp.ones((1, d_inner), jnp.float32),
        A_log=jnp.log(A),
        D=jnp.ones((1, d_inner), jnp.float32),
        out_proj_w=_w(ks[4], (d_inner, d_model)),           # Linear(d_inner, d_model, bias=False)
    )


def init_mammlp_params(key, d_model, d_state, d_ff):
    ks = jax.random.split(key, 3)
    return dict(
        mamba=init_mamba_params(ks[0], d_model, d_state),
        mlp_w1=_w(ks[1], (d_model, d_ff)),
        mlp_b1=jnp.zeros((1, d_ff), jnp.float32),
        mlp_w2=_w(ks[2], (d_ff, d_model)),
        mlp_b2=jnp.zeros((1, d_model), jnp.float32),
        norm1_w=jnp.ones((1, d_model), jnp.float32),
        norm2_w=jnp.ones((1, d_model), jnp.float32),
    )


def init_decoder_layer_params(key, t_cycle, d_model, d_state, d_ff):
    ks = jax.random.split(key, 6)
    return dict(
        fdse=dict(
            time=init_mammlp_params(ks[0], d_model, d_state, d_ff),
            dim=init_mammlp_params(ks[1], d_model, d_state, d_ff),
        ),
        mamba=init_mamba_params(ks[2], d_model, d_state),
        norm1_w=jnp.ones((1, d_model), jnp.float32),
        norm2_w=jnp.ones((1, d_model), jnp.float32),
        mlp_w1=_w(ks[3], (d_model, d_model)),
        mlp_b1=jnp.zeros((1, d_model), jnp.float32),
        mlp_w2=_w(ks[4], (d_model, d_model)),
        mlp_b2=jnp.zeros((1, d_model), jnp.float32),
        pred_w=_w(ks[5], (d_model, t_cycle)),
        pred_b=jnp.zeros((1, t_cycle), jnp.float32),
    )


# ----------------------------------------------------------------------------
if __name__ == "__main__":
    # small shapes consistent with the module's forward
    batch, ts_d, out_cycle, in_cycle = 2, 4, 4, 4
    d_model, d_state, d_ff, t_cycle = 32, 8, 64, 16

    key = jax.random.PRNGKey(0)
    k_p, k_e, k_z = jax.random.split(key, 3)

    params = init_decoder_layer_params(k_p, t_cycle, d_model, d_state, d_ff)
    E_dec = jax.random.normal(k_e, (batch, ts_d, out_cycle, d_model), dtype=jnp.float32)
    Z_enc = jax.random.normal(k_z, (batch, ts_d, in_cycle, d_model), dtype=jnp.float32)

    fwd = jax.jit(decoder_layer_forward)
    dec_output, layer_predict = fwd(E_dec, Z_enc, params)
    dec_output = jax.block_until_ready(dec_output)
    layer_predict = jax.block_until_ready(layer_predict)

    assert dec_output.shape == (batch, ts_d, out_cycle, d_model)
    assert layer_predict.shape == (batch, ts_d * out_cycle, t_cycle)
    assert bool(jnp.all(jnp.isfinite(dec_output))) and bool(jnp.all(jnp.isfinite(layer_predict)))
    print("KERNEL_OK")
</pallas_src>

<mosaic_0001>
module attributes {stable_mosaic.version = 11 : i64} {
  func.func @_decoder_tail_kernel(%arg0: i32, %arg1: memref<1x8x32xf32, #tpu.memory_space<vmem>>, %arg2: memref<1x4x32xf32, #tpu.memory_space<vmem>>, %arg3: memref<32x64xbf16, #tpu.memory_space<vmem>>, %arg4: memref<32x64xbf16, #tpu.memory_space<vmem>>, %arg5: memref<4x64xf32, #tpu.memory_space<vmem>>, %arg6: memref<1x64xf32, #tpu.memory_space<vmem>>, %arg7: memref<64x8xbf16, #tpu.memory_space<vmem>>, %arg8: memref<64x8xbf16, #tpu.memory_space<vmem>>, %arg9: memref<64x64xbf16, #tpu.memory_space<vmem>>, %arg10: memref<1x64xf32, #tpu.memory_space<vmem>>, %arg11: memref<8x64xf32, #tpu.memory_space<vmem>>, %arg12: memref<1x64xf32, #tpu.memory_space<vmem>>, %arg13: memref<64x32xbf16, #tpu.memory_space<vmem>>, %arg14: memref<1x32xf32, #tpu.memory_space<vmem>>, %arg15: memref<32x32xbf16, #tpu.memory_space<vmem>>, %arg16: memref<1x32xf32, #tpu.memory_space<vmem>>, %arg17: memref<32x32xbf16, #tpu.memory_space<vmem>>, %arg18: memref<1x32xf32, #tpu.memory_space<vmem>>, %arg19: memref<1x32xf32, #tpu.memory_space<vmem>>, %arg20: memref<32x16xbf16, #tpu.memory_space<vmem>>, %arg21: memref<1x16xf32, #tpu.memory_space<vmem>>, %arg22: memref<1x4x32xf32, #tpu.memory_space<vmem>>, %arg23: memref<1x4x16xf32, #tpu.memory_space<vmem>>, %arg24: memref<8x64xf32, #tpu.memory_space<vmem>>) attributes {dimension_semantics = [#tpu.dimension_semantics<parallel>], iteration_bounds = array<i64: 8>, scalar_prefetch = 0 : i64, scratch_operands = 1 : i64, tpu.core_type = #tpu.core_type<tc>, window_params = [{transform_indices = @transform_0, window_bounds = array<i64: 1, 8, 32>}, {transform_indices = @transform_1, window_bounds = array<i64: 1, 4, 32>}, {pipeline_mode = #tpu.pipeline_mode<synchronous>, transform_indices = @transform_2, window_bounds = array<i64: 32, 64>}, {pipeline_mode = #tpu.pipeline_mode<synchronous>, transform_indices = @transform_3, window_bounds = array<i64: 32, 64>}, {pipeline_mode = #tpu.pipeline_mode<synchronous>, transform_indices = @transform_4, window_bounds = array<i64: 4, 64>}, {pipeline_mode = #tpu.pipeline_mode<synchronous>, transform_indices = @transform_5, window_bounds = array<i64: 1, 64>}, {pipeline_mode = #tpu.pipeline_mode<synchronous>, transform_indices = @transform_6, window_bounds = array<i64: 64, 8>}, {pipeline_mode = #tpu.pipeline_mode<synchronous>, transform_indices = @transform_7, window_bounds = array<i64: 64, 8>}, {pipeline_mode = #tpu.pipeline_mode<synchronous>, transform_indices = @transform_8, window_bounds = array<i64: 64, 64>}, {pipeline_mode = #tpu.pipeline_mode<synchronous>, transform_indices = @transform_9, window_bounds = array<i64: 1, 64>}, {pipeline_mode = #tpu.pipeline_mode<synchronous>, transform_indices = @transform_10, window_bounds = array<i64: 8, 64>}, {pipeline_mode = #tpu.pipeline_mode<synchronous>, transform_indices = @transform_11, window_bounds = array<i64: 1, 64>}, {pipeline_mode = #tpu.pipeline_mode<synchronous>, transform_indices = @transform_12, window_bounds = array<i64: 64, 32>}, {pipeline_mode = #tpu.pipeline_mode<synchronous>, transform_indices = @transform_13, window_bounds = array<i64: 1, 32>}, {pipeline_mode = #tpu.pipeline_mode<synchronous>, transform_indices = @transform_14, window_bounds = array<i64: 32, 32>}, {pipeline_mode = #tpu.pipeline_mode<synchronous>, transform_indices = @transform_15, window_bounds = array<i64: 1, 32>}, {pipeline_mode = #tpu.pipeline_mode<synchronous>, transform_indices = @transform_16, window_bounds = array<i64: 32, 32>}, {pipeline_mode = #tpu.pipeline_mode<synchronous>, transform_indices = @transform_17, window_bounds = array<i64: 1, 32>}, {pipeline_mode = #tpu.pipeline_mode<synchronous>, transform_indices = @transform_18, window_bounds = array<i64: 1, 32>}, {pipeline_mode = #tpu.pipeline_mode<synchronous>, transform_indices = @transform_19, window_bounds = array<i64: 32, 16>}, {pipeline_mode = #tpu.pipeline_mode<synchronous>, transform_indices = @transform_20, window_bounds = array<i64: 1, 16>}, {transform_indices = @transform_21, window_bounds = array<i64: 1, 4, 32>}, {transform_indices = @transform_22, window_bounds = array<i64: 1, 4, 16>}]} {
    %c0 = arith.constant 0 : index
    %c0_0 = arith.constant 0 : index
    %c0_1 = arith.constant 0 : index
    %0 = vector.load %arg1[%c0, %c0_0, %c0_1] : memref<1x8x32xf32, #tpu.memory_space<vmem>>, vector<1x8x32xf32>
    %1 = vector.shape_cast %0 : vector<1x8x32xf32> to vector<8x32xf32>
    %c0_2 = arith.constant 0 : index
    %c0_3 = arith.constant 0 : index
    %c0_4 = arith.constant 0 : index
    %2 = vector.load %arg2[%c0_2, %c0_3, %c0_4] : memref<1x4x32xf32, #tpu.memory_space<vmem>>, vector<1x4x32xf32>
    %3 = vector.shape_cast %2 : vector<1x4x32xf32> to vector<4x32xf32>
    %c0_5 = arith.constant 0 : index
    %c0_6 = arith.constant 0 : index
    %4 = vector.load %arg5[%c0_5, %c0_6] : memref<4x64xf32, #tpu.memory_space<vmem>>, vector<4x64xf32>
    %c0_7 = arith.constant 0 : index
    %c0_8 = arith.constant 0 : index
    %5 = vector.load %arg11[%c0_7, %c0_8] : memref<8x64xf32, #tpu.memory_space<vmem>>, vector<8x64xf32>
    %6 = arith.truncf %1 : vector<8x32xf32> to vector<8x32xbf16>
    %c0_9 = arith.constant 0 : index
    %c0_10 = arith.constant 0 : index
    %7 = vector.load %arg3[%c0_9, %c0_10] : memref<32x64xbf16, #tpu.memory_space<vmem>>, vector<32x64xbf16>
    %cst = arith.constant dense<0.000000e+00> : vector<8x64xf32>
    %8 = tpu.matmul %6, %7, %cst {dimension_numbers = #tpu.dot_dimension_numbers<[1], [0], [0], [1], [0, 0, 1, 1], [], []>} : vector<8x32xbf16>, vector<32x64xbf16>, vector<8x64xf32> -> vector<8x64xf32>
    %c0_11 = arith.constant 0 : index
    %c0_12 = arith.constant 0 : index
    %9 = vector.load %arg4[%c0_11, %c0_12] : memref<32x64xbf16, #tpu.memory_space<vmem>>, vector<32x64xbf16>
    %cst_13 = arith.constant dense<0.000000e+00> : vector<8x64xf32>
    %10 = tpu.matmul %6, %9, %cst_13 {dimension_numbers = #tpu.dot_dimension_numbers<[1], [0], [0], [1], [0, 0, 1, 1], [], []>} : vector<8x32xbf16>, vector<32x64xbf16>, vector<8x64xf32> -> vector<8x64xf32>
    %11 = vector.extract_strided_slice %4 {offsets = [3, 0], sizes = [1, 64], strides = [1, 1]} : vector<4x64xf32> to vector<1x64xf32>
    %12 = vector.broadcast %11 : vector<1x64xf32> to vector<8x64xf32>
    %13 = arith.mulf %8, %12 : vector<8x64xf32>
    %14 = tpu.iota {dimensions = array<i32: 0>} : vector<8x8xi32>
    %15 = tpu.iota {dimensions = array<i32: 1>} : vector<8x8xi32>
    %c3_i32 = arith.constant 3 : i32
    %16 = vector.broadcast %c3_i32 : i32 to vector<8x8xi32>
    %17 = arith.subi %14, %16 : vector<8x8xi32>
    %18 = arith.cmpi eq, %15, %17 : vector<8x8xi32>
    %19 = arith.extui %18 : vector<8x8xi1> to vector<8x8xi32>
    %20 = arith.sitofp %19 : vector<8x8xi32> to vector<8x8xf32>
    %cst_14 = arith.constant dense<0.000000e+00> : vector<8x64xf32>
    %21 = tpu.matmul %20, %8, %cst_14 {dimension_numbers = #tpu.dot_dimension_numbers<[1], [0], [0], [1], [0, 0, 1, 1], [], []>} : vector<8x8xf32>, vector<8x64xf32>, vector<8x64xf32> -> vector<8x64xf32>
    %22 = vector.extract_strided_slice %4 {offsets = [0, 0], sizes = [1, 64], strides = [1, 1]} : vector<4x64xf32> to vector<1x64xf32>
    %23 = vector.broadcast %22 : vector<1x64xf32> to vector<8x64xf32>
    %24 = arith.mulf %21, %23 : vector<8x64xf32>
    %25 = arith.addf %13, %24 : vector<8x64xf32>
    %26 = tpu.iota {dimensions = array<i32: 0>} : vector<8x8xi32>
    %27 = tpu.iota {dimensions = array<i32: 1>} : vector<8x8xi32>
    %c2_i32 = arith.constant 2 : i32
    %28 = vector.broadcast %c2_i32 : i32 to vector<8x8xi32>
    %29 = arith.subi %26, %28 : vector<8x8xi32>
    %30 = arith.cmpi eq, %27, %29 : vector<8x8xi32>
    %31 = arith.extui %30 : vector<8x8xi1> to vector<8x8xi32>
    %32 = arith.sitofp %31 : vector<8x8xi32> to vector<8x8xf32>
    %cst_15 = arith.constant dense<0.000000e+00> : vector<8x64xf32>
    %33 = tpu.matmul %32, %8, %cst_15 {dimension_numbers = #tpu.dot_dimension_numbers<[1], [0], [0], [1], [0, 0, 1, 1], [], []>} : vector<8x8xf32>, vector<8x64xf32>, vector<8x64xf32> -> vector<8x64xf32>
    %34 = vector.extract_strided_slice %4 {offsets = [1, 0], sizes = [1, 64], strides = [1, 1]} : vector<4x64xf32> to vector<1x64xf32>
    %35 = vector.broadcast %34 : vector<1x64xf32> to vector<8x64xf32>
    %36 = arith.mulf %33, %35 : vector<8x64xf32>
    %37 = arith.addf %25, %36 : vector<8x64xf32>
    %38 = tpu.iota {dimensions = array<i32: 0>} : vector<8x8xi32>
    %39 = tpu.iota {dimensions = array<i32: 1>} : vector<8x8xi32>
    %c1_i32 = arith.constant 1 : i32
    %40 = vector.broadcast %c1_i32 : i32 to vector<8x8xi32>
    %41 = arith.subi %38, %40 : vector<8x8xi32>
    %42 = arith.cmpi eq, %39, %41 : vector<8x8xi32>
    %43 = arith.extui %42 : vector<8x8xi1> to vector<8x8xi32>
    %44 = arith.sitofp %43 : vector<8x8xi32> to vector<8x8xf32>
    %cst_16 = arith.constant dense<0.000000e+00> : vector<8x64xf32>
    %45 = tpu.matmul %44, %8, %cst_16 {dimension_numbers = #tpu.dot_dimension_numbers<[1], [0], [0], [1], [0, 0, 1, 1], [], []>} : vector<8x8xf32>, vector<8x64xf32>, vector<8x64xf32> -> vector<8x64xf32>
    %46 = vector.extract_strided_slice %4 {offsets = [2, 0], sizes = [1, 64], strides = [1, 1]} : vector<4x64xf32> to vector<1x64xf32>
    %47 = vector.broadcast %46 : vector<1x64xf32> to vector<8x64xf32>
    %48 = arith.mulf %45, %47 : vector<8x64xf32>
    %49 = arith.addf %37, %48 : vector<8x64xf32>
    %c0_17 = arith.constant 0 : index
    %c0_18 = arith.constant 0 : index
    %50 = vector.load %arg6[%c0_17, %c0_18] : memref<1x64xf32, #tpu.memory_space<vmem>>, vector<1x64xf32>
    %51 = vector.broadcast %50 : vector<1x64xf32> to vector<8x64xf32>
    %52 = arith.addf %49, %51 : vector<8x64xf32>
    %53 = arith.negf %52 : vector<8x64xf32>
    %54 = math.exp %53 : vector<8x64xf32>
    %cst_19 = arith.constant 1.000000e+00 : f32
    %55 = vector.broadcast %cst_19 : f32 to vector<8x64xf32>
    %56 = arith.addf %55, %54 : vector<8x64xf32>
    %57 = arith.divf %55, %56 : vector<8x64xf32>
    %58 = arith.mulf %52, %57 : vector<8x64xf32>
    %59 = arith.truncf %58 : vector<8x64xf32> to vector<8x64xbf16>
    %c0_20 = arith.constant 0 : index
    %c0_21 = arith.constant 0 : index
    %60 = vector.load %arg7[%c0_20, %c0_21] : memref<64x8xbf16, #tpu.memory_space<vmem>>, vector<64x8xbf16>
    %cst_22 = arith.constant dense<0.000000e+00> : vector<8x8xf32>
    %61 = tpu.matmul %59, %60, %cst_22 {dimension_numbers = #tpu.dot_dimension_numbers<[1], [0], [0], [1], [0, 0, 1, 1], [], []>} : vector<8x64xbf16>, vector<64x8xbf16>, vector<8x8xf32> -> vector<8x8xf32>
    %c0_23 = arith.constant 0 : index
    %c0_24 = arith.constant 0 : index
    %62 = vector.load %arg8[%c0_23, %c0_24] : memref<64x8xbf16, #tpu.memory_space<vmem>>, vector<64x8xbf16>
    %cst_25 = arith.constant dense<0.000000e+00> : vector<8x8xf32>
    %63 = tpu.matmul %59, %62, %cst_25 {dimension_numbers = #tpu.dot_dimension_numbers<[1], [0], [0], [1], [0, 0, 1, 1], [], []>} : vector<8x64xbf16>, vector<64x8xbf16>, vector<8x8xf32> -> vector<8x8xf32>
    %c0_26 = arith.constant 0 : index
    %c0_27 = arith.constant 0 : index
    %64 = vector.load %arg9[%c0_26, %c0_27] : memref<64x64xbf16, #tpu.memory_space<vmem>>, vector<64x64xbf16>
    %cst_28 = arith.constant dense<0.000000e+00> : vector<8x64xf32>
    %65 = tpu.matmul %59, %64, %cst_28 {dimension_numbers = #tpu.dot_dimension_numbers<[1], [0], [0], [1], [0, 0, 1, 1], [], []>} : vector<8x64xbf16>, vector<64x64xbf16>, vector<8x64xf32> -> vector<8x64xf32>
    %c0_29 = arith.constant 0 : index
    %c0_30 = arith.constant 0 : index
    %66 = vector.load %arg10[%c0_29, %c0_30] : memref<1x64xf32, #tpu.memory_space<vmem>>, vector<1x64xf32>
    %67 = vector.broadcast %66 : vector<1x64xf32> to vector<8x64xf32>
    %68 = arith.addf %65, %67 : vector<8x64xf32>
    %cst_31 = arith.constant 2.000000e+01 : f32
    %69 = vector.broadcast %cst_31 : f32 to vector<8x64xf32>
    %70 = arith.cmpf ogt, %68, %69 : vector<8x64xf32>
    %cst_32 = arith.constant 2.000000e+01 : f32
    %71 = vector.broadcast %cst_32 : f32 to vector<8x64xf32>
    %72 = arith.minimumf %68, %71 : vector<8x64xf32>
    %73 = math.exp %72 : vector<8x64xf32>
    %74 = math.log1p %73 : vector<8x64xf32>
    %75 = arith.select %70, %68, %74 : vector<8x64xi1>, vector<8x64xf32>
    %c0_33 = arith.constant 0 : index
    %c0_34 = arith.constant 0 : index
    %76 = vector.load %arg12[%c0_33, %c0_34] : memref<1x64xf32, #tpu.memory_space<vmem>>, vector<1x64xf32>
    %cst_35 = arith.constant 0.000000e+00 : f32
    %77 = vector.broadcast %cst_35 : f32 to vector<8x64xf32>
    %78 = vector.extract_strided_slice %75 {offsets = [0, 0], sizes = [1, 64], strides = [1, 1]} : vector<8x64xf32> to vector<1x64xf32>
    %79 = vector.extract_strided_slice %58 {offsets = [0, 0], sizes = [1, 64], strides = [1, 1]} : vector<8x64xf32> to vector<1x64xf32>
    %80 = vector.extract_strided_slice %61 {offsets = [0, 0], sizes = [1, 8], strides = [1, 1]} : vector<8x8xf32> to vector<1x8xf32>
    %81 = vector.extract_strided_slice %63 {offsets = [0, 0], sizes = [1, 8], strides = [1, 1]} : vector<8x8xf32> to vector<1x8xf32>
    %82 = vector.broadcast %78 : vector<1x64xf32> to vector<8x64xf32>
    %83 = arith.mulf %82, %5 : vector<8x64xf32>
    %84 = math.exp %83 : vector<8x64xf32>
    %85 = arith.mulf %78, %79 : vector<1x64xf32>
    %86 = vector.shape_cast %85 : vector<1x64xf32> to vector<1x1x64xf32>
    %87 = vector.shape_cast %80 : vector<1x8xf32> to vector<1x8x1xf32>
    %88 = vector.broadcast %86 : vector<1x1x64xf32> to vector<1x8x64xf32>
    %89 = vector.broadcast %87 : vector<1x8x1xf32> to vector<1x8x64xf32>
    %90 = arith.mulf %88, %89 : vector<1x8x64xf32>
    %91 = vector.shape_cast %90 : vector<1x8x64xf32> to vector<8x64xf32>
    %92 = arith.mulf %84, %77 : vector<8x64xf32>
    %93 = arith.addf %92, %91 : vector<8x64xf32>
    %cst_36 = arith.constant dense<0.000000e+00> : vector<1x64xf32>
    %94 = tpu.matmul %81, %93, %cst_36 {dimension_numbers = #tpu.dot_dimension_numbers<[1], [0], [0], [1], [0, 0, 1, 1], [], []>} : vector<1x8xf32>, vector<8x64xf32>, vector<1x64xf32> -> vector<1x64xf32>
    %95 = arith.mulf %76, %79 : vector<1x64xf32>
    %96 = arith.addf %94, %95 : vector<1x64xf32>
    %97 = vector.extract_strided_slice %10 {offsets = [0, 0], sizes = [1, 64], strides = [1, 1]} : vector<8x64xf32> to vector<1x64xf32>
    %98 = arith.negf %97 : vector<1x64xf32>
    %99 = math.exp %98 : vector<1x64xf32>
    %cst_37 = arith.constant 1.000000e+00 : f32
    %100 = vector.broadcast %cst_37 : f32 to vector<1x64xf32>
    %101 = arith.addf %100, %99 : vector<1x64xf32>
    %102 = arith.divf %100, %101 : vector<1x64xf32>
    %103 = arith.mulf %97, %102 : vector<1x64xf32>
    %104 = arith.mulf %96, %103 : vector<1x64xf32>
    %c0_38 = arith.constant 0 : index
    %c0_39 = arith.constant 0 : index
    %105 = vector.load %arg24[%c0_38, %c0_39] : memref<8x64xf32, #tpu.memory_space<vmem>>, vector<1x64xf32>
    tpu.vector_store %arg24[%c0_38, %c0_39], %104 {strides = array<i32>} : memref<8x64xf32, #tpu.memory_space<vmem>>, vector<1x64xf32>,
    %106 = vector.extract_strided_slice %75 {offsets = [1, 0], sizes = [1, 64], strides = [1, 1]} : vector<8x64xf32> to vector<1x64xf32>
    %107 = vector.extract_strided_slice %58 {offsets = [1, 0], sizes = [1, 64], strides = [1, 1]} : vector<8x64xf32> to vector<1x64xf32>
    %108 = vector.extract_strided_slice %61 {offsets = [1, 0], sizes = [1, 8], strides = [1, 1]} : vector<8x8xf32> to vector<1x8xf32>
    %109 = vector.extract_strided_slice %63 {offsets = [1, 0], sizes = [1, 8], strides = [1, 1]} : vector<8x8xf32> to vector<1x8xf32>
    %110 = vector.broadcast %106 : vector<1x64xf32> to vector<8x64xf32>
    %111 = arith.mulf %110, %5 : vector<8x64xf32>
    %112 = math.exp %111 : vector<8x64xf32>
    %113 = arith.mulf %106, %107 : vector<1x64xf32>
    %114 = vector.shape_cast %113 : vector<1x64xf32> to vector<1x1x64xf32>
    %115 = vector.shape_cast %108 : vector<1x8xf32> to vector<1x8x1xf32>
    %116 = vector.broadcast %114 : vector<1x1x64xf32> to vector<1x8x64xf32>
    %117 = vector.broadcast %115 : vector<1x8x1xf32> to vector<1x8x64xf32>
    %118 = arith.mulf %116, %117 : vector<1x8x64xf32>
    %119 = vector.shape_cast %118 : vector<1x8x64xf32> to vector<8x64xf32>
    %120 = arith.mulf %112, %93 : vector<8x64xf32>
    %121 = arith.addf %120, %119 : vector<8x64xf32>
    %cst_40 = arith.constant dense<0.000000e+00> : vector<1x64xf32>
    %122 = tpu.matmul %109, %121, %cst_40 {dimension_numbers = #tpu.dot_dimension_numbers<[1], [0], [0], [1], [0, 0, 1, 1], [], []>} : vector<1x8xf32>, vector<8x64xf32>, vector<1x64xf32> -> vector<1x64xf32>
    %123 = arith.mulf %76, %107 : vector<1x64xf32>
    %124 = arith.addf %122, %123 : vector<1x64xf32>
    %125 = vector.extract_strided_slice %10 {offsets = [1, 0], sizes = [1, 64], strides = [1, 1]} : vector<8x64xf32> to vector<1x64xf32>
    %126 = arith.negf %125 : vector<1x64xf32>
    %127 = math.exp %126 : vector<1x64xf32>
    %cst_41 = arith.constant 1.000000e+00 : f32
    %128 = vector.broadcast %cst_41 : f32 to vector<1x64xf32>
    %129 = arith.addf %128, %127 : vector<1x64xf32>
    %130 = arith.divf %128, %129 : vector<1x64xf32>
    %131 = arith.mulf %125, %130 : vector<1x64xf32>
    %132 = arith.mulf %124, %131 : vector<1x64xf32>
    %c1 = arith.constant 1 : index
    %c0_42 = arith.constant 0 : index
    %133 = vector.load %arg24[%c1, %c0_42] : memref<8x64xf32, #tpu.memory_space<vmem>>, vector<1x64xf32>
    tpu.vector_store %arg24[%c1, %c0_42], %132 {strides = array<i32>} : memref<8x64xf32, #tpu.memory_space<vmem>>, vector<1x64xf32>,
    %134 = vector.extract_strided_slice %75 {offsets = [2, 0], sizes = [1, 64], strides = [1, 1]} : vector<8x64xf32> to vector<1x64xf32>
    %135 = vector.extract_strided_slice %58 {offsets = [2, 0], sizes = [1, 64], strides = [1, 1]} : vector<8x64xf32> to vector<1x64xf32>
    %136 = vector.extract_strided_slice %61 {offsets = [2, 0], sizes = [1, 8], strides = [1, 1]} : vector<8x8xf32> to vector<1x8xf32>
    %137 = vector.extract_strided_slice %63 {offsets = [2, 0], sizes = [1, 8], strides = [1, 1]} : vector<8x8xf32> to vector<1x8xf32>
    %138 = vector.broadcast %134 : vector<1x64xf32> to vector<8x64xf32>
    %139 = arith.mulf %138, %5 : vector<8x64xf32>
    %140 = math.exp %139 : vector<8x64xf32>
    %141 = arith.mulf %134, %135 : vector<1x64xf32>
    %142 = vector.shape_cast %141 : vector<1x64xf32> to vector<1x1x64xf32>
    %143 = vector.shape_cast %136 : vector<1x8xf32> to vector<1x8x1xf32>
    %144 = vector.broadcast %142 : vector<1x1x64xf32> to vector<1x8x64xf32>
    %145 = vector.broadcast %143 : vector<1x8x1xf32> to vector<1x8x64xf32>
    %146 = arith.mulf %144, %145 : vector<1x8x64xf32>
    %147 = vector.shape_cast %146 : vector<1x8x64xf32> to vector<8x64xf32>
    %148 = arith.mulf %140, %121 : vector<8x64xf32>
    %149 = arith.addf %148, %147 : vector<8x64xf32>
    %cst_43 = arith.constant dense<0.000000e+00> : vector<1x64xf32>
    %150 = tpu.matmul %137, %149, %cst_43 {dimension_numbers = #tpu.dot_dimension_numbers<[1], [0], [0], [1], [0, 0, 1, 1], [], []>} : vector<1x8xf32>, vector<8x64xf32>, vector<1x64xf32> -> vector<1x64xf32>
    %151 = arith.mulf %76, %135 : vector<1x64xf32>
    %152 = arith.addf %150, %151 : vector<1x64xf32>
    %153 = vector.extract_strided_slice %10 {offsets = [2, 0], sizes = [1, 64], strides = [1, 1]} : vector<8x64xf32> to vector<1x64xf32>
    %154 = arith.negf %153 : vector<1x64xf32>
    %155 = math.exp %154 : vector<1x64xf32>
    %cst_44 = arith.constant 1.000000e+00 : f32
    %156 = vector.broadcast %cst_44 : f32 to vector<1x64xf32>
    %157 = arith.addf %156, %155 : vector<1x64xf32>
    %158 = arith.divf %156, %157 : vector<1x64xf32>
    %159 = arith.mulf %153, %158 : vector<1x64xf32>
    %160 = arith.mulf %152, %159 : vector<1x64xf32>
    %c2 = arith.constant 2 : index
    %c0_45 = arith.constant 0 : index
    %161 = vector.load %arg24[%c2, %c0_45] : memref<8x64xf32, #tpu.memory_space<vmem>>, vector<1x64xf32>
    tpu.vector_store %arg24[%c2, %c0_45], %160 {strides = array<i32>} : memref<8x64xf32, #tpu.memory_space<vmem>>, vector<1x64xf32>,
    %162 = vector.extract_strided_slice %75 {offsets = [3, 0], sizes = [1, 64], strides = [1, 1]} : vector<8x64xf32> to vector<1x64xf32>
    %163 = vector.extract_strided_slice %58 {offsets = [3, 0], sizes = [1, 64], strides = [1, 1]} : vector<8x64xf32> to vector<1x64xf32>
    %164 = vector.extract_strided_slice %61 {offsets = [3, 0], sizes = [1, 8], strides = [1, 1]} : vector<8x8xf32> to vector<1x8xf32>
    %165 = vector.extract_strided_slice %63 {offsets = [3, 0], sizes = [1, 8], strides = [1, 1]} : vector<8x8xf32> to vector<1x8xf32>
    %166 = vector.broadcast %162 : vector<1x64xf32> to vector<8x64xf32>
    %167 = arith.mulf %166, %5 : vector<8x64xf32>
    %168 = math.exp %167 : vector<8x64xf32>
    %169 = arith.mulf %162, %163 : vector<1x64xf32>
    %170 = vector.shape_cast %169 : vector<1x64xf32> to vector<1x1x64xf32>
    %171 = vector.shape_cast %164 : vector<1x8xf32> to vector<1x8x1xf32>
    %172 = vector.broadcast %170 : vector<1x1x64xf32> to vector<1x8x64xf32>
    %173 = vector.broadcast %171 : vector<1x8x1xf32> to vector<1x8x64xf32>
    %174 = arith.mulf %172, %173 : vector<1x8x64xf32>
    %175 = vector.shape_cast %174 : vector<1x8x64xf32> to vector<8x64xf32>
    %176 = arith.mulf %168, %149 : vector<8x64xf32>
    %177 = arith.addf %176, %175 : vector<8x64xf32>
    %cst_46 = arith.constant dense<0.000000e+00> : vector<1x64xf32>
    %178 = tpu.matmul %165, %177, %cst_46 {dimension_numbers = #tpu.dot_dimension_numbers<[1], [0], [0], [1], [0, 0, 1, 1], [], []>} : vector<1x8xf32>, vector<8x64xf32>, vector<1x64xf32> -> vector<1x64xf32>
    %179 = arith.mulf %76, %163 : vector<1x64xf32>
    %180 = arith.addf %178, %179 : vector<1x64xf32>
    %181 = vector.extract_strided_slice %10 {offsets = [3, 0], sizes = [1, 64], strides = [1, 1]} : vector<8x64xf32> to vector<1x64xf32>
    %182 = arith.negf %181 : vector<1x64xf32>
    %183 = math.exp %182 : vector<1x64xf32>
    %cst_47 = arith.constant 1.000000e+00 : f32
    %184 = vector.broadcast %cst_47 : f32 to vector<1x64xf32>
    %185 = arith.addf %184, %183 : vector<1x64xf32>
    %186 = arith.divf %184, %185 : vector<1x64xf32>
    %187 = arith.mulf %181, %186 : vector<1x64xf32>
    %188 = arith.mulf %180, %187 : vector<1x64xf32>
    %c3 = arith.constant 3 : index
    %c0_48 = arith.constant 0 : index
    %189 = vector.load %arg24[%c3, %c0_48] : memref<8x64xf32, #tpu.memory_space<vmem>>, vector<1x64xf32>
    tpu.vector_store %arg24[%c3, %c0_48], %188 {strides = array<i32>} : memref<8x64xf32, #tpu.memory_space<vmem>>, vector<1x64xf32>,
    %190 = vector.extract_strided_slice %75 {offsets = [4, 0], sizes = [1, 64], strides = [1, 1]} : vector<8x64xf32> to vector<1x64xf32>
    %191 = vector.extract_strided_slice %58 {offsets = [4, 0], sizes = [1, 64], strides = [1, 1]} : vector<8x64xf32> to vector<1x64xf32>
    %192 = vector.extract_strided_slice %61 {offsets = [4, 0], sizes = [1, 8], strides = [1, 1]} : vector<8x8xf32> to vector<1x8xf32>
    %193 = vector.extract_strided_slice %63 {offsets = [4, 0], sizes = [1, 8], strides = [1, 1]} : vector<8x8xf32> to vector<1x8xf32>
    %194 = vector.broadcast %190 : vector<1x64xf32> to vector<8x64xf32>
    %195 = arith.mulf %194, %5 : vector<8x64xf32>
    %196 = math.exp %195 : vector<8x64xf32>
    %197 = arith.mulf %190, %191 : vector<1x64xf32>
    %198 = vector.shape_cast %197 : vector<1x64xf32> to vector<1x1x64xf32>
    %199 = vector.shape_cast %192 : vector<1x8xf32> to vector<1x8x1xf32>
    %200 = vector.broadcast %198 : vector<1x1x64xf32> to vector<1x8x64xf32>
    %201 = vector.broadcast %199 : vector<1x8x1xf32> to vector<1x8x64xf32>
    %202 = arith.mulf %200, %201 : vector<1x8x64xf32>
    %203 = vector.shape_cast %202 : vector<1x8x64xf32> to vector<8x64xf32>
    %204 = arith.mulf %196, %177 : vector<8x64xf32>
    %205 = arith.addf %204, %203 : vector<8x64xf32>
    %cst_49 = arith.constant dense<0.000000e+00> : vector<1x64xf32>
    %206 = tpu.matmul %193, %205, %cst_49 {dimension_numbers = #tpu.dot_dimension_numbers<[1], [0], [0], [1], [0, 0, 1, 1], [], []>} : vector<1x8xf32>, vector<8x64xf32>, vector<1x64xf32> -> vector<1x64xf32>
    %207 = arith.mulf %76, %191 : vector<1x64xf32>
    %208 = arith.addf %206, %207 : vector<1x64xf32>
    %209 = vector.extract_strided_slice %10 {offsets = [4, 0], sizes = [1, 64], strides = [1, 1]} : vector<8x64xf32> to vector<1x64xf32>
    %210 = arith.negf %209 : vector<1x64xf32>
    %211 = math.exp %210 : vector<1x64xf32>
    %cst_50 = arith.constant 1.000000e+00 : f32
    %212 = vector.broadcast %cst_50 : f32 to vector<1x64xf32>
    %213 = arith.addf %212, %211 : vector<1x64xf32>
    %214 = arith.divf %212, %213 : vector<1x64xf32>
    %215 = arith.mulf %209, %214 : vector<1x64xf32>
    %216 = arith.mulf %208, %215 : vector<1x64xf32>
    %c4 = arith.constant 4 : index
    %c0_51 = arith.constant 0 : index
    %217 = vector.load %arg24[%c4, %c0_51] : memref<8x64xf32, #tpu.memory_space<vmem>>, vector<1x64xf32>
    tpu.vector_store %arg24[%c4, %c0_51], %216 {strides = array<i32>} : memref<8x64xf32, #tpu.memory_space<vmem>>, vector<1x64xf32>,
    %218 = vector.extract_strided_slice %75 {offsets = [5, 0], sizes = [1, 64], strides = [1, 1]} : vector<8x64xf32> to vector<1x64xf32>
    %219 = vector.extract_strided_slice %58 {offsets = [5, 0], sizes = [1, 64], strides = [1, 1]} : vector<8x64xf32> to vector<1x64xf32>
    %220 = vector.extract_strided_slice %61 {offsets = [5, 0], sizes = [1, 8], strides = [1, 1]} : vector<8x8xf32> to vector<1x8xf32>
    %221 = vector.extract_strided_slice %63 {offsets = [5, 0], sizes = [1, 8], strides = [1, 1]} : vector<8x8xf32> to vector<1x8xf32>
    %222 = vector.broadcast %218 : vector<1x64xf32> to vector<8x64xf32>
    %223 = arith.mulf %222, %5 : vector<8x64xf32>
    %224 = math.exp %223 : vector<8x64xf32>
    %225 = arith.mulf %218, %219 : vector<1x64xf32>
    %226 = vector.shape_cast %225 : vector<1x64xf32> to vector<1x1x64xf32>
    %227 = vector.shape_cast %220 : vector<1x8xf32> to vector<1x8x1xf32>
    %228 = vector.broadcast %226 : vector<1x1x64xf32> to vector<1x8x64xf32>
    %229 = vector.broadcast %227 : vector<1x8x1xf32> to vector<1x8x64xf32>
    %230 = arith.mulf %228, %229 : vector<1x8x64xf32>
    %231 = vector.shape_cast %230 : vector<1x8x64xf32> to vector<8x64xf32>
    %232 = arith.mulf %224, %205 : vector<8x64xf32>
    %233 = arith.addf %232, %231 : vector<8x64xf32>
    %cst_52 = arith.constant dense<0.000000e+00> : vector<1x64xf32>
    %234 = tpu.matmul %221, %233, %cst_52 {dimension_numbers = #tpu.dot_dimension_numbers<[1], [0], [0], [1], [0, 0, 1, 1], [], []>} : vector<1x8xf32>, vector<8x64xf32>, vector<1x64xf32> -> vector<1x64xf32>
    %235 = arith.mulf %76, %219 : vector<1x64xf32>
    %236 = arith.addf %234, %235 : vector<1x64xf32>
    %237 = vector.extract_strided_slice %10 {offsets = [5, 0], sizes = [1, 64], strides = [1, 1]} : vector<8x64xf32> to vector<1x64xf32>
    %238 = arith.negf %237 : vector<1x64xf32>
    %239 = math.exp %238 : vector<1x64xf32>
    %cst_53 = arith.constant 1.000000e+00 : f32
    %240 = vector.broadcast %cst_53 : f32 to vector<1x64xf32>
    %241 = arith.addf %240, %239 : vector<1x64xf32>
    %242 = arith.divf %240, %241 : vector<1x64xf32>
    %243 = arith.mulf %237, %242 : vector<1x64xf32>
    %244 = arith.mulf %236, %243 : vector<1x64xf32>
    %c5 = arith.constant 5 : index
    %c0_54 = arith.constant 0 : index
    %245 = vector.load %arg24[%c5, %c0_54] : memref<8x64xf32, #tpu.memory_space<vmem>>, vector<1x64xf32>
    tpu.vector_store %arg24[%c5, %c0_54], %244 {strides = array<i32>} : memref<8x64xf32, #tpu.memory_space<vmem>>, vector<1x64xf32>,
    %246 = vector.extract_strided_slice %75 {offsets = [6, 0], sizes = [1, 64], strides = [1, 1]} : vector<8x64xf32> to vector<1x64xf32>
    %247 = vector.extract_strided_slice %58 {offsets = [6, 0], sizes = [1, 64], strides = [1, 1]} : vector<8x64xf32> to vector<1x64xf32>
    %248 = vector.extract_strided_slice %61 {offsets = [6, 0], sizes = [1, 8], strides = [1, 1]} : vector<8x8xf32> to vector<1x8xf32>
    %249 = vector.extract_strided_slice %63 {offsets = [6, 0], sizes = [1, 8], strides = [1, 1]} : vector<8x8xf32> to vector<1x8xf32>
    %250 = vector.broadcast %246 : vector<1x64xf32> to vector<8x64xf32>
    %251 = arith.mulf %250, %5 : vector<8x64xf32>
    %252 = math.exp %251 : vector<8x64xf32>
    %253 = arith.mulf %246, %247 : vector<1x64xf32>
    %254 = vector.shape_cast %253 : vector<1x64xf32> to vector<1x1x64xf32>
    %255 = vector.shape_cast %248 : vector<1x8xf32> to vector<1x8x1xf32>
    %256 = vector.broadcast %254 : vector<1x1x64xf32> to vector<1x8x64xf32>
    %257 = vector.broadcast %255 : vector<1x8x1xf32> to vector<1x8x64xf32>
    %258 = arith.mulf %256, %257 : vector<1x8x64xf32>
    %259 = vector.shape_cast %258 : vector<1x8x64xf32> to vector<8x64xf32>
    %260 = arith.mulf %252, %233 : vector<8x64xf32>
    %261 = arith.addf %260, %259 : vector<8x64xf32>
    %cst_55 = arith.constant dense<0.000000e+00> : vector<1x64xf32>
    %262 = tpu.matmul %249, %261, %cst_55 {dimension_numbers = #tpu.dot_dimension_numbers<[1], [0], [0], [1], [0, 0, 1, 1], [], []>} : vector<1x8xf32>, vector<8x64xf32>, vector<1x64xf32> -> vector<1x64xf32>
    %263 = arith.mulf %76, %247 : vector<1x64xf32>
    %264 = arith.addf %262, %263 : vector<1x64xf32>
    %265 = vector.extract_strided_slice %10 {offsets = [6, 0], sizes = [1, 64], strides = [1, 1]} : vector<8x64xf32> to vector<1x64xf32>
    %266 = arith.negf %265 : vector<1x64xf32>
    %267 = math.exp %266 : vector<1x64xf32>
    %cst_56 = arith.constant 1.000000e+00 : f32
    %268 = vector.broadcast %cst_56 : f32 to vector<1x64xf32>
    %269 = arith.addf %268, %267 : vector<1x64xf32>
    %270 = arith.divf %268, %269 : vector<1x64xf32>
    %271 = arith.mulf %265, %270 : vector<1x64xf32>
    %272 = arith.mulf %264, %271 : vector<1x64xf32>
    %c6 = arith.constant 6 : index
    %c0_57 = arith.constant 0 : index
    %273 = vector.load %arg24[%c6, %c0_57] : memref<8x64xf32, #tpu.memory_space<vmem>>, vector<1x64xf32>
    tpu.vector_store %arg24[%c6, %c0_57], %272 {strides = array<i32>} : memref<8x64xf32, #tpu.memory_space<vmem>>, vector<1x64xf32>,
    %274 = vector.extract_strided_slice %75 {offsets = [7, 0], sizes = [1, 64], strides = [1, 1]} : vector<8x64xf32> to vector<1x64xf32>
    %275 = vector.extract_strided_slice %58 {offsets = [7, 0], sizes = [1, 64], strides = [1, 1]} : vector<8x64xf32> to vector<1x64xf32>
    %276 = vector.extract_strided_slice %61 {offsets = [7, 0], sizes = [1, 8], strides = [1, 1]} : vector<8x8xf32> to vector<1x8xf32>
    %277 = vector.extract_strided_slice %63 {offsets = [7, 0], sizes = [1, 8], strides = [1, 1]} : vector<8x8xf32> to vector<1x8xf32>
    %278 = vector.broadcast %274 : vector<1x64xf32> to vector<8x64xf32>
    %279 = arith.mulf %278, %5 : vector<8x64xf32>
    %280 = math.exp %279 : vector<8x64xf32>
    %281 = arith.mulf %274, %275 : vector<1x64xf32>
    %282 = vector.shape_cast %281 : vector<1x64xf32> to vector<1x1x64xf32>
    %283 = vector.shape_cast %276 : vector<1x8xf32> to vector<1x8x1xf32>
    %284 = vector.broadcast %282 : vector<1x1x64xf32> to vector<1x8x64xf32>
    %285 = vector.broadcast %283 : vector<1x8x1xf32> to vector<1x8x64xf32>
    %286 = arith.mulf %284, %285 : vector<1x8x64xf32>
    %287 = vector.shape_cast %286 : vector<1x8x64xf32> to vector<8x64xf32>
    %288 = arith.mulf %280, %261 : vector<8x64xf32>
    %289 = arith.addf %288, %287 : vector<8x64xf32>
    %cst_58 = arith.constant dense<0.000000e+00> : vector<1x64xf32>
    %290 = tpu.matmul %277, %289, %cst_58 {dimension_numbers = #tpu.dot_dimension_numbers<[1], [0], [0], [1], [0, 0, 1, 1], [], []>} : vector<1x8xf32>, vector<8x64xf32>, vector<1x64xf32> -> vector<1x64xf32>
    %291 = arith.mulf %76, %275 : vector<1x64xf32>
    %292 = arith.addf %290, %291 : vector<1x64xf32>
    %293 = vector.extract_strided_slice %10 {offsets = [7, 0], sizes = [1, 64], strides = [1, 1]} : vector<8x64xf32> to vector<1x64xf32>
    %294 = arith.negf %293 : vector<1x64xf32>
    %295 = math.exp %294 : vector<1x64xf32>
    %cst_59 = arith.constant 1.000000e+00 : f32
    %296 = vector.broadcast %cst_59 : f32 to vector<1x64xf32>
    %297 = arith.addf %296, %295 : vector<1x64xf32>
    %298 = arith.divf %296, %297 : vector<1x64xf32>
    %299 = arith.mulf %293, %298 : vector<1x64xf32>
    %300 = arith.mulf %292, %299 : vector<1x64xf32>
    %c7 = arith.constant 7 : index
    %c0_60 = arith.constant 0 : index
    %301 = vector.load %arg24[%c7, %c0_60] : memref<8x64xf32, #tpu.memory_space<vmem>>, vector<1x64xf32>
    tpu.vector_store %arg24[%c7, %c0_60], %300 {strides = array<i32>} : memref<8x64xf32, #tpu.memory_space<vmem>>, vector<1x64xf32>,
    %c0_61 = arith.constant 0 : index
    %c0_62 = arith.constant 0 : index
    %302 = vector.load %arg24[%c0_61, %c0_62] : memref<8x64xf32, #tpu.memory_space<vmem>>, vector<8x64xf32>
    %303 = arith.truncf %302 : vector<8x64xf32> to vector<8x64xbf16>
    %c0_63 = arith.constant 0 : index
    %c0_64 = arith.constant 0 : index
    %304 = vector.load %arg13[%c0_63, %c0_64] : memref<64x32xbf16, #tpu.memory_space<vmem>>, vector<64x32xbf16>
    %cst_65 = arith.constant dense<0.000000e+00> : vector<8x32xf32>
    %305 = tpu.matmul %303, %304, %cst_65 {dimension_numbers = #tpu.dot_dimension_numbers<[1], [0], [0], [1], [0, 0, 1, 1], [], []>} : vector<8x64xbf16>, vector<64x32xbf16>, vector<8x32xf32> -> vector<8x32xf32>
    %306 = vector.extract_strided_slice %305 {offsets = [4, 0], sizes = [4, 32], strides = [1, 1]} : vector<8x32xf32> to vector<4x32xf32>
    %c0_66 = arith.constant 0 : index
    %c0_67 = arith.constant 0 : index
    %307 = vector.load %arg14[%c0_66, %c0_67] : memref<1x32xf32, #tpu.memory_space<vmem>>, vector<1x32xf32>
    %308 = arith.addf %3, %306 : vector<4x32xf32>
    %309 = arith.mulf %308, %308 : vector<4x32xf32>
    %cst_68 = arith.constant dense<0.000000e+00> : vector<4xf32>
    %310 = vector.multi_reduction <add>, %309, %cst_68 [1] : vector<4x32xf32> to vector<4xf32>
    %311 = vector.shape_cast %310 : vector<4xf32> to vector<4x1xf32>
    %cst_69 = arith.constant 3.200000e+01 : f32
    %312 = vector.broadcast %cst_69 : f32 to vector<4x1xf32>
    %313 = arith.divf %311, %312 : vector<4x1xf32>
    %cst_70 = arith.constant 9.99999974E-6 : f32
    %314 = vector.broadcast %cst_70 : f32 to vector<4x1xf32>
    %315 = arith.addf %313, %314 : vector<4x1xf32>
    %316 = math.rsqrt %315 : vector<4x1xf32>
    %317 = vector.broadcast %316 : vector<4x1xf32> to vector<4x32xf32>
    %318 = arith.mulf %308, %317 : vector<4x32xf32>
    %319 = vector.broadcast %307 : vector<1x32xf32> to vector<4x32xf32>
    %320 = arith.mulf %318, %319 : vector<4x32xf32>
    %321 = arith.truncf %320 : vector<4x32xf32> to vector<4x32xbf16>
    %c0_71 = arith.constant 0 : index
    %c0_72 = arith.constant 0 : index
    %322 = vector.load %arg15[%c0_71, %c0_72] : memref<32x32xbf16, #tpu.memory_space<vmem>>, vector<32x32xbf16>
    %cst_73 = arith.constant dense<0.000000e+00> : vector<4x32xf32>
    %323 = tpu.matmul %321, %322, %cst_73 {dimension_numbers = #tpu.dot_dimension_numbers<[1], [0], [0], [1], [0, 0, 1, 1], [], []>} : vector<4x32xbf16>, vector<32x32xbf16>, vector<4x32xf32> -> vector<4x32xf32>
    %c0_74 = arith.constant 0 : index
    %c0_75 = arith.constant 0 : index
    %324 = vector.load %arg16[%c0_74, %c0_75] : memref<1x32xf32, #tpu.memory_space<vmem>>, vector<1x32xf32>
    %325 = vector.broadcast %324 : vector<1x32xf32> to vector<4x32xf32>
    %326 = arith.addf %323, %325 : vector<4x32xf32>
    %cst_76 = arith.constant 5.000000e-01 : f32
    %327 = vector.broadcast %cst_76 : f32 to vector<4x32xf32>
    %328 = arith.mulf %327, %326 : vector<4x32xf32>
    %cst_77 = arith.constant 0.707106769 : f32
    %329 = vector.broadcast %cst_77 : f32 to vector<4x32xf32>
    %330 = arith.mulf %326, %329 : vector<4x32xf32>
    %331 = math.erf %330 : vector<4x32xf32>
    %cst_78 = arith.constant 1.000000e+00 : f32
    %332 = vector.broadcast %cst_78 : f32 to vector<4x32xf32>
    %333 = arith.addf %332, %331 : vector<4x32xf32>
    %334 = arith.mulf %328, %333 : vector<4x32xf32>
    %335 = arith.truncf %334 : vector<4x32xf32> to vector<4x32xbf16>
    %c0_79 = arith.constant 0 : index
    %c0_80 = arith.constant 0 : index
    %336 = vector.load %arg17[%c0_79, %c0_80] : memref<32x32xbf16, #tpu.memory_space<vmem>>, vector<32x32xbf16>
    %cst_81 = arith.constant dense<0.000000e+00> : vector<4x32xf32>
    %337 = tpu.matmul %335, %336, %cst_81 {dimension_numbers = #tpu.dot_dimension_numbers<[1], [0], [0], [1], [0, 0, 1, 1], [], []>} : vector<4x32xbf16>, vector<32x32xbf16>, vector<4x32xf32> -> vector<4x32xf32>
    %c0_82 = arith.constant 0 : index
    %c0_83 = arith.constant 0 : index
    %338 = vector.load %arg18[%c0_82, %c0_83] : memref<1x32xf32, #tpu.memory_space<vmem>>, vector<1x32xf32>
    %339 = vector.broadcast %338 : vector<1x32xf32> to vector<4x32xf32>
    %340 = arith.addf %337, %339 : vector<4x32xf32>
    %c0_84 = arith.constant 0 : index
    %c0_85 = arith.constant 0 : index
    %341 = vector.load %arg19[%c0_84, %c0_85] : memref<1x32xf32, #tpu.memory_space<vmem>>, vector<1x32xf32>
    %342 = arith.addf %320, %340 : vector<4x32xf32>
    %343 = arith.mulf %342, %342 : vector<4x32xf32>
    %cst_86 = arith.constant dense<0.000000e+00> : vector<4xf32>
    %344 = vector.multi_reduction <add>, %343, %cst_86 [1] : vector<4x32xf32> to vector<4xf32>
    %345 = vector.shape_cast %344 : vector<4xf32> to vector<4x1xf32>
    %cst_87 = arith.constant 3.200000e+01 : f32
    %346 = vector.broadcast %cst_87 : f32 to vector<4x1xf32>
    %347 = arith.divf %345, %346 : vector<4x1xf32>
    %cst_88 = arith.constant 9.99999974E-6 : f32
    %348 = vector.broadcast %cst_88 : f32 to vector<4x1xf32>
    %349 = arith.addf %347, %348 : vector<4x1xf32>
    %350 = math.rsqrt %349 : vector<4x1xf32>
    %351 = vector.broadcast %350 : vector<4x1xf32> to vector<4x32xf32>
    %352 = arith.mulf %342, %351 : vector<4x32xf32>
    %353 = vector.broadcast %341 : vector<1x32xf32> to vector<4x32xf32>
    %354 = arith.mulf %352, %353 : vector<4x32xf32>
    %c0_89 = arith.constant 0 : index
    %c0_90 = arith.constant 0 : index
    %c0_91 = arith.constant 0 : index
    %355 = vector.load %arg22[%c0_89, %c0_90, %c0_91] : memref<1x4x32xf32, #tpu.memory_space<vmem>>, vector<1x4x32xf32>
    %356 = vector.shape_cast %355 : vector<1x4x32xf32> to vector<4x32xf32>
    %357 = vector.shape_cast %354 : vector<4x32xf32> to vector<1x4x32xf32>
    tpu.vector_store %arg22[%c0_89, %c0_90, %c0_91], %357 {strides = array<i32>} : memref<1x4x32xf32, #tpu.memory_space<vmem>>, vector<1x4x32xf32>,
    %358 = arith.truncf %354 : vector<4x32xf32> to vector<4x32xbf16>
    %c0_92 = arith.constant 0 : index
    %c0_93 = arith.constant 0 : index
    %359 = vector.load %arg20[%c0_92, %c0_93] : memref<32x16xbf16, #tpu.memory_space<vmem>>, vector<32x16xbf16>
    %cst_94 = arith.constant dense<0.000000e+00> : vector<4x16xf32>
    %360 = tpu.matmul %358, %359, %cst_94 {dimension_numbers = #tpu.dot_dimension_numbers<[1], [0], [0], [1], [0, 0, 1, 1], [], []>} : vector<4x32xbf16>, vector<32x16xbf16>, vector<4x16xf32> -> vector<4x16xf32>
    %c0_95 = arith.constant 0 : index
    %c0_96 = arith.constant 0 : index
    %361 = vector.load %arg21[%c0_95, %c0_96] : memref<1x16xf32, #tpu.memory_space<vmem>>, vector<1x16xf32>
    %362 = vector.broadcast %361 : vector<1x16xf32> to vector<4x16xf32>
    %363 = arith.addf %360, %362 : vector<4x16xf32>
    %c0_97 = arith.constant 0 : index
    %c0_98 = arith.constant 0 : index
    %c0_99 = arith.constant 0 : index
    %364 = vector.load %arg23[%c0_97, %c0_98, %c0_99] : memref<1x4x16xf32, #tpu.memory_space<vmem>>, vector<1x4x16xf32>
    %365 = vector.shape_cast %364 : vector<1x4x16xf32> to vector<4x16xf32>
    %366 = vector.shape_cast %363 : vector<4x16xf32> to vector<1x4x16xf32>
    tpu.vector_store %arg23[%c0_97, %c0_98, %c0_99], %366 {strides = array<i32>} : memref<1x4x16xf32, #tpu.memory_space<vmem>>, vector<1x4x16xf32>,
    return
  }
  func.func @transform_0(%arg0: i32) -> (i32, i32, i32) {
    %c0_i32 = arith.constant 0 : i32
    %c0_i32_0 = arith.constant 0 : i32
    %c0_i32_1 = arith.constant 0 : i32
    return %arg0, %c0_i32, %c0_i32_0 : i32, i32, i32
  }
  func.func @transform_1(%arg0: i32) -> (i32, i32, i32) {
    %c0_i32 = arith.constant 0 : i32
    %c0_i32_0 = arith.constant 0 : i32
    %c0_i32_1 = arith.constant 0 : i32
    return %arg0, %c0_i32, %c0_i32_0 : i32, i32, i32
  }
  func.func @transform_2(%arg0: i32) -> (i32, i32) {
    %c0_i32 = arith.constant 0 : i32
    %c0_i32_0 = arith.constant 0 : i32
    %c0_i32_1 = arith.constant 0 : i32
    return %c0_i32, %c0_i32_0 : i32, i32
  }
  func.func @transform_3(%arg0: i32) -> (i32, i32) {
    %c0_i32 = arith.constant 0 : i32
    %c0_i32_0 = arith.constant 0 : i32
    %c0_i32_1 = arith.constant 0 : i32
    return %c0_i32, %c0_i32_0 : i32, i32
  }
  func.func @transform_4(%arg0: i32) -> (i32, i32) {
    %c0_i32 = arith.constant 0 : i32
    %c0_i32_0 = arith.constant 0 : i32
    %c0_i32_1 = arith.constant 0 : i32
    return %c0_i32, %c0_i32_0 : i32, i32
  }
  func.func @transform_5(%arg0: i32) -> (i32, i32) {
    %c0_i32 = arith.constant 0 : i32
    %c0_i32_0 = arith.constant 0 : i32
    %c0_i32_1 = arith.constant 0 : i32
    return %c0_i32, %c0_i32_0 : i32, i32
  }
  func.func @transform_6(%arg0: i32) -> (i32, i32) {
    %c0_i32 = arith.constant 0 : i32
    %c0_i32_0 = arith.constant 0 : i32
    %c0_i32_1 = arith.constant 0 : i32
    return %c0_i32, %c0_i32_0 : i32, i32
  }
  func.func @transform_7(%arg0: i32) -> (i32, i32) {
    %c0_i32 = arith.constant 0 : i32
    %c0_i32_0 = arith.constant 0 : i32
    %c0_i32_1 = arith.constant 0 : i32
    return %c0_i32, %c0_i32_0 : i32, i32
  }
  func.func @transform_8(%arg0: i32) -> (i32, i32) {
    %c0_i32 = arith.constant 0 : i32
    %c0_i32_0 = arith.constant 0 : i32
    %c0_i32_1 = arith.constant 0 : i32
    return %c0_i32, %c0_i32_0 : i32, i32
  }
  func.func @transform_9(%arg0: i32) -> (i32, i32) {
    %c0_i32 = arith.constant 0 : i32
    %c0_i32_0 = arith.constant 0 : i32
    %c0_i32_1 = arith.constant 0 : i32
    return %c0_i32, %c0_i32_0 : i32, i32
  }
  func.func @transform_10(%arg0: i32) -> (i32, i32) {
    %c0_i32 = arith.constant 0 : i32
    %c0_i32_0 = arith.constant 0 : i32
    %c0_i32_1 = arith.constant 0 : i32
    return %c0_i32, %c0_i32_0 : i32, i32
  }
  func.func @transform_11(%arg0: i32) -> (i32, i32) {
    %c0_i32 = arith.constant 0 : i32
    %c0_i32_0 = arith.constant 0 : i32
    %c0_i32_1 = arith.constant 0 : i32
    return %c0_i32, %c0_i32_0 : i32, i32
  }
  func.func @transform_12(%arg0: i32) -> (i32, i32) {
    %c0_i32 = arith.constant 0 : i32
    %c0_i32_0 = arith.constant 0 : i32
    %c0_i32_1 = arith.constant 0 : i32
    return %c0_i32, %c0_i32_0 : i32, i32
  }
  func.func @transform_13(%arg0: i32) -> (i32, i32) {
    %c0_i32 = arith.constant 0 : i32
    %c0_i32_0 = arith.constant 0 : i32
    %c0_i32_1 = arith.constant 0 : i32
    return %c0_i32, %c0_i32_0 : i32, i32
  }
  func.func @transform_14(%arg0: i32) -> (i32, i32) {
    %c0_i32 = arith.constant 0 : i32
    %c0_i32_0 = arith.constant 0 : i32
    %c0_i32_1 = arith.constant 0 : i32
    return %c0_i32, %c0_i32_0 : i32, i32
  }
  func.func @transform_15(%arg0: i32) -> (i32, i32) {
    %c0_i32 = arith.constant 0 : i32
    %c0_i32_0 = arith.constant 0 : i32
    %c0_i32_1 = arith.constant 0 : i32
    return %c0_i32, %c0_i32_0 : i32, i32
  }
  func.func @transform_16(%arg0: i32) -> (i32, i32) {
    %c0_i32 = arith.constant 0 : i32
    %c0_i32_0 = arith.constant 0 : i32
    %c0_i32_1 = arith.constant 0 : i32
    return %c0_i32, %c0_i32_0 : i32, i32
  }
  func.func @transform_17(%arg0: i32) -> (i32, i32) {
    %c0_i32 = arith.constant 0 : i32
    %c0_i32_0 = arith.constant 0 : i32
    %c0_i32_1 = arith.constant 0 : i32
    return %c0_i32, %c0_i32_0 : i32, i32
  }
  func.func @transform_18(%arg0: i32) -> (i32, i32) {
    %c0_i32 = arith.constant 0 : i32
    %c0_i32_0 = arith.constant 0 : i32
    %c0_i32_1 = arith.constant 0 : i32
    return %c0_i32, %c0_i32_0 : i32, i32
  }
  func.func @transform_19(%arg0: i32) -> (i32, i32) {
    %c0_i32 = arith.constant 0 : i32
    %c0_i32_0 = arith.constant 0 : i32
    %c0_i32_1 = arith.constant 0 : i32
    return %c0_i32, %c0_i32_0 : i32, i32
  }
  func.func @transform_20(%arg0: i32) -> (i32, i32) {
    %c0_i32 = arith.constant 0 : i32
    %c0_i32_0 = arith.constant 0 : i32
    %c0_i32_1 = arith.constant 0 : i32
    return %c0_i32, %c0_i32_0 : i32, i32
  }
  func.func @transform_21(%arg0: i32) -> (i32, i32, i32) {
    %c0_i32 = arith.constant 0 : i32
    %c0_i32_0 = arith.constant 0 : i32
    %c0_i32_1 = arith.constant 0 : i32
    return %arg0, %c0_i32, %c0_i32_0 : i32, i32, i32
  }
  func.func @transform_22(%arg0: i32) -> (i32, i32, i32) {
    %c0_i32 = arith.constant 0 : i32
    %c0_i32_0 = arith.constant 0 : i32
    %c0_i32_1 = arith.constant 0 : i32
    return %arg0, %c0_i32, %c0_i32_0 : i32, i32, i32
  }
}

module attributes {stable_mosaic.version = 11 : i64} {
  func.func @_mammlp_kernel(%arg0: i32, %arg1: memref<1x4x32xf32, #tpu.memory_space<vmem>>, %arg2: memref<32x64xbf16, #tpu.memory_space<vmem>>, %arg3: memref<32x64xbf16, #tpu.memory_space<vmem>>, %arg4: memref<4x64xf32, #tpu.memory_space<vmem>>, %arg5: memref<1x64xf32, #tpu.memory_space<vmem>>, %arg6: memref<64x8xbf16, #tpu.memory_space<vmem>>, %arg7: memref<64x8xbf16, #tpu.memory_space<vmem>>, %arg8: memref<64x64xbf16, #tpu.memory_space<vmem>>, %arg9: memref<1x64xf32, #tpu.memory_space<vmem>>, %arg10: memref<8x64xf32, #tpu.memory_space<vmem>>, %arg11: memref<1x64xf32, #tpu.memory_space<vmem>>, %arg12: memref<64x32xbf16, #tpu.memory_space<vmem>>, %arg13: memref<1x32xf32, #tpu.memory_space<vmem>>, %arg14: memref<32x64xbf16, #tpu.memory_space<vmem>>, %arg15: memref<1x64xf32, #tpu.memory_space<vmem>>, %arg16: memref<64x32xbf16, #tpu.memory_space<vmem>>, %arg17: memref<1x32xf32, #tpu.memory_space<vmem>>, %arg18: memref<1x4x32xf32, #tpu.memory_space<vmem>>, %arg19: memref<4x64xf32, #tpu.memory_space<vmem>>) attributes {dimension_semantics = [#tpu.dimension_semantics<parallel>], iteration_bounds = array<i64: 8>, scalar_prefetch = 0 : i64, scratch_operands = 1 : i64, tpu.core_type = #tpu.core_type<tc>, window_params = [{transform_indices = @transform_0, window_bounds = array<i64: 1, 4, 32>}, {pipeline_mode = #tpu.pipeline_mode<synchronous>, transform_indices = @transform_1, window_bounds = array<i64: 32, 64>}, {pipeline_mode = #tpu.pipeline_mode<synchronous>, transform_indices = @transform_2, window_bounds = array<i64: 32, 64>}, {pipeline_mode = #tpu.pipeline_mode<synchronous>, transform_indices = @transform_3, window_bounds = array<i64: 4, 64>}, {pipeline_mode = #tpu.pipeline_mode<synchronous>, transform_indices = @transform_4, window_bounds = array<i64: 1, 64>}, {pipeline_mode = #tpu.pipeline_mode<synchronous>, transform_indices = @transform_5, window_bounds = array<i64: 64, 8>}, {pipeline_mode = #tpu.pipeline_mode<synchronous>, transform_indices = @transform_6, window_bounds = array<i64: 64, 8>}, {pipeline_mode = #tpu.pipeline_mode<synchronous>, transform_indices = @transform_7, window_bounds = array<i64: 64, 64>}, {pipeline_mode = #tpu.pipeline_mode<synchronous>, transform_indices = @transform_8, window_bounds = array<i64: 1, 64>}, {pipeline_mode = #tpu.pipeline_mode<synchronous>, transform_indices = @transform_9, window_bounds = array<i64: 8, 64>}, {pipeline_mode = #tpu.pipeline_mode<synchronous>, transform_indices = @transform_10, window_bounds = array<i64: 1, 64>}, {pipeline_mode = #tpu.pipeline_mode<synchronous>, transform_indices = @transform_11, window_bounds = array<i64: 64, 32>}, {pipeline_mode = #tpu.pipeline_mode<synchronous>, transform_indices = @transform_12, window_bounds = array<i64: 1, 32>}, {pipeline_mode = #tpu.pipeline_mode<synchronous>, transform_indices = @transform_13, window_bounds = array<i64: 32, 64>}, {pipeline_mode = #tpu.pipeline_mode<synchronous>, transform_indices = @transform_14, window_bounds = array<i64: 1, 64>}, {pipeline_mode = #tpu.pipeline_mode<synchronous>, transform_indices = @transform_15, window_bounds = array<i64: 64, 32>}, {pipeline_mode = #tpu.pipeline_mode<synchronous>, transform_indices = @transform_16, window_bounds = array<i64: 1, 32>}, {transform_indices = @transform_17, window_bounds = array<i64: 1, 4, 32>}]} {
    %c0 = arith.constant 0 : index
    %c0_0 = arith.constant 0 : index
    %c0_1 = arith.constant 0 : index
    %0 = vector.load %arg1[%c0, %c0_0, %c0_1] : memref<1x4x32xf32, #tpu.memory_space<vmem>>, vector<1x4x32xf32>
    %1 = vector.shape_cast %0 : vector<1x4x32xf32> to vector<4x32xf32>
    %c0_2 = arith.constant 0 : index
    %c0_3 = arith.constant 0 : index
    %2 = vector.load %arg4[%c0_2, %c0_3] : memref<4x64xf32, #tpu.memory_space<vmem>>, vector<4x64xf32>
    %c0_4 = arith.constant 0 : index
    %c0_5 = arith.constant 0 : index
    %3 = vector.load %arg10[%c0_4, %c0_5] : memref<8x64xf32, #tpu.memory_space<vmem>>, vector<8x64xf32>
    %4 = arith.truncf %1 : vector<4x32xf32> to vector<4x32xbf16>
    %c0_6 = arith.constant 0 : index
    %c0_7 = arith.constant 0 : index
    %5 = vector.load %arg2[%c0_6, %c0_7] : memref<32x64xbf16, #tpu.memory_space<vmem>>, vector<32x64xbf16>
    %cst = arith.constant dense<0.000000e+00> : vector<4x64xf32>
    %6 = tpu.matmul %4, %5, %cst {dimension_numbers = #tpu.dot_dimension_numbers<[1], [0], [0], [1], [0, 0, 1, 1], [], []>} : vector<4x32xbf16>, vector<32x64xbf16>, vector<4x64xf32> -> vector<4x64xf32>
    %c0_8 = arith.constant 0 : index
    %c0_9 = arith.constant 0 : index
    %7 = vector.load %arg3[%c0_8, %c0_9] : memref<32x64xbf16, #tpu.memory_space<vmem>>, vector<32x64xbf16>
    %cst_10 = arith.constant dense<0.000000e+00> : vector<4x64xf32>
    %8 = tpu.matmul %4, %7, %cst_10 {dimension_numbers = #tpu.dot_dimension_numbers<[1], [0], [0], [1], [0, 0, 1, 1], [], []>} : vector<4x32xbf16>, vector<32x64xbf16>, vector<4x64xf32> -> vector<4x64xf32>
    %9 = vector.extract_strided_slice %2 {offsets = [3, 0], sizes = [1, 64], strides = [1, 1]} : vector<4x64xf32> to vector<1x64xf32>
    %10 = vector.broadcast %9 : vector<1x64xf32> to vector<4x64xf32>
    %11 = arith.mulf %6, %10 : vector<4x64xf32>
    %12 = tpu.iota {dimensions = array<i32: 0>} : vector<4x4xi32>
    %13 = tpu.iota {dimensions = array<i32: 1>} : vector<4x4xi32>
    %c3_i32 = arith.constant 3 : i32
    %14 = vector.broadcast %c3_i32 : i32 to vector<4x4xi32>
    %15 = arith.subi %12, %14 : vector<4x4xi32>
    %16 = arith.cmpi eq, %13, %15 : vector<4x4xi32>
    %17 = arith.extui %16 : vector<4x4xi1> to vector<4x4xi32>
    %18 = arith.sitofp %17 : vector<4x4xi32> to vector<4x4xf32>
    %cst_11 = arith.constant dense<0.000000e+00> : vector<4x64xf32>
    %19 = tpu.matmul %18, %6, %cst_11 {dimension_numbers = #tpu.dot_dimension_numbers<[1], [0], [0], [1], [0, 0, 1, 1], [], []>} : vector<4x4xf32>, vector<4x64xf32>, vector<4x64xf32> -> vector<4x64xf32>
    %20 = vector.extract_strided_slice %2 {offsets = [0, 0], sizes = [1, 64], strides = [1, 1]} : vector<4x64xf32> to vector<1x64xf32>
    %21 = vector.broadcast %20 : vector<1x64xf32> to vector<4x64xf32>
    %22 = arith.mulf %19, %21 : vector<4x64xf32>
    %23 = arith.addf %11, %22 : vector<4x64xf32>
    %24 = tpu.iota {dimensions = array<i32: 0>} : vector<4x4xi32>
    %25 = tpu.iota {dimensions = array<i32: 1>} : vector<4x4xi32>
    %c2_i32 = arith.constant 2 : i32
    %26 = vector.broadcast %c2_i32 : i32 to vector<4x4xi32>
    %27 = arith.subi %24, %26 : vector<4x4xi32>
    %28 = arith.cmpi eq, %25, %27 : vector<4x4xi32>
    %29 = arith.extui %28 : vector<4x4xi1> to vector<4x4xi32>
    %30 = arith.sitofp %29 : vector<4x4xi32> to vector<4x4xf32>
    %cst_12 = arith.constant dense<0.000000e+00> : vector<4x64xf32>
    %31 = tpu.matmul %30, %6, %cst_12 {dimension_numbers = #tpu.dot_dimension_numbers<[1], [0], [0], [1], [0, 0, 1, 1], [], []>} : vector<4x4xf32>, vector<4x64xf32>, vector<4x64xf32> -> vector<4x64xf32>
    %32 = vector.extract_strided_slice %2 {offsets = [1, 0], sizes = [1, 64], strides = [1, 1]} : vector<4x64xf32> to vector<1x64xf32>
    %33 = vector.broadcast %32 : vector<1x64xf32> to vector<4x64xf32>
    %34 = arith.mulf %31, %33 : vector<4x64xf32>
    %35 = arith.addf %23, %34 : vector<4x64xf32>
    %36 = tpu.iota {dimensions = array<i32: 0>} : vector<4x4xi32>
    %37 = tpu.iota {dimensions = array<i32: 1>} : vector<4x4xi32>
    %c1_i32 = arith.constant 1 : i32
    %38 = vector.broadcast %c1_i32 : i32 to vector<4x4xi32>
    %39 = arith.subi %36, %38 : vector<4x4xi32>
    %40 = arith.cmpi eq, %37, %39 : vector<4x4xi32>
    %41 = arith.extui %40 : vector<4x4xi1> to vector<4x4xi32>
    %42 = arith.sitofp %41 : vector<4x4xi32> to vector<4x4xf32>
    %cst_13 = arith.constant dense<0.000000e+00> : vector<4x64xf32>
    %43 = tpu.matmul %42, %6, %cst_13 {dimension_numbers = #tpu.dot_dimension_numbers<[1], [0], [0], [1], [0, 0, 1, 1], [], []>} : vector<4x4xf32>, vector<4x64xf32>, vector<4x64xf32> -> vector<4x64xf32>
    %44 = vector.extract_strided_slice %2 {offsets = [2, 0], sizes = [1, 64], strides = [1, 1]} : vector<4x64xf32> to vector<1x64xf32>
    %45 = vector.broadcast %44 : vector<1x64xf32> to vector<4x64xf32>
    %46 = arith.mulf %43, %45 : vector<4x64xf32>
    %47 = arith.addf %35, %46 : vector<4x64xf32>
    %c0_14 = arith.constant 0 : index
    %c0_15 = arith.constant 0 : index
    %48 = vector.load %arg5[%c0_14, %c0_15] : memref<1x64xf32, #tpu.memory_space<vmem>>, vector<1x64xf32>
    %49 = vector.broadcast %48 : vector<1x64xf32> to vector<4x64xf32>
    %50 = arith.addf %47, %49 : vector<4x64xf32>
    %51 = arith.negf %50 : vector<4x64xf32>
    %52 = math.exp %51 : vector<4x64xf32>
    %cst_16 = arith.constant 1.000000e+00 : f32
    %53 = vector.broadcast %cst_16 : f32 to vector<4x64xf32>
    %54 = arith.addf %53, %52 : vector<4x64xf32>
    %55 = arith.divf %53, %54 : vector<4x64xf32>
    %56 = arith.mulf %50, %55 : vector<4x64xf32>
    %57 = arith.truncf %56 : vector<4x64xf32> to vector<4x64xbf16>
    %c0_17 = arith.constant 0 : index
    %c0_18 = arith.constant 0 : index
    %58 = vector.load %arg6[%c0_17, %c0_18] : memref<64x8xbf16, #tpu.memory_space<vmem>>, vector<64x8xbf16>
    %cst_19 = arith.constant dense<0.000000e+00> : vector<4x8xf32>
    %59 = tpu.matmul %57, %58, %cst_19 {dimension_numbers = #tpu.dot_dimension_numbers<[1], [0], [0], [1], [0, 0, 1, 1], [], []>} : vector<4x64xbf16>, vector<64x8xbf16>, vector<4x8xf32> -> vector<4x8xf32>
    %c0_20 = arith.constant 0 : index
    %c0_21 = arith.constant 0 : index
    %60 = vector.load %arg7[%c0_20, %c0_21] : memref<64x8xbf16, #tpu.memory_space<vmem>>, vector<64x8xbf16>
    %cst_22 = arith.constant dense<0.000000e+00> : vector<4x8xf32>
    %61 = tpu.matmul %57, %60, %cst_22 {dimension_numbers = #tpu.dot_dimension_numbers<[1], [0], [0], [1], [0, 0, 1, 1], [], []>} : vector<4x64xbf16>, vector<64x8xbf16>, vector<4x8xf32> -> vector<4x8xf32>
    %c0_23 = arith.constant 0 : index
    %c0_24 = arith.constant 0 : index
    %62 = vector.load %arg8[%c0_23, %c0_24] : memref<64x64xbf16, #tpu.memory_space<vmem>>, vector<64x64xbf16>
    %cst_25 = arith.constant dense<0.000000e+00> : vector<4x64xf32>
    %63 = tpu.matmul %57, %62, %cst_25 {dimension_numbers = #tpu.dot_dimension_numbers<[1], [0], [0], [1], [0, 0, 1, 1], [], []>} : vector<4x64xbf16>, vector<64x64xbf16>, vector<4x64xf32> -> vector<4x64xf32>
    %c0_26 = arith.constant 0 : index
    %c0_27 = arith.constant 0 : index
    %64 = vector.load %arg9[%c0_26, %c0_27] : memref<1x64xf32, #tpu.memory_space<vmem>>, vector<1x64xf32>
    %65 = vector.broadcast %64 : vector<1x64xf32> to vector<4x64xf32>
    %66 = arith.addf %63, %65 : vector<4x64xf32>
    %cst_28 = arith.constant 2.000000e+01 : f32
    %67 = vector.broadcast %cst_28 : f32 to vector<4x64xf32>
    %68 = arith.cmpf ogt, %66, %67 : vector<4x64xf32>
    %cst_29 = arith.constant 2.000000e+01 : f32
    %69 = vector.broadcast %cst_29 : f32 to vector<4x64xf32>
    %70 = arith.minimumf %66, %69 : vector<4x64xf32>
    %71 = math.exp %70 : vector<4x64xf32>
    %72 = math.log1p %71 : vector<4x64xf32>
    %73 = arith.select %68, %66, %72 : vector<4x64xi1>, vector<4x64xf32>
    %c0_30 = arith.constant 0 : index
    %c0_31 = arith.constant 0 : index
    %74 = vector.load %arg11[%c0_30, %c0_31] : memref<1x64xf32, #tpu.memory_space<vmem>>, vector<1x64xf32>
    %cst_32 = arith.constant 0.000000e+00 : f32
    %75 = vector.broadcast %cst_32 : f32 to vector<8x64xf32>
    %76 = vector.extract_strided_slice %73 {offsets = [0, 0], sizes = [1, 64], strides = [1, 1]} : vector<4x64xf32> to vector<1x64xf32>
    %77 = vector.extract_strided_slice %56 {offsets = [0, 0], sizes = [1, 64], strides = [1, 1]} : vector<4x64xf32> to vector<1x64xf32>
    %78 = vector.extract_strided_slice %59 {offsets = [0, 0], sizes = [1, 8], strides = [1, 1]} : vector<4x8xf32> to vector<1x8xf32>
    %79 = vector.extract_strided_slice %61 {offsets = [0, 0], sizes = [1, 8], strides = [1, 1]} : vector<4x8xf32> to vector<1x8xf32>
    %80 = vector.broadcast %76 : vector<1x64xf32> to vector<8x64xf32>
    %81 = arith.mulf %80, %3 : vector<8x64xf32>
    %82 = math.exp %81 : vector<8x64xf32>
    %83 = arith.mulf %76, %77 : vector<1x64xf32>
    %84 = vector.shape_cast %83 : vector<1x64xf32> to vector<1x1x64xf32>
    %85 = vector.shape_cast %78 : vector<1x8xf32> to vector<1x8x1xf32>
    %86 = vector.broadcast %84 : vector<1x1x64xf32> to vector<1x8x64xf32>
    %87 = vector.broadcast %85 : vector<1x8x1xf32> to vector<1x8x64xf32>
    %88 = arith.mulf %86, %87 : vector<1x8x64xf32>
    %89 = vector.shape_cast %88 : vector<1x8x64xf32> to vector<8x64xf32>
    %90 = arith.mulf %82, %75 : vector<8x64xf32>
    %91 = arith.addf %90, %89 : vector<8x64xf32>
    %cst_33 = arith.constant dense<0.000000e+00> : vector<1x64xf32>
    %92 = tpu.matmul %79, %91, %cst_33 {dimension_numbers = #tpu.dot_dimension_numbers<[1], [0], [0], [1], [0, 0, 1, 1], [], []>} : vector<1x8xf32>, vector<8x64xf32>, vector<1x64xf32> -> vector<1x64xf32>
    %93 = arith.mulf %74, %77 : vector<1x64xf32>
    %94 = arith.addf %92, %93 : vector<1x64xf32>
    %95 = vector.extract_strided_slice %8 {offsets = [0, 0], sizes = [1, 64], strides = [1, 1]} : vector<4x64xf32> to vector<1x64xf32>
    %96 = arith.negf %95 : vector<1x64xf32>
    %97 = math.exp %96 : vector<1x64xf32>
    %cst_34 = arith.constant 1.000000e+00 : f32
    %98 = vector.broadcast %cst_34 : f32 to vector<1x64xf32>
    %99 = arith.addf %98, %97 : vector<1x64xf32>
    %100 = arith.divf %98, %99 : vector<1x64xf32>
    %101 = arith.mulf %95, %100 : vector<1x64xf32>
    %102 = arith.mulf %94, %101 : vector<1x64xf32>
    %c0_35 = arith.constant 0 : index
    %c0_36 = arith.constant 0 : index
    %103 = vector.load %arg19[%c0_35, %c0_36] : memref<4x64xf32, #tpu.memory_space<vmem>>, vector<1x64xf32>
    tpu.vector_store %arg19[%c0_35, %c0_36], %102 {strides = array<i32>} : memref<4x64xf32, #tpu.memory_space<vmem>>, vector<1x64xf32>,
    %104 = vector.extract_strided_slice %73 {offsets = [1, 0], sizes = [1, 64], strides = [1, 1]} : vector<4x64xf32> to vector<1x64xf32>
    %105 = vector.extract_strided_slice %56 {offsets = [1, 0], sizes = [1, 64], strides = [1, 1]} : vector<4x64xf32> to vector<1x64xf32>
    %106 = vector.extract_strided_slice %59 {offsets = [1, 0], sizes = [1, 8], strides = [1, 1]} : vector<4x8xf32> to vector<1x8xf32>
    %107 = vector.extract_strided_slice %61 {offsets = [1, 0], sizes = [1, 8], strides = [1, 1]} : vector<4x8xf32> to vector<1x8xf32>
    %108 = vector.broadcast %104 : vector<1x64xf32> to vector<8x64xf32>
    %109 = arith.mulf %108, %3 : vector<8x64xf32>
    %110 = math.exp %109 : vector<8x64xf32>
    %111 = arith.mulf %104, %105 : vector<1x64xf32>
    %112 = vector.shape_cast %111 : vector<1x64xf32> to vector<1x1x64xf32>
    %113 = vector.shape_cast %106 : vector<1x8xf32> to vector<1x8x1xf32>
    %114 = vector.broadcast %112 : vector<1x1x64xf32> to vector<1x8x64xf32>
    %115 = vector.broadcast %113 : vector<1x8x1xf32> to vector<1x8x64xf32>
    %116 = arith.mulf %114, %115 : vector<1x8x64xf32>
    %117 = vector.shape_cast %116 : vector<1x8x64xf32> to vector<8x64xf32>
    %118 = arith.mulf %110, %91 : vector<8x64xf32>
    %119 = arith.addf %118, %117 : vector<8x64xf32>
    %cst_37 = arith.constant dense<0.000000e+00> : vector<1x64xf32>
    %120 = tpu.matmul %107, %119, %cst_37 {dimension_numbers = #tpu.dot_dimension_numbers<[1], [0], [0], [1], [0, 0, 1, 1], [], []>} : vector<1x8xf32>, vector<8x64xf32>, vector<1x64xf32> -> vector<1x64xf32>
    %121 = arith.mulf %74, %105 : vector<1x64xf32>
    %122 = arith.addf %120, %121 : vector<1x64xf32>
    %123 = vector.extract_strided_slice %8 {offsets = [1, 0], sizes = [1, 64], strides = [1, 1]} : vector<4x64xf32> to vector<1x64xf32>
    %124 = arith.negf %123 : vector<1x64xf32>
    %125 = math.exp %124 : vector<1x64xf32>
    %cst_38 = arith.constant 1.000000e+00 : f32
    %126 = vector.broadcast %cst_38 : f32 to vector<1x64xf32>
    %127 = arith.addf %126, %125 : vector<1x64xf32>
    %128 = arith.divf %126, %127 : vector<1x64xf32>
    %129 = arith.mulf %123, %128 : vector<1x64xf32>
    %130 = arith.mulf %122, %129 : vector<1x64xf32>
    %c1 = arith.constant 1 : index
    %c0_39 = arith.constant 0 : index
    %131 = vector.load %arg19[%c1, %c0_39] : memref<4x64xf32, #tpu.memory_space<vmem>>, vector<1x64xf32>
    tpu.vector_store %arg19[%c1, %c0_39], %130 {strides = array<i32>} : memref<4x64xf32, #tpu.memory_space<vmem>>, vector<1x64xf32>,
    %132 = vector.extract_strided_slice %73 {offsets = [2, 0], sizes = [1, 64], strides = [1, 1]} : vector<4x64xf32> to vector<1x64xf32>
    %133 = vector.extract_strided_slice %56 {offsets = [2, 0], sizes = [1, 64], strides = [1, 1]} : vector<4x64xf32> to vector<1x64xf32>
    %134 = vector.extract_strided_slice %59 {offsets = [2, 0], sizes = [1, 8], strides = [1, 1]} : vector<4x8xf32> to vector<1x8xf32>
    %135 = vector.extract_strided_slice %61 {offsets = [2, 0], sizes = [1, 8], strides = [1, 1]} : vector<4x8xf32> to vector<1x8xf32>
    %136 = vector.broadcast %132 : vector<1x64xf32> to vector<8x64xf32>
    %137 = arith.mulf %136, %3 : vector<8x64xf32>
    %138 = math.exp %137 : vector<8x64xf32>
    %139 = arith.mulf %132, %133 : vector<1x64xf32>
    %140 = vector.shape_cast %139 : vector<1x64xf32> to vector<1x1x64xf32>
    %141 = vector.shape_cast %134 : vector<1x8xf32> to vector<1x8x1xf32>
    %142 = vector.broadcast %140 : vector<1x1x64xf32> to vector<1x8x64xf32>
    %143 = vector.broadcast %141 : vector<1x8x1xf32> to vector<1x8x64xf32>
    %144 = arith.mulf %142, %143 : vector<1x8x64xf32>
    %145 = vector.shape_cast %144 : vector<1x8x64xf32> to vector<8x64xf32>
    %146 = arith.mulf %138, %119 : vector<8x64xf32>
    %147 = arith.addf %146, %145 : vector<8x64xf32>
    %cst_40 = arith.constant dense<0.000000e+00> : vector<1x64xf32>
    %148 = tpu.matmul %135, %147, %cst_40 {dimension_numbers = #tpu.dot_dimension_numbers<[1], [0], [0], [1], [0, 0, 1, 1], [], []>} : vector<1x8xf32>, vector<8x64xf32>, vector<1x64xf32> -> vector<1x64xf32>
    %149 = arith.mulf %74, %133 : vector<1x64xf32>
    %150 = arith.addf %148, %149 : vector<1x64xf32>
    %151 = vector.extract_strided_slice %8 {offsets = [2, 0], sizes = [1, 64], strides = [1, 1]} : vector<4x64xf32> to vector<1x64xf32>
    %152 = arith.negf %151 : vector<1x64xf32>
    %153 = math.exp %152 : vector<1x64xf32>
    %cst_41 = arith.constant 1.000000e+00 : f32
    %154 = vector.broadcast %cst_41 : f32 to vector<1x64xf32>
    %155 = arith.addf %154, %153 : vector<1x64xf32>
    %156 = arith.divf %154, %155 : vector<1x64xf32>
    %157 = arith.mulf %151, %156 : vector<1x64xf32>
    %158 = arith.mulf %150, %157 : vector<1x64xf32>
    %c2 = arith.constant 2 : index
    %c0_42 = arith.constant 0 : index
    %159 = vector.load %arg19[%c2, %c0_42] : memref<4x64xf32, #tpu.memory_space<vmem>>, vector<1x64xf32>
    tpu.vector_store %arg19[%c2, %c0_42], %158 {strides = array<i32>} : memref<4x64xf32, #tpu.memory_space<vmem>>, vector<1x64xf32>,
    %160 = vector.extract_strided_slice %73 {offsets = [3, 0], sizes = [1, 64], strides = [1, 1]} : vector<4x64xf32> to vector<1x64xf32>
    %161 = vector.extract_strided_slice %56 {offsets = [3, 0], sizes = [1, 64], strides = [1, 1]} : vector<4x64xf32> to vector<1x64xf32>
    %162 = vector.extract_strided_slice %59 {offsets = [3, 0], sizes = [1, 8], strides = [1, 1]} : vector<4x8xf32> to vector<1x8xf32>
    %163 = vector.extract_strided_slice %61 {offsets = [3, 0], sizes = [1, 8], strides = [1, 1]} : vector<4x8xf32> to vector<1x8xf32>
    %164 = vector.broadcast %160 : vector<1x64xf32> to vector<8x64xf32>
    %165 = arith.mulf %164, %3 : vector<8x64xf32>
    %166 = math.exp %165 : vector<8x64xf32>
    %167 = arith.mulf %160, %161 : vector<1x64xf32>
    %168 = vector.shape_cast %167 : vector<1x64xf32> to vector<1x1x64xf32>
    %169 = vector.shape_cast %162 : vector<1x8xf32> to vector<1x8x1xf32>
    %170 = vector.broadcast %168 : vector<1x1x64xf32> to vector<1x8x64xf32>
    %171 = vector.broadcast %169 : vector<1x8x1xf32> to vector<1x8x64xf32>
    %172 = arith.mulf %170, %171 : vector<1x8x64xf32>
    %173 = vector.shape_cast %172 : vector<1x8x64xf32> to vector<8x64xf32>
    %174 = arith.mulf %166, %147 : vector<8x64xf32>
    %175 = arith.addf %174, %173 : vector<8x64xf32>
    %cst_43 = arith.constant dense<0.000000e+00> : vector<1x64xf32>
    %176 = tpu.matmul %163, %175, %cst_43 {dimension_numbers = #tpu.dot_dimension_numbers<[1], [0], [0], [1], [0, 0, 1, 1], [], []>} : vector<1x8xf32>, vector<8x64xf32>, vector<1x64xf32> -> vector<1x64xf32>
    %177 = arith.mulf %74, %161 : vector<1x64xf32>
    %178 = arith.addf %176, %177 : vector<1x64xf32>
    %179 = vector.extract_strided_slice %8 {offsets = [3, 0], sizes = [1, 64], strides = [1, 1]} : vector<4x64xf32> to vector<1x64xf32>
    %180 = arith.negf %179 : vector<1x64xf32>
    %181 = math.exp %180 : vector<1x64xf32>
    %cst_44 = arith.constant 1.000000e+00 : f32
    %182 = vector.broadcast %cst_44 : f32 to vector<1x64xf32>
    %183 = arith.addf %182, %181 : vector<1x64xf32>
    %184 = arith.divf %182, %183 : vector<1x64xf32>
    %185 = arith.mulf %179, %184 : vector<1x64xf32>
    %186 = arith.mulf %178, %185 : vector<1x64xf32>
    %c3 = arith.constant 3 : index
    %c0_45 = arith.constant 0 : index
    %187 = vector.load %arg19[%c3, %c0_45] : memref<4x64xf32, #tpu.memory_space<vmem>>, vector<1x64xf32>
    tpu.vector_store %arg19[%c3, %c0_45], %186 {strides = array<i32>} : memref<4x64xf32, #tpu.memory_space<vmem>>, vector<1x64xf32>,
    %c0_46 = arith.constant 0 : index
    %c0_47 = arith.constant 0 : index
    %188 = vector.load %arg19[%c0_46, %c0_47] : memref<4x64xf32, #tpu.memory_space<vmem>>, vector<4x64xf32>
    %189 = arith.truncf %188 : vector<4x64xf32> to vector<4x64xbf16>
    %c0_48 = arith.constant 0 : index
    %c0_49 = arith.constant 0 : index
    %190 = vector.load %arg12[%c0_48, %c0_49] : memref<64x32xbf16, #tpu.memory_space<vmem>>, vector<64x32xbf16>
    %cst_50 = arith.constant dense<0.000000e+00> : vector<4x32xf32>
    %191 = tpu.matmul %189, %190, %cst_50 {dimension_numbers = #tpu.dot_dimension_numbers<[1], [0], [0], [1], [0, 0, 1, 1], [], []>} : vector<4x64xbf16>, vector<64x32xbf16>, vector<4x32xf32> -> vector<4x32xf32>
    %c0_51 = arith.constant 0 : index
    %c0_52 = arith.constant 0 : index
    %192 = vector.load %arg13[%c0_51, %c0_52] : memref<1x32xf32, #tpu.memory_space<vmem>>, vector<1x32xf32>
    %193 = arith.addf %191, %1 : vector<4x32xf32>
    %194 = arith.mulf %193, %193 : vector<4x32xf32>
    %cst_53 = arith.constant dense<0.000000e+00> : vector<4xf32>
    %195 = vector.multi_reduction <add>, %194, %cst_53 [1] : vector<4x32xf32> to vector<4xf32>
    %196 = vector.shape_cast %195 : vector<4xf32> to vector<4x1xf32>
    %cst_54 = arith.constant 3.200000e+01 : f32
    %197 = vector.broadcast %cst_54 : f32 to vector<4x1xf32>
    %198 = arith.divf %196, %197 : vector<4x1xf32>
    %cst_55 = arith.constant 9.99999974E-6 : f32
    %199 = vector.broadcast %cst_55 : f32 to vector<4x1xf32>
    %200 = arith.addf %198, %199 : vector<4x1xf32>
    %201 = math.rsqrt %200 : vector<4x1xf32>
    %202 = vector.broadcast %201 : vector<4x1xf32> to vector<4x32xf32>
    %203 = arith.mulf %193, %202 : vector<4x32xf32>
    %204 = vector.broadcast %192 : vector<1x32xf32> to vector<4x32xf32>
    %205 = arith.mulf %203, %204 : vector<4x32xf32>
    %206 = arith.truncf %205 : vector<4x32xf32> to vector<4x32xbf16>
    %c0_56 = arith.constant 0 : index
    %c0_57 = arith.constant 0 : index
    %207 = vector.load %arg14[%c0_56, %c0_57] : memref<32x64xbf16, #tpu.memory_space<vmem>>, vector<32x64xbf16>
    %cst_58 = arith.constant dense<0.000000e+00> : vector<4x64xf32>
    %208 = tpu.matmul %206, %207, %cst_58 {dimension_numbers = #tpu.dot_dimension_numbers<[1], [0], [0], [1], [0, 0, 1, 1], [], []>} : vector<4x32xbf16>, vector<32x64xbf16>, vector<4x64xf32> -> vector<4x64xf32>
    %c0_59 = arith.constant 0 : index
    %c0_60 = arith.constant 0 : index
    %209 = vector.load %arg15[%c0_59, %c0_60] : memref<1x64xf32, #tpu.memory_space<vmem>>, vector<1x64xf32>
    %210 = vector.broadcast %209 : vector<1x64xf32> to vector<4x64xf32>
    %211 = arith.addf %208, %210 : vector<4x64xf32>
    %cst_61 = arith.constant 5.000000e-01 : f32
    %212 = vector.broadcast %cst_61 : f32 to vector<4x64xf32>
    %213 = arith.mulf %212, %211 : vector<4x64xf32>
    %cst_62 = arith.constant 0.707106769 : f32
    %214 = vector.broadcast %cst_62 : f32 to vector<4x64xf32>
    %215 = arith.mulf %211, %214 : vector<4x64xf32>
    %216 = math.erf %215 : vector<4x64xf32>
    %cst_63 = arith.constant 1.000000e+00 : f32
    %217 = vector.broadcast %cst_63 : f32 to vector<4x64xf32>
    %218 = arith.addf %217, %216 : vector<4x64xf32>
    %219 = arith.mulf %213, %218 : vector<4x64xf32>
    %220 = arith.truncf %219 : vector<4x64xf32> to vector<4x64xbf16>
    %c0_64 = arith.constant 0 : index
    %c0_65 = arith.constant 0 : index
    %221 = vector.load %arg16[%c0_64, %c0_65] : memref<64x32xbf16, #tpu.memory_space<vmem>>, vector<64x32xbf16>
    %cst_66 = arith.constant dense<0.000000e+00> : vector<4x32xf32>
    %222 = tpu.matmul %220, %221, %cst_66 {dimension_numbers = #tpu.dot_dimension_numbers<[1], [0], [0], [1], [0, 0, 1, 1], [], []>} : vector<4x64xbf16>, vector<64x32xbf16>, vector<4x32xf32> -> vector<4x32xf32>
    %c0_67 = arith.constant 0 : index
    %c0_68 = arith.constant 0 : index
    %223 = vector.load %arg17[%c0_67, %c0_68] : memref<1x32xf32, #tpu.memory_space<vmem>>, vector<1x32xf32>
    %224 = vector.broadcast %223 : vector<1x32xf32> to vector<4x32xf32>
    %225 = arith.addf %222, %224 : vector<4x32xf32>
    %226 = arith.addf %225, %205 : vector<4x32xf32>
    %227 = arith.mulf %226, %226 : vector<4x32xf32>
    %cst_69 = arith.constant dense<0.000000e+00> : vector<4xf32>
    %228 = vector.multi_reduction <add>, %227, %cst_69 [1] : vector<4x32xf32> to vector<4xf32>
    %229 = vector.shape_cast %228 : vector<4xf32> to vector<4x1xf32>
    %cst_70 = arith.constant 3.200000e+01 : f32
    %230 = vector.broadcast %cst_70 : f32 to vector<4x1xf32>
    %231 = arith.divf %229, %230 : vector<4x1xf32>
    %cst_71 = arith.constant 9.99999974E-6 : f32
    %232 = vector.broadcast %cst_71 : f32 to vector<4x1xf32>
    %233 = arith.addf %231, %232 : vector<4x1xf32>
    %234 = math.rsqrt %233 : vector<4x1xf32>
    %235 = vector.broadcast %234 : vector<4x1xf32> to vector<4x32xf32>
    %236 = arith.mulf %226, %235 : vector<4x32xf32>
    %237 = vector.broadcast %192 : vector<1x32xf32> to vector<4x32xf32>
    %238 = arith.mulf %236, %237 : vector<4x32xf32>
    %c0_72 = arith.constant 0 : index
    %c0_73 = arith.constant 0 : index
    %c0_74 = arith.constant 0 : index
    %239 = vector.load %arg18[%c0_72, %c0_73, %c0_74] : memref<1x4x32xf32, #tpu.memory_space<vmem>>, vector<1x4x32xf32>
    %240 = vector.shape_cast %239 : vector<1x4x32xf32> to vector<4x32xf32>
    %241 = vector.shape_cast %238 : vector<4x32xf32> to vector<1x4x32xf32>
    tpu.vector_store %arg18[%c0_72, %c0_73, %c0_74], %241 {strides = array<i32>} : memref<1x4x32xf32, #tpu.memory_space<vmem>>, vector<1x4x32xf32>,
    return
  }
  func.func @transform_0(%arg0: i32) -> (i32, i32, i32) {
    %c0_i32 = arith.constant 0 : i32
    %c0_i32_0 = arith.constant 0 : i32
    %c0_i32_1 = arith.constant 0 : i32
    return %arg0, %c0_i32, %c0_i32_0 : i32, i32, i32
  }
  func.func @transform_1(%arg0: i32) -> (i32, i32) {
    %c0_i32 = arith.constant 0 : i32
    %c0_i32_0 = arith.constant 0 : i32
    %c0_i32_1 = arith.constant 0 : i32
    return %c0_i32, %c0_i32_0 : i32, i32
  }
  func.func @transform_2(%arg0: i32) -> (i32, i32) {
    %c0_i32 = arith.constant 0 : i32
    %c0_i32_0 = arith.constant 0 : i32
    %c0_i32_1 = arith.constant 0 : i32
    return %c0_i32, %c0_i32_0 : i32, i32
  }
  func.func @transform_3(%arg0: i32) -> (i32, i32) {
    %c0_i32 = arith.constant 0 : i32
    %c0_i32_0 = arith.constant 0 : i32
    %c0_i32_1 = arith.constant 0 : i32
    return %c0_i32, %c0_i32_0 : i32, i32
  }
  func.func @transform_4(%arg0: i32) -> (i32, i32) {
    %c0_i32 = arith.constant 0 : i32
    %c0_i32_0 = arith.constant 0 : i32
    %c0_i32_1 = arith.constant 0 : i32
    return %c0_i32, %c0_i32_0 : i32, i32
  }
  func.func @transform_5(%arg0: i32) -> (i32, i32) {
    %c0_i32 = arith.constant 0 : i32
    %c0_i32_0 = arith.constant 0 : i32
    %c0_i32_1 = arith.constant 0 : i32
    return %c0_i32, %c0_i32_0 : i32, i32
  }
  func.func @transform_6(%arg0: i32) -> (i32, i32) {
    %c0_i32 = arith.constant 0 : i32
    %c0_i32_0 = arith.constant 0 : i32
    %c0_i32_1 = arith.constant 0 : i32
    return %c0_i32, %c0_i32_0 : i32, i32
  }
  func.func @transform_7(%arg0: i32) -> (i32, i32) {
    %c0_i32 = arith.constant 0 : i32
    %c0_i32_0 = arith.constant 0 : i32
    %c0_i32_1 = arith.constant 0 : i32
    return %c0_i32, %c0_i32_0 : i32, i32
  }
  func.func @transform_8(%arg0: i32) -> (i32, i32) {
    %c0_i32 = arith.constant 0 : i32
    %c0_i32_0 = arith.constant 0 : i32
    %c0_i32_1 = arith.constant 0 : i32
    return %c0_i32, %c0_i32_0 : i32, i32
  }
  func.func @transform_9(%arg0: i32) -> (i32, i32) {
    %c0_i32 = arith.constant 0 : i32
    %c0_i32_0 = arith.constant 0 : i32
    %c0_i32_1 = arith.constant 0 : i32
    return %c0_i32, %c0_i32_0 : i32, i32
  }
  func.func @transform_10(%arg0: i32) -> (i32, i32) {
    %c0_i32 = arith.constant 0 : i32
    %c0_i32_0 = arith.constant 0 : i32
    %c0_i32_1 = arith.constant 0 : i32
    return %c0_i32, %c0_i32_0 : i32, i32
  }
  func.func @transform_11(%arg0: i32) -> (i32, i32) {
    %c0_i32 = arith.constant 0 : i32
    %c0_i32_0 = arith.constant 0 : i32
    %c0_i32_1 = arith.constant 0 : i32
    return %c0_i32, %c0_i32_0 : i32, i32
  }
  func.func @transform_12(%arg0: i32) -> (i32, i32) {
    %c0_i32 = arith.constant 0 : i32
    %c0_i32_0 = arith.constant 0 : i32
    %c0_i32_1 = arith.constant 0 : i32
    return %c0_i32, %c0_i32_0 : i32, i32
  }
  func.func @transform_13(%arg0: i32) -> (i32, i32) {
    %c0_i32 = arith.constant 0 : i32
    %c0_i32_0 = arith.constant 0 : i32
    %c0_i32_1 = arith.constant 0 : i32
    return %c0_i32, %c0_i32_0 : i32, i32
  }
  func.func @transform_14(%arg0: i32) -> (i32, i32) {
    %c0_i32 = arith.constant 0 : i32
    %c0_i32_0 = arith.constant 0 : i32
    %c0_i32_1 = arith.constant 0 : i32
    return %c0_i32, %c0_i32_0 : i32, i32
  }
  func.func @transform_15(%arg0: i32) -> (i32, i32) {
    %c0_i32 = arith.constant 0 : i32
    %c0_i32_0 = arith.constant 0 : i32
    %c0_i32_1 = arith.constant 0 : i32
    return %c0_i32, %c0_i32_0 : i32, i32
  }
  func.func @transform_16(%arg0: i32) -> (i32, i32) {
    %c0_i32 = arith.constant 0 : i32
    %c0_i32_0 = arith.constant 0 : i32
    %c0_i32_1 = arith.constant 0 : i32
    return %c0_i32, %c0_i32_0 : i32, i32
  }
  func.func @transform_17(%arg0: i32) -> (i32, i32, i32) {
    %c0_i32 = arith.constant 0 : i32
    %c0_i32_0 = arith.constant 0 : i32
    %c0_i32_1 = arith.constant 0 : i32
    return %arg0, %c0_i32, %c0_i32_0 : i32, i32, i32
  }
}

</mosaic_0001>

<bundles_post_ra>
// kernel: decoder_layer_forward.5
= control target key start
LH: loop header
LB: loop body
LE: loop exit
PB: predicated region body
PF: predicated region fallthrough
CT: control target
= control target key end

     0   :  { %s2644_s0 = inlined_call_operand.vmem [shape: f32[8,8,32], index: 0, kind: input, shape index: {}]   ;;  %s2645_s1 = inlined_call_operand.vmem [shape: f32[8,4,32], index: 1, kind: input, shape index: {}]   ;;  %s2646_s2 = inlined_call_operand.vmem [shape: bf16[32,64], index: 2, kind: input, shape index: {}]   ;;  %s2647_s3 = inlined_call_operand.vmem [shape: bf16[32,64], index: 3, kind: input, shape index: {}]   ;;  %s2648_s4 = inlined_call_operand.vmem [shape: f32[4,64], index: 4, kind: input, shape index: {}]   ;;  %s2649_s5 = inlined_call_operand.vmem [shape: f32[1,64], index: 5, kind: input, shape index: {}]   ;;  %s2650_s6 = inlined_call_operand.vmem [shape: bf16[64,8], index: 6, kind: input, shape index: {}]   ;;  %s2651_s7 = inlined_call_operand.vmem [shape: bf16[64,8], index: 7, kind: input, shape index: {}]   ;;  %s2652_s8 = inlined_call_operand.vmem [shape: bf16[64,64], index: 8, kind: input, shape index: {}]   ;;  %s2653_s9 = inlined_call_operand.vmem [shape: f32[1,64], index: 9, kind: input, shape index: {}]   ;;  %s2654_s10 = inlined_call_operand.vmem [shape: f32[8,64], index: 10, kind: input, shape index: {}]   ;;  %s2655_s11 = inlined_call_operand.vmem [shape: f32[1,64], index: 11, kind: input, shape index: {}]   ;;  %s2656_s12 = inlined_call_operand.vmem [shape: bf16[64,32], index: 12, kind: input, shape index: {}]   ;;  %s2657_s13 = inlined_call_operand.vmem [shape: f32[1,32], index: 13, kind: input, shape index: {}]   ;;  %s2658_s14 = inlined_call_operand.vmem [shape: bf16[32,32], index: 14, kind: input, shape index: {}]   ;;  %s2659_s15 = inlined_call_operand.vmem [shape: f32[1,32], index: 15, kind: input, shape index: {}]   ;;  %s2660_s16 = inlined_call_operand.vmem [shape: bf16[32,32], index: 16, kind: input, shape index: {}]   ;;  %s2661_s17 = inlined_call_operand.vmem [shape: f32[1,32], index: 17, kind: input, shape index: {}]   ;;  %s2662_s18 = inlined_call_operand.vmem [shape: f32[1,32], index: 18, kind: input, shape index: {}]   ;;  %s2663_s19 = inlined_call_operand.vmem [shape: bf16[32,16], index: 19, kind: input, shape index: {}]   ;;  %s2664_s20 = inlined_call_operand.vmem [shape: f32[1,16], index: 20, kind: input, shape index: {}]   ;;  %s2665_s21 = inlined_call_operand.hbm [shape: f32[8,4,32], index: 21, kind: output, shape index: {0}]   ;;  %s2666_s22 = inlined_call_operand.hbm [shape: f32[8,4,16], index: 22, kind: output, shape index: {1}]  }
   0x1   :  { %2680 = sst [smem:[#allocation15_spill]] %s2644_s0 }
   0x2   :  { %2681 = sst [smem:[#allocation16_spill]] %s2645_s1 }
   0x3   :  { %2682 = sst [smem:[#allocation17_spill]] %s2646_s2 }
   0x4   :  { %2683 = sst [smem:[#allocation18_spill]] %s2647_s3 }
   0x5   :  { %2684 = sst [smem:[#allocation19_spill]] %s2648_s4 }
   0x6   :  { %2685 = sst [smem:[#allocation20_spill]] %s2649_s5 }
   0x7   :  { %2686 = sst [smem:[#allocation21_spill]] %s2650_s6 }
   0x8   :  { %2687 = sst [smem:[#allocation22_spill]] %s2651_s7 }
   0x9   :  { %2688 = sst [smem:[#allocation23_spill]] %s2652_s8 }
   0xa   :  { %2689 = sst [smem:[#allocation24_spill]] %s2653_s9 }
   0xb   :  { %2690 = sst [smem:[#allocation25_spill]] %s2654_s10 }
   0xc   :  { %2691 = sst [smem:[#allocation26_spill]] %s2664_s20 }
   0xd   :  { %2692 = sst [smem:[#allocation27_spill]] %s2665_s21 }
   0xe   :  { %2693 = sst [smem:[#allocation28_spill]] %s2666_s22 }
   0xf   :  { %28 = vsyncpa [#allocation4], 0 }
  0x10   :  { %30 = vsyncpa [#allocation4 + $0x1], 0 }
  0x11   :  { %31 = vsyncpa [#allocation6], 0 }
  0x12   :  { %33 = vsyncpa [#allocation6 + $0x1], 0  ;;  %s2332_s3 = smov 0   ;;  %s2334_s28 = smov 0  }
  0x13   :  { %s2336_s29 = smov 0   ;;  %s2338_s30 = smov 0  }
  0x14 LB: > { %2694 = sst [smem:[#allocation9_spill]] %s2201_s3  ;;  %s2353_s4 = sadd.s32 4294967295, %s2213_s30   ;;  %s2213_s30 = sphi %s2338_s30, %s2721_s30   ;;  %s2209_s29 = sphi %s2336_s29, %s2723_s29   ;;  %s2205_s28 = sphi %s2334_s28, %s2725_s28   ;;  %s2201_s3 = sphi %s2332_s3, %s2724_s3  }
  0x15   : > { %2695 = sst [smem:[#allocation10_spill]] %s2209_s29  ;;  %s1854_s0 = sadd.s32 4294967294, %s2213_s30  }
  0x16   : > { %2696 = sst [smem:[#allocation11_spill]] %s2213_s30  ;;  %s2357_s23 = sadd.s32 1, %s2213_s30  }
  0x17   : > { %2697 = sst [smem:[#allocation12_spill]] %s2357_s23  ;;  %s497_s1 = sadd.s32 1, %s2209_s29 }
  0x18   : > { %s494_s5 = ssub.s32 %s2213_s30, %s2357_s23  ;;  %p507_p0 = scmp.ne.s32.totalorder %s2209_s29, %s2205_s28 }
  0x19   : > { %p495_p1 = scmp.eq.s32.totalorder %s494_s5, 0  ;;  %p508_p2 = scmp.eq.s32.totalorder %s2353_s4, 7 }
  0x1a   : > { %p513_p3 = scmp.ne.s32.totalorder %s2205_s28, %s2201_s3  ;;  %p514_p4 = scmp.eq.s32.totalorder %s1854_s0, 7 }
  0x1b   : > { %s2368_s24 = scalar_select %p495_p1, %s2209_s29, %s497_s1  }
  0x1c   : > { %p2370_p5 = por %p508_p2, %p507_p0  ;;  %p2374_p6 = por %p514_p4, %p513_p3 }
  0x1d   : > { %2698 = sst [smem:[#allocation13_spill]] %s2368_s24  ;;  %p1857_p7 = scmp.ge.s32.totalorder %s2213_s30, 1 }
  0x1e   : > { %s2700_s25 = scalar_select %p2374_p6, 1, 0 }
  0x1f   : > { %p629_p8 = scmp.lt.s32.totalorder %s2213_s30, 9 }
  0x20   : > { %2701 = sst [smem:[#allocation14_spill]] %s2700_s25 }
  0x21   : > { %p630_p9 = pnand %p1857_p7, %p629_p8 }
  0x22   : > { %s2702_s27 = sld [smem:[#allocation17_spill]] (!%p630_p9)  ;;  %p699_p10 = scmp.lt.s32.totalorder (!%p630_p9), %s2353_s4, 7 }
  0x23   : > { %633 = sbr.rel (%p630_p9) target bundleno = 1667 (0x683), region = 104  ;;  %s2703_s25 = sld [smem:[#allocation15_spill]] (!%p630_p9) }
  0x24   : > { %s2704_s23 = sld [smem:[#allocation18_spill]] (!%p630_p9) }
  0x25   : > { %s2705_s0 = sld [smem:[#allocation19_spill]] (!%p630_p9) }
  0x26   : > { %s2706_s30 = sld [smem:[#allocation21_spill]] (!%p630_p9) }
  0x27   : > { %s2708_s7 = sld [smem:[#allocation22_spill]] (!%p630_p9) }
  0x28   : > { %v2002_v0 = vld [vmem:[%s2702_s27 + $0x8] sm:$0xff]  ;;  %v2001_v1 = vld [vmem:[%s2702_s27] sm:$0xff]  ;;  %s2388_s5 = scalar_select %p699_p10, %s2353_s4, 7  ;;  %vm729_vm0 = vcmask 261120   ;;  %v777_v4 = vlaneseq  ;;  %v2215_v9 = vmov 0.0   ;;  %vm785_vm3 = vcmask 64512  }
  0x29   : > { %739 = vmatpush.bf16.msra.mxu0 %v2002_v0  ;;  %s2709_s8 = sld [smem:[#allocation23_spill]]  ;;  %vm930_vm9 = vcmask 523264  }
  0x2a   : > { %s1860_s24 = sshll.u32 %s2388_s5, 3  ;;  %v778_v5 = vshrl.u32 %v777_v4, 7  ;;  %v780_v6 = vand.u32 127, %v777_v4  ;;  %v2004_v16 = vld [vmem:[%s2704_s23 + $0x8] sm:$0xff]  ;;  %v2003_v17 = vld [vmem:[%s2704_s23] sm:$0xff]  ;;  %s2710_s21 = sld [smem:[#allocation20_spill]] }
  0x2b   : > { %s702_s3 = scalar_lea.vmem %s2703_s25, %s1860_s24  ;;  %768 = vmatpush.bf16.msra.mxu1 %v2004_v16  ;;  %v710_v18 = vld [vmem:[%s2705_s0] sm:$0xf]  ;;  %s2711_s9 = sld [smem:[#allocation24_spill]] }
  0x2c   : > { %v708_v2 = vld [vmem:[%s702_s3] sm:$0xff]  ;;  %2075 = vset.pattern.permute.xlu2 %v778_v5  ;;  %2074 = vset.pattern.permute.xlu1 %v778_v5  ;;  %v1880_v7 = vadd.s32 4294967293, %v778_v5  ;;  %v1883_v8 = vadd.s32 4294967294, %v778_v5  ;;  %v1886_v13 = vadd.s32 4294967295, %v778_v5  ;;  %v809_v19 = vperm.slane %v710_v18, 0  ;;  %s2707_s20 = smov %s2706_s30  ;;  %v2008_v21 = vld [vmem:[%s2706_s30 + $0x18] sm:$0xff] }
  0x2d   : > { %740 = vmatpush.bf16.msra.mxu0 %v2001_v1  ;;  %v712_v3 = vpack.c.bf16 %v708_v2, %v708_v2  ;;  %2073 = vset.pattern.permute.xlu0 %v778_v5  ;;  %v775_v20 = vperm.slane %v710_v18, 3  ;;  %v2012_v22 = vld [vmem:[%s2708_s7 + $0x18] sm:$0xff]  ;;  %v839_v26 = vperm.slane %v710_v18, 1  ;;  %v2007_v29 = vld [vmem:[%s2707_s20 + $0x10] sm:$0xff]  ;;  %v869_v34 = vperm.slane %v710_v18, 2  ;;  %v2006_v35 = vld [vmem:[%s2707_s20 + $0x8] sm:$0xff] }
  0x2e   : > { %vm782_vm1 = vcmp.eq.s32.totalorder %v780_v6, %v1880_v7  ;;  %vm813_vm2 = vcmp.eq.s32.totalorder %v780_v6, %v1883_v8  ;;  %vm843_vm4 = vcmp.eq.s32.totalorder %v780_v6, %v1886_v13  ;;  %v2011_v30 = vld [vmem:[%s2708_s7 + $0x10] sm:$0xff]  ;;  %v2010_v36 = vld [vmem:[%s2708_s7 + $0x8] sm:$0xff]  ;;  %v2005_v43 = vld [vmem:[%s2707_s20] sm:$0xff]  ;;  %s2712_s10 = sld [smem:[#allocation25_spill]]  ;;  %s1861_s29 = sshll.u32 %s2388_s5, 2 }
  0x2f   : > { %v1881_v10 = vsel %vm782_vm1, 1.0, %v2215_v9  ;;  %v1884_v11 = vsel %vm813_vm2, 1.0, %v2215_v9  ;;  %v1887_v14 = vsel %vm843_vm4, 1.0, %v2215_v9  ;;  %769 = vmatpush.bf16.msra.mxu1 %v2003_v17  ;;  %v2016_v23 = vld [vmem:[%s2709_s8 + $0x18] sm:$0xff]  ;;  %v2015_v31 = vld [vmem:[%s2709_s8 + $0x10] sm:$0xff]  ;;  %v2014_v37 = vld [vmem:[%s2709_s8 + $0x8] sm:$0xff] }
  0x30   : > { %1870 = vmatmul.msk.bf16.vlgmr.msra.gmra.mxu0 %vm729_vm0, %v712_v3  ;;  %v2076_v41 = vld [vmem:[%s2710_s21] ss:$0 sm:$0xff]  ;;  %vm1117_vm1 = vcmask 516096   ;;  %s2713_s21 = sld [smem:[#allocation16_spill]]  ;;  %vm1506_vm2 = vcmask 257024   ;;  %s2583_s0 = sand.u32 1, %s2205_s28  }
  0x31   : > { %983 = vmatpush.bf16.msrb.mxu0 %v2012_v22  ;;  %v2009_v44 = vld [vmem:[%s2708_s7] sm:$0xff]  ;;  %s1997_s30 = sshll.u32 %s2353_s4, 2  ;;  %s2714_s5 = sld [smem:[#allocation27_spill]] }
  0x32   : > { %1879 = vmatmul.msk.bf16.vlgmr.msra.gmra.mxu1 %vm729_vm0, %v712_v3  ;;  %v2013_v45 = vld [vmem:[%s2709_s8] sm:$0xff]  ;;  %s1716_s2 = scalar_lea.sflag [#allocation4], %s2583_s0 }
  0x33   : > { %1032 = vmatpush.bf16.msrb.mxu1 %v2016_v23 }
  0x35   : > { %984 = vmatpush.bf16.msrb.mxu0 %v2011_v30 }
  0x36   : > { %s706_s22 = scalar_lea.vmem %s2713_s21, %s1861_s29  ;;  %s2679_s29 = sshll.u32 %s2583_s0, 2 }
  0x37   : > { %1033 = vmatpush.bf16.msrb.mxu1 %v2015_v31  ;;  %s691_s27 = scalar_lea.vmem [#allocation3], %s2679_s29  ;;  %s1731_s24 = scalar_lea.hbm %s2714_s5, %s1997_s30 }
  0x38   : > { %s1733_s25 = sshll.u32 %s691_s27, 4  ;;  %s1735_s26 = sshll.u32 %s1731_s24, 4  ;;  %s1734_s25 = int_to_ptr.vmem [resolvable:$true] %s1733_s25  ;;  %s1736_s26 = int_to_ptr.hbm [resolvable:$true] %s1735_s26 }
  0x39   : > { %985 = vmatpush.bf16.msrb.mxu0 %v2010_v36  ;;  %s2133_s1 = sshra.s32 %s1736_s26, 4  ;;  %s2139_s4 = scalar_lea.hbm %s2714_s5, 32  ;;  %s2134_s1 = int_to_ptr.hbm [resolvable:$true] %s2133_s1 }
  0x3a   : > { %s2135_s3 = scalar_lea.hbm %s2134_s1, 4  ;;  %p2140_p0 = scmp.lt.s32.totalorder %s2134_s1, %s2714_s5 }
  0x3b   : > { %1034 = vmatpush.bf16.msrb.mxu1 %v2014_v37  ;;  %p2136_p11 = scmp.ne.s32.totalorder %s2134_s1, %s2135_s3  ;;  %p2141_p1 = scmp.lt.s32.totalorder %s2139_s4, %s2135_s3 }
  0x3d   : > { %986 = vmatpush.bf16.msrb.mxu0 %v2009_v44  ;;  %p2137_p12 = pnand %p2136_p11, %p2370_p5  ;;  %p2142_p2 = por %p2141_p1, %p2140_p0 }
  0x3f   : > { %1035 = vmatpush.bf16.msrb.mxu1 %v2013_v45  ;;  %p2138_p13 = pneg %p2137_p12 }
  0x41   : > { %p2143_p3 = pnand %p2142_p2, %p2138_p13 }
  0xad   : > { %v742_v12 = vpop.f32.mrf.mxu0 }
  0xae   : > { %804 = vmatpush.msra.mxu2 %v742_v12  ;;  %834 = vmatpush.msra.mxu3 %v742_v12  ;;  %v776_v28 = vmul.f32 %v775_v20, %v742_v12  ;;  %v2077_v20 = vld [vmem:[%s2711_s9] ss:$0 sm:$0xff] }
  0xaf   : > { %1882 = vmatmul.msk.f32.vlgmr.msra.gmra.mxu2 %vm785_vm3, %v1881_v10  ;;  %1885 = vmatmul.msk.f32.vlgmr.msra.gmra.mxu3 %vm785_vm3, %v1884_v11  ;;  %v2473_v4 = vpop.f32.mrf.mxu1 }
  0xb0   : > { %864 = vmatpush.msrb.mxu2 %v742_v12  ;;  %938 = vmatpush.bf16.msrb.mxu3 %v2008_v21 }
  0xb4   : > { %939 = vmatpush.bf16.msrb.mxu3 %v2007_v29 }
  0xb5   : > { %v744_v15 = vpop.f32.mrf.mxu0 }
  0xb7   : > { %1888 = vmatmul.msk.f32.vlgmr.msrb.gmra.mxu2 %vm785_vm3, %v1887_v14  ;;  %v773_v5 = vpop.f32.mrf.mxu1 }
  0xb8   : > { %940 = vmatpush.bf16.msrb.mxu3 %v2006_v35  ;;  %v711_v35 = vld [vmem:[%s2712_s10] sm:$0xff] }
  0xbc   : > { %941 = vmatpush.bf16.msrb.mxu3 %v2005_v43 }
 0x132   : > { %v806_v24 = vpop.f32.mrf.mxu2  ;;  %v836_v27 = vpop.f32.mrf.mxu3 }
 0x133   : > { %v810_v25 = vmul.f32 %v809_v19, %v806_v24  ;;  %v840_v33 = vmul.f32 %v839_v26, %v836_v27 }
 0x135   : > { %v811_v32 = vadd.f32 %v810_v25, %v776_v28 }
 0x137   : > { %v841_v39 = vadd.f32 %v840_v33, %v811_v32 }
 0x13a   : > { %v866_v38 = vpop.f32.mrf.mxu2 }
 0x13b   : > { %v870_v40 = vmul.f32 %v869_v34, %v866_v38 }
 0x13d   : > { %v871_v42 = vadd.f32 %v870_v40, %v841_v39 }
 0x13f   : > { %v876_v46 = vadd.f32 %v2076_v41, %v871_v42 }
 0x141   : > { %v1889_v47 = vmul.f32 -1.442695, %v876_v46 }
 0x143   : > { %2083 = vpow2.f32 %v1889_v47 }
 0x149   : > { %v2084_v48 = vpop.eup %2083 }
 0x14a   : > { %v880_v49 = vadd.f32 1.0, %v2084_v48 }
 0x14c   : > { %2085 = vrcp.f32 %v880_v49  ;;  %v892_v53 = vand.u32 2147483648, %v880_v49  ;;  %v890_v55 = vand.u32 2147483647, %v880_v49  ;;  %vm886_vm6 = vweird.f32 %v880_v49 }
 0x14e   : > { %v893_v57 = vor.u32 1.1754944e-38, %v892_v53  ;;  %vm891_vm8 = vcmp.eq.f32.partialorder %v890_v55, 8.507059e+37 }
 0x152   : > { %v2086_v50 = vpop.eup %2085 }
 0x153   : > { %v882_v51 = vmul.f32 %v2086_v50, %v880_v49  ;;  %vm887_vm5 = vweird.f32 %v2086_v50 }
 0x154   : > { %vm888_vm7 = vmor %vm886_vm6, %vm887_vm5 }
 0x155   : > { %v883_v52 = vsub.f32 1.0, %v882_v51 }
 0x157   : > { %v884_v54 = vmul.f32 %v2086_v50, %v883_v52 }
 0x159   : > { %v885_v56 = vadd.f32 %v2086_v50, %v884_v54 }
 0x15b   : > { %v889_v58 = vsel %vm888_vm7, %v2086_v50, %v885_v56 }
 0x15c   : > { %v894_v59 = vsel %vm891_vm8, %v893_v57, %v889_v58 }
 0x15d   : > { %v2447_v60 = vmul.f32 %v894_v59, %v876_v46 }
 0x15f   : > { %1135 = vst [vmem:[#allocation1] sm:$0xff] %v2447_v60  ;;  %v897_v61 = vpack.c.bf16 %v2447_v60, %v2447_v60 }
 0x161   : > { %1906 = vmatmul.msk.bf16.vlgmr.msrb.gmra.mxu3 %vm930_vm9, %v897_v61  ;;  %1923 = vmatmul.msk.bf16.vlgmr.msrb.gmra.mxu0 %vm930_vm9, %v897_v61 }
 0x162   : > { %1940 = vmatmul.msk.bf16.vlgmr.msrb.gmra.mxu1 %vm930_vm9, %v897_v61 }
 0x166   : > { %v2455_v62 = vld [vmem:[#allocation1 + $0x1] ss:$9 sm:$0xff] }
 0x167   : > { %1183 = vst [vmem:[#allocation1] sm:$0xff] %v2447_v60 }
 0x16e   : > { %v2458_v63 = vld [vmem:[#allocation1 + $0x2] ss:$9 sm:$0xff] }
 0x16f   : > { %1230 = vst [vmem:[#allocation1] sm:$0xff] %v2447_v60 }
 0x176   : > { %v2461_v0 = vld [vmem:[#allocation1 + $0x3] ss:$9 sm:$0xff] }
 0x177   : > { %1277 = vst [vmem:[#allocation1] sm:$0xff] %v2447_v60 }
 0x17e   : > { %v2464_v1 = vld [vmem:[#allocation1 + $0x4] ss:$9 sm:$0xff] }
 0x17f   : > { %1324 = vst [vmem:[#allocation1] sm:$0xff] %v2447_v60 }
 0x186   : > { %v2467_v2 = vld [vmem:[#allocation1 + $0x5] ss:$9 sm:$0xff] }
 0x187   : > { %1371 = vst [vmem:[#allocation1] sm:$0xff] %v2447_v60 }
 0x18e   : > { %v2470_v3 = vld [vmem:[#allocation1 + $0x6] ss:$9 sm:$0xff] }
 0x18f   : > { %1418 = vst [vmem:[#allocation1] sm:$0xff] %v2447_v60 }
 0x1de   : > { %v2475_v6 = vpop.f32.mrf.mxu0 }
 0x1df   : > { %v1037_v7 = vpop.f32.mrf.mxu1 }
 0x1e0   : > { %v1038_v21 = vadd.f32 %v2077_v20, %v1037_v7 }
 0x1e2   : > { %v1042_v22 = vmin.f32 %v1038_v21, 20.0  ;;  %vm1041_vm11 = vcmp.gt.f32.partialorder %v1038_v21, 20.0 }
 0x1e4   : > { %v943_v8 = vpop.f32.mrf.mxu3  ;;  %v1043_v23 = vmul.f32 1.442695, %v1042_v22 }
 0x1e5   : > { %v1266_v9 = vperm.slane %v943_v8, 4  ;;  %v1172_v10 = vperm.slane %v943_v8, 2  ;;  %v1061_v11 = vperm.slane %v943_v8, 0  ;;  %v1313_v15 = vperm.slane %v943_v8, 5 }
 0x1e6   : > { %v990_v12 = vpop.f32.mrf.mxu0  ;;  %v1219_v16 = vperm.slane %v943_v8, 3  ;;  %v1123_v17 = vperm.slane %v943_v8, 1  ;;  %v1407_v18 = vperm.slane %v943_v8, 7  ;;  %v1360_v19 = vperm.slane %v943_v8, 6 }
 0x1e7   : > { %v1039_v13 = vpop.f32.mrf.mxu1  ;;  %1271 = vperm.xlu2 %2075, %v1266_v9   ;;  %1177 = vperm.xlu1 %2074, %v1172_v10   ;;  %2087 = vpow2.f32 %v1043_v23 }
 0x1e8   : > { %1066 = vperm.xlu0 %2073, %v1061_v11  }
 0x1ec   : > { %v945_v14 = vpop.f32.mrf.mxu3 }
 0x1ed   : > { %v2088_v24 = vpop.eup %2087 }
 0x1ee   : > { %v1045_v25 = vadd.f32 1.0, %v2088_v24  ;;  %v1048_v26 = vmul.f32 -0.5, %v2088_v24  ;;  %v1051_v29 = vand.u32 2147483647, %v2088_v24 }
 0x1ef   : > { %1318 = vperm.xlu2 %2075, %v1313_v15   ;;  %1224 = vperm.xlu1 %2074, %v1219_v16   ;;  %v1140_v15 = vrot.slane %v2475_v6, 1 }
 0x1f0   : > { %1128 = vperm.xlu0 %2073, %v1123_v17   ;;  %2089 = vlog2.f32 %v1045_v25  ;;  %v1049_v28 = vadd.f32 1.0, %v1048_v26  ;;  %vm1052_vm10 = vcmp.lt.f32.partialorder %v1051_v29, 0.0004427343 }
 0x1f2   : > { %v1050_v31 = vmul.f32 %v2088_v24, %v1049_v28 }
 0x1f6   : > { %v2090_v27 = vpop.eup %2089 }
 0x1f7   : > { %1412 = vperm.xlu1 %2074, %v1407_v18   ;;  %v1047_v30 = vmul.f32 0.6931472, %v2090_v27 }
 0x1f8   : > { %1365 = vperm.xlu0 %2073, %v1360_v19  }
 0x1f9   : > { %v1053_v32 = vsel %vm1052_vm10, %v1050_v31, %v1047_v30 }
 0x1fa   : > { %v1054_v33 = vsel %vm1041_vm11, %v1038_v21, %v1053_v32  ;;  %v1188_v32 = vrot.slane %v2475_v6, 2 }
 0x1fb   : > { %v1056_v34 = vperm.slane %v1054_v33, 0  ;;  %v1119_v38 = vperm.slane %v1054_v33, 1  ;;  %v1168_v40 = vperm.slane %v1054_v33, 2  ;;  %v2484_v41 = vmul.f32 %v1054_v33, %v2447_v60 }
 0x1fc   : > { %v1215_v45 = vperm.slane %v1054_v33, 3  ;;  %v1262_v52 = vperm.slane %v1054_v33, 4  ;;  %v1309_v57 = vperm.slane %v1054_v33, 5  ;;  %v1356_v10 = vperm.slane %v1054_v33, 6 }
 0x1fd   : > { %v1057_v36 = vmul.f32 %v1056_v34, %v711_v35  ;;  %v1120_v39 = vmul.f32 %v1119_v38, %v711_v35  ;;  %v1169_v44 = vmul.f32 %v1168_v40, %v711_v35  ;;  %v1068_v46 = vperm.slane %v2484_v41, 0 }
 0x1fe   : > { %v1216_v51 = vmul.f32 %v1215_v45, %v711_v35  ;;  %v1263_v56 = vmul.f32 %v1262_v52, %v711_v35  ;;  %v1130_v58 = vperm.slane %v2484_v41, 1  ;;  %v1310_v9 = vmul.f32 %v1309_v57, %v711_v35 }
 0x1ff   : > { %v1058_v37 = vmul.f32 1.442695, %v1057_v36  ;;  %v1121_v43 = vmul.f32 1.442695, %v1120_v39  ;;  %v1170_v50 = vmul.f32 1.442695, %v1169_v44  ;;  %v1357_v20 = vmul.f32 %v1356_v10, %v711_v35 }
 0x200   : > { %v1217_v55 = vmul.f32 1.442695, %v1216_v51  ;;  %v1264_v8 = vmul.f32 1.442695, %v1263_v56  ;;  %v1179_v11 = vperm.slane %v2484_v41, 2  ;;  %v1403_v21 = vperm.slane %v1054_v33, 7 }
 0x201   : > { %2091 = vpow2.f32 %v1058_v37  ;;  %v1311_v19 = vmul.f32 1.442695, %v1310_v9  ;;  %v1226_v22 = vperm.slane %v2484_v41, 3  ;;  %v1358_v27 = vmul.f32 1.442695, %v1357_v20 }
 0x202   : > { %2093 = vpow2.f32 %v1121_v43  ;;  %v1404_v28 = vmul.f32 %v1403_v21, %v711_v35  ;;  %v1273_v29 = vperm.slane %v2484_v41, 4  ;;  %v1235_v34 = vrot.slane %v2475_v6, 3 }
 0x203   : > { %2095 = vpow2.f32 %v1170_v50  ;;  %v1320_v35 = vperm.slane %v2484_v41, 5  ;;  %v1376_v56 = vrot.slane %v2475_v6, 6 }
 0x204   : > { %2097 = vpow2.f32 %v1217_v55  ;;  %v1405_v38 = vmul.f32 1.442695, %v1404_v28  ;;  %v2018_v28 = vld [vmem:[%s2656_s12 + $0x8] sm:$0xff] }
 0x205   : > { %2099 = vpow2.f32 %v1264_v8 }
 0x206   : > { %2101 = vpow2.f32 %v1311_v19 }
 0x207   : > { %v2092_v42 = vpop.eup %2091  ;;  %2103 = vpow2.f32 %v1358_v27 }
 0x208   : > { %v1070_v48 = vmul.f32 0.0, %v2092_v42  ;;  %v2094_v59 = vpop.eup %2093  ;;  %v1282_v42 = vrot.slane %v2475_v6, 4  ;;  %2105 = vpow2.f32 %v1405_v38 }
 0x209   : > { %v2096_v13 = vpop.eup %2095 }
 0x20a   : > { %v2098_v24 = vpop.eup %2097 }
 0x20b   : > { %v2100_v31 = vpop.eup %2099 }
 0x20c   : > { %v2102_v40 = vpop.eup %2101 }
 0x241   : > { %v1272_v14 = vpop.permute.xlu2 %1271 }
 0x242   : > { %v1274_v36 = vmul.f32 %v1273_v29, %v1272_v14 }
 0x249   : > { %v1319_v37 = vpop.permute.xlu2 %1318 }
 0x24a   : > { %v1321_v43 = vmul.f32 %v1320_v35, %v1319_v37 }
 0x259   : > { %v1178_v54 = vpop.permute.xlu1 %1177 }
 0x25a   : > { %v1067_v47 = vpop.permute.xlu0 %1066  ;;  %v1180_v16 = vmul.f32 %v1179_v11, %v1178_v54 }
 0x25b   : > { %v1069_v49 = vmul.f32 %v1068_v46, %v1067_v47  ;;  %v1367_v47 = vperm.slane %v2484_v41, 6 }
 0x25d   : > { %v1071_v53 = vadd.f32 %v1070_v48, %v1069_v49  ;;  %v2104_v48 = vpop.eup %2103  ;;  %v1329_v49 = vrot.slane %v2475_v6, 5 }
 0x25e   : > { %v2106_v55 = vpop.eup %2105 }
 0x25f   : > { %1091 = vmatpush.msra.mxu2 %v1071_v53  ;;  %v1132_v5 = vmul.f32 %v2094_v59, %v1071_v53  ;;  %v1414_v53 = vperm.slane %v2484_v41, 7 }
 0x260   : > { %1941 = vmatmul.msk.f32.vlgmr.msra.gmra.mxu2 %vm785_vm3, %v2475_v6 }
 0x261   : > { %v1225_v18 = vpop.permute.xlu1 %1224 }
 0x262   : > { %v1129_v61 = vpop.permute.xlu0 %1128  ;;  %v1227_v25 = vmul.f32 %v1226_v22, %v1225_v18 }
 0x263   : > { %v1131_v7 = vmul.f32 %v1130_v58, %v1129_v61  ;;  %v1423_v61 = vrot.slane %v2475_v6, 7 }
 0x265   : > { %v1133_v12 = vadd.f32 %v1132_v5, %v1131_v7  ;;  %v1942_v5 = vmul.f32 -1.442695, %v2473_v4 }
 0x267   : > { %v1181_v17 = vmul.f32 %v2096_v13, %v1133_v12  ;;  %1158 = vmatpush.msrb.mxu2 %v1133_v12  ;;  %2107 = vpow2.f32 %v1942_v5 }
 0x268   : > { %1943 = vmatmul.msk.f32.vlgmr.msrb.gmra.mxu2 %vm785_vm3, %v1140_v15 }
 0x269   : > { %v1182_v23 = vadd.f32 %v1181_v17, %v1180_v16  ;;  %v1413_v52 = vpop.permute.xlu1 %1412  ;;  %v1055_v16 = vld [vmem:[%s2655_s11] sm:$0x1] }
 0x26a   : > { %v1366_v45 = vpop.permute.xlu0 %1365  ;;  %v1415_v57 = vmul.f32 %v1414_v53, %v1413_v52  ;;  %v1072_v18 = vmul.f32 %v1055_v16, %v2447_v60  ;;  %v1281_v29 = vmul.f32 %v2464_v1, %v1055_v16  ;;  %v1328_v35 = vmul.f32 %v2467_v2, %v1055_v16 }
 0x26b   : > { %v1228_v26 = vmul.f32 %v2098_v24, %v1182_v23  ;;  %1206 = vmatpush.msra.mxu2 %v1182_v23  ;;  %v1368_v51 = vmul.f32 %v1367_v47, %v1366_v45  ;;  %v2020_v23 = vld [vmem:[%s2656_s12 + $0x18] sm:$0xff]  ;;  %v1139_v24 = vmul.f32 %v2455_v62, %v1055_v16  ;;  %v1375_v2 = vmul.f32 %v2470_v3, %v1055_v16  ;;  %v709_v3 = vld [vmem:[%s706_s22] sm:$0xf] }
 0x26d   : > { %v1229_v30 = vadd.f32 %v1228_v26, %v1227_v25  ;;  %v2108_v7 = vpop.eup %2107  ;;  %v2019_v25 = vld [vmem:[%s2656_s12 + $0x10] sm:$0xff] }
 0x26e   : > { %v1099_v41 = vadd.f32 1.0, %v2108_v7 }
 0x26f   : > { %v1275_v33 = vmul.f32 %v2100_v31, %v1229_v30  ;;  %1253 = vmatpush.msra.mxu3 %v1229_v30 }
 0x270   : > { %1944 = vmatmul.msk.f32.vlgmr.msra.gmra.mxu2 %vm785_vm3, %v1188_v32  ;;  %1945 = vmatmul.msk.f32.vlgmr.msra.gmra.mxu3 %vm785_vm3, %v1235_v34  ;;  %2109 = vrcp.f32 %v1099_v41  ;;  %vm1105_vm12 = vweird.f32 %v1099_v41  ;;  %v1111_v12 = vand.u32 2147483648, %v1099_v41  ;;  %v1109_v14 = vand.u32 2147483647, %v1099_v41 }
 0x271   : > { %v1276_v39 = vadd.f32 %v1275_v33, %v1274_v36  ;;  %v1187_v32 = vmul.f32 %v2458_v63, %v1055_v16  ;;  %v1234_v34 = vmul.f32 %v2461_v0, %v1055_v16  ;;  %v2017_v36 = vld [vmem:[%s2656_s12] sm:$0xff] }
 0x272   : > { %v1112_v6 = vor.u32 1.1754944e-38, %v1111_v12  ;;  %vm1110_vm15 = vcmp.eq.f32.partialorder %v1109_v14, 8.507059e+37  ;;  %v2022_v14 = vld [vmem:[%s2658_s14 + $0x8] sm:$0xff] }
 0x273   : > { %v1322_v44 = vmul.f32 %v2102_v40, %v1276_v39  ;;  %1300 = vmatpush.msra.mxu0 %v1276_v39 }
 0x274   : > { %1946 = vmatmul.msk.f32.vlgmr.msra.gmra.mxu0 %vm785_vm3, %v1282_v42 }
 0x275   : > { %v1323_v46 = vadd.f32 %v1322_v44, %v1321_v43  ;;  %1491 = vmatpush.bf16.msrb.mxu0 %v2020_v23 }
 0x276   : > { %v2110_v8 = vpop.eup %2109 }
 0x277   : > { %v1369_v50 = vmul.f32 %v2104_v48, %v1323_v46  ;;  %1347 = vmatpush.msra.mxu1 %v1323_v46  ;;  %v1101_v9 = vmul.f32 %v2110_v8, %v1099_v41  ;;  %vm1106_vm13 = vweird.f32 %v2110_v8  ;;  %v1420_v48 = vld [vmem:[#allocation1 + $0x7] ss:$9 sm:$0xff] }
 0x278   : > { %1947 = vmatmul.msk.f32.vlgmr.msra.gmra.mxu1 %vm785_vm3, %v1329_v49  ;;  %vm1107_vm14 = vmor %vm1105_vm12, %vm1106_vm13  ;;  %v1422_v52 = vmul.f32 %v1420_v48, %v1055_v16 }
 0x279   : > { %v1370_v54 = vadd.f32 %v1369_v50, %v1368_v51  ;;  %v1102_v10 = vsub.f32 1.0, %v1101_v9  ;;  %1492 = vmatpush.bf16.msrb.mxu0 %v2019_v25  ;;  %v2216_v9 = vmov 32.0   ;;  %1564 = vmatpush.bf16.msrb.mxu1 %v2022_v14  ;;  %v2080_v14 = vld [vmem:[%s2661_s17] ss:$0 sm:$0xff] }
 0x27a   : > { %2111 = vrcp.f32 %v2216_v9 }
 0x27b   : > { %v1416_v58 = vmul.f32 %v2106_v55, %v1370_v54  ;;  %1394 = vmatpush.msrb.mxu2 %v1370_v54  ;;  %v1103_v11 = vmul.f32 %v2110_v8, %v1102_v10 }
 0x27c   : > { %1948 = vmatmul.msk.f32.vlgmr.msrb.gmra.mxu2 %vm785_vm3, %v1376_v56 }
 0x27d   : > { %v1417_v59 = vadd.f32 %v1416_v58, %v1415_v57  ;;  %v1104_v13 = vadd.f32 %v2110_v8, %v1103_v11  ;;  %1493 = vmatpush.bf16.msrb.mxu0 %v2018_v28 }
 0x27f   : > { %1441 = vmatpush.msrb.mxu3 %v1417_v59  ;;  %v1108_v15 = vsel %vm1107_vm14, %v2110_v8, %v1104_v13 }
 0x280   : > { %1949 = vmatmul.msk.f32.vlgmr.msrb.gmra.mxu3 %vm785_vm3, %v1423_v61  ;;  %v1113_v17 = vsel %vm1110_vm15, %v1112_v6, %v1108_v15  ;;  %v2112_v10 = vpop.eup %2111  ;;  %v2021_v15 = vld [vmem:[%s2658_s14] sm:$0xff] }
 0x281   : > { %v1115_v20 = vmul.f32 %v1113_v17, %v2473_v4  ;;  %1494 = vmatpush.bf16.msrb.mxu0 %v2017_v36  ;;  %v1511_v11 = vmul.f32 32.0, %v2112_v10  ;;  %vm1515_vm3 = vweird.f32 %v2112_v10  ;;  %1565 = vmatpush.bf16.msrb.mxu1 %v2021_v15 }
 0x283   : > { %v1164_v27 = vrot.slane %v1115_v20, 1  ;;  %v1305_v31 = vrot.slane %v1115_v20, 4  ;;  %v1211_v37 = vrot.slane %v1115_v20, 2  ;;  %v1258_v42 = vrot.slane %v1115_v20, 3 }
 0x284   : > { %v1352_v45 = vrot.slane %v1115_v20, 5  ;;  %v1399_v50 = vrot.slane %v1115_v20, 6  ;;  %v1446_v55 = vrot.slane %v1115_v20, 7  ;;  %v1512_v12 = vsub.f32 1.0, %v1511_v11 }
 0x286   : > { %v1513_v13 = vmul.f32 %v2112_v10, %v1512_v12 }
 0x288   : > { %v1514_v6 = vadd.f32 %v2112_v10, %v1513_v13 }
 0x28a   : > { %v2554_v16 = vsel %vm1515_vm3, %v2112_v10, %v1514_v6 }
 0x2e3   : > { %v1093_v19 = vpop.f32.mrf.mxu2 }
 0x2e4   : > { %v1094_v21 = vadd.f32 %v1093_v19, %v1072_v18 }
 0x2e6   : > { %v1116_v22 = vmul.f32 %v1115_v20, %v1094_v21 }
 0x2e8   : > { %1118 = vst.msk [vmem:[#allocation2] sm:$0x1] %vm1117_vm1, %v1116_v22 }
 0x2eb   : > { %v1160_v60 = vpop.f32.mrf.mxu2 }
 0x2ec   : > { %v1161_v26 = vadd.f32 %v1160_v60, %v1139_v24  ;;  %v2078_v60 = vld [vmem:[%s2657_s13] ss:$0 sm:$0xff] }
 0x2ee   : > { %v1166_v4 = vmul.f32 %v1164_v27, %v1161_v26 }
 0x2f0   : > { %1167 = vst.msk [vmem:[#allocation2 + $0x1] sm:$0x1] %vm1117_vm1, %v1166_v4 }
 0x2f1   : > { %v1302_v30 = vpop.f32.mrf.mxu0 }
 0x2f2   : > { %v1303_v62 = vadd.f32 %v1302_v30, %v1281_v29  ;;  %v2079_v29 = vld [vmem:[%s2659_s15] ss:$0 sm:$0xff] }
 0x2f3   : > { %v1208_v33 = vpop.f32.mrf.mxu2  ;;  %v1255_v38 = vpop.f32.mrf.mxu3 }
 0x2f4   : > { %v1307_v39 = vmul.f32 %v1305_v31, %v1303_v62  ;;  %v1209_v40 = vadd.f32 %v1208_v33, %v1187_v32  ;;  %v1256_v1 = vadd.f32 %v1255_v38, %v1234_v34 }
 0x2f5   : > { %v1349_v43 = vpop.f32.mrf.mxu1 }
 0x2f6   : > { %1308 = vst.msk [vmem:[#allocation2 + $0x4] sm:$0x1] %vm1117_vm1, %v1307_v39  ;;  %v1213_v63 = vmul.f32 %v1211_v37, %v1209_v40  ;;  %v1260_v44 = vmul.f32 %v1258_v42, %v1256_v1  ;;  %v1350_v0 = vadd.f32 %v1349_v43, %v1328_v35 }
 0x2f8   : > { %1214 = vst.msk [vmem:[#allocation2 + $0x2] sm:$0x1] %vm1117_vm1, %v1213_v63  ;;  %v1354_v46 = vmul.f32 %v1352_v45, %v1350_v0  ;;  %v2024_v45 = vld [vmem:[%s2660_s16 + $0x8] sm:$0xff] }
 0x2f9   : > { %1261 = vst.msk [vmem:[#allocation2 + $0x3] sm:$0x1] %vm1117_vm1, %v1260_v44  ;;  %1645 = vmatpush.bf16.msra.mxu2 %v2024_v45 }
 0x2fa   : > { %1355 = vst.msk [vmem:[#allocation2 + $0x5] sm:$0x1] %vm1117_vm1, %v1354_v46 }
 0x2ff   : > { %v1396_v47 = vpop.f32.mrf.mxu2 }
 0x300   : > { %v1397_v49 = vadd.f32 %v1396_v47, %v1375_v2  ;;  %v2023_v47 = vld [vmem:[%s2660_s16] sm:$0xff] }
 0x301   : > { %1646 = vmatpush.bf16.msra.mxu2 %v2023_v47 }
 0x302   : > { %v1401_v51 = vmul.f32 %v1399_v50, %v1397_v49 }
 0x303   : > { %v1443_v53 = vpop.f32.mrf.mxu3 }
 0x304   : > { %1402 = vst.msk [vmem:[#allocation2 + $0x6] sm:$0x1] %vm1117_vm1, %v1401_v51  ;;  %v1444_v54 = vadd.f32 %v1443_v53, %v1422_v52 }
 0x306   : > { %v1448_v56 = vmul.f32 %v1446_v55, %v1444_v54 }
 0x308   : > { %1449 = vst.msk [vmem:[#allocation2 + $0x7] sm:$0x1] %vm1117_vm1, %v1448_v56 }
 0x30f   : > { %v1450_v57 = vld [vmem:[#allocation2] sm:$0xff] }
 0x310   : > { %v1451_v58 = vpack.c.bf16 %v1450_v57, %v1450_v57 }
 0x312   : > { %1966 = vmatmul.msk.bf16.vlgmr.msrb.gmra.mxu0 %vm930_vm9, %v1451_v58 }
 0x38f   : > { %v1496_v59 = vpop.f32.mrf.mxu0 }
 0x390   : > { %v1502_v61 = vrot.slane %v1496_v59, 4 }
 0x392   : > { %v1504_v5 = vadd.f32 %v1502_v61, %v709_v3 }
 0x394   : > { %v1505_v7 = vmul.f32 %v1504_v5, %v1504_v5 }
 0x396   : > { %v1507_v41 = vsel %vm1506_vm2, %v1505_v7, 0.0 }
 0x397   : > { %1508 = vadd.xlane.f32.xlu2 %v1507_v41  ;;  %v1498_v8 = vpop.f32.mrf.mxu0 }
 0x40a   : > { %v1509_v17 = vpop.xlane.xlu2 %1508 }
 0x40b   : > { %v1517_v18 = vmul.f32 %v2554_v16, %v1509_v17 }
 0x40d   : > { %v1518_v19 = vadd.f32 1e-05, %v1517_v18 }
 0x40f   : > { %2113 = vrsqrt.f32 %v1518_v19  ;;  %vm1525_vm5 = vweird.f32 %v1518_v19 }
 0x415   : > { %v2114_v20 = vpop.eup %2113 }
 0x416   : > { %v1520_v21 = vmul.f32 %v2114_v20, %v1518_v19  ;;  %vm1526_vm4 = vweird.f32 %v2114_v20 }
 0x417   : > { %vm1527_vm6 = vmor %vm1525_vm5, %vm1526_vm4 }
 0x418   : > { %v1521_v22 = vmul.f32 %v2114_v20, %v1520_v21  ;;  %v2026_v21 = vld [vmem:[%s2663_s19 + $0x8] sm:$0xff] }
 0x419   : > { %1706 = vmatpush.bf16.msra.mxu3 %v2026_v21 }
 0x41a   : > { %v1522_v23 = vmul.f32 0.5, %v1521_v22  ;;  %v2025_v22 = vld [vmem:[%s2663_s19] sm:$0xff] }
 0x41c   : > { %v1523_v24 = vsub.f32 1.5, %v1522_v23 }
 0x41d   : > { %1707 = vmatpush.bf16.msra.mxu3 %v2025_v22 }
 0x41e   : > { %v1524_v25 = vmul.f32 %v2114_v20, %v1523_v24 }
 0x420   : > { %v1528_v26 = vsel %vm1527_vm6, %v2114_v20, %v1524_v25 }
 0x421   : > { %v1529_v27 = vmul.f32 %v1528_v26, %v1504_v5 }
 0x423   : > { %v1533_v4 = vmul.f32 %v2078_v60, %v1529_v27 }
 0x425   : > { %v1534_v28 = vpack.c.bf16 %v1533_v4, %v1533_v4 }
 0x427   : > { %1975 = vmatmul.msk.bf16.vlgmr.msrb.gmra.mxu1 %vm729_vm0, %v1534_v28 }
 0x4a4   : > { %v1567_v30 = vpop.f32.mrf.mxu1 }
 0x4a5   : > { %v1568_v62 = vadd.f32 %v2079_v29, %v1567_v30  ;;  %v2081_v30 = vld [vmem:[%s2662_s18] ss:$0 sm:$0xff] }
 0x4a7   : > { %v1572_v31 = vmul.f32 0.70710677, %v1568_v62  ;;  %v1571_v10 = vmul.f32 0.5, %v1568_v62 }
 0x4a9   : > { %v1573_v32 = vmul.f32 %v1572_v31, %v1572_v31 }
 0x4ab   : > { %v1574_v34 = vmin.f32 %v1573_v32, 16.0 }
 0x4ac   : > { %v1569_v36 = vpop.f32.mrf.mxu1 }
 0x4ad   : > { %v1575_v33 = vmul.f32 2.1237322e-06, %v1574_v34  ;;  %v1586_v37 = vmul.f32 3.8918573e-05, %v1574_v34 }
 0x4af   : > { %v1576_v38 = vadd.f32 0.00028619796, %v1575_v33  ;;  %v1587_v35 = vadd.f32 0.001143296, %v1586_v37 }
 0x4b1   : > { %v1577_v39 = vmul.f32 %v1576_v38, %v1574_v34  ;;  %v1588_v40 = vmul.f32 %v1587_v35, %v1574_v34 }
 0x4b3   : > { %v1589_v1 = vadd.f32 0.014752088, %v1588_v40  ;;  %v1578_v42 = vadd.f32 0.0036580483, %v1577_v39 }
 0x4b5   : > { %v1590_v43 = vmul.f32 %v1589_v1, %v1574_v34  ;;  %v1579_v44 = vmul.f32 %v1578_v42, %v1574_v34 }
 0x4b7   : > { %v1591_v63 = vadd.f32 0.112945676, %v1590_v43  ;;  %v1580_v2 = vadd.f32 0.05243302, %v1579_v44 }
 0x4b9   : > { %v1592_v0 = vmul.f32 %v1591_v63, %v1574_v34  ;;  %v1581_v50 = vmul.f32 %v1580_v2, %v1574_v34 }
 0x4bb   : > { %v1593_v46 = vadd.f32 0.4994258, %v1592_v0  ;;  %v1582_v51 = vadd.f32 0.18741608, %v1581_v50 }
 0x4bd   : > { %v1594_v48 = vmul.f32 %v1593_v46, %v1574_v34  ;;  %v1583_v53 = vmul.f32 %v1582_v51, %v1574_v34 }
 0x4bf   : > { %v1595_v49 = vadd.f32 1.0, %v1594_v48  ;;  %v1584_v57 = vadd.f32 1.1283791, %v1583_v53 }
 0x4c1   : > { %2115 = vrcp.f32 %v1595_v49  ;;  %v1607_v56 = vand.u32 2147483648, %v1595_v49  ;;  %v1605_v3 = vand.u32 2147483647, %v1595_v49  ;;  %vm1601_vm8 = vweird.f32 %v1595_v49 }
 0x4c2   : > { %v1585_v5 = vmul.f32 %v1584_v57, %v1572_v31 }
 0x4c3   : > { %v1608_v61 = vor.u32 1.1754944e-38, %v1607_v56  ;;  %vm1606_vm10 = vcmp.eq.f32.partialorder %v1605_v3, 8.507059e+37 }
 0x4c7   : > { %v2116_v52 = vpop.eup %2115 }
 0x4c8   : > { %v1597_v54 = vmul.f32 %v2116_v52, %v1595_v49  ;;  %vm1602_vm7 = vweird.f32 %v2116_v52 }
 0x4c9   : > { %vm1603_vm9 = vmor %vm1601_vm8, %vm1602_vm7 }
 0x4ca   : > { %v1598_v55 = vsub.f32 1.0, %v1597_v54 }
 0x4cc   : > { %v1599_v58 = vmul.f32 %v2116_v52, %v1598_v55 }
 0x4ce   : > { %v1600_v59 = vadd.f32 %v2116_v52, %v1599_v58 }
 0x4d0   : > { %v1604_v7 = vsel %vm1603_vm9, %v2116_v52, %v1600_v59 }
 0x4d1   : > { %v1609_v41 = vsel %vm1606_vm10, %v1608_v61, %v1604_v7 }
 0x4d2   : > { %v1610_v8 = vmul.f32 %v1609_v41, %v1585_v5 }
 0x4d4   : > { %v1976_v9 = vclamps-f32 %v1610_v8, 1.0 }
 0x4d6   : > { %v1613_v11 = vadd.f32 1.0, %v1976_v9 }
 0x4d8   : > { %v1614_v12 = vmul.f32 %v1613_v11, %v1571_v10 }
 0x4da   : > { %v1615_v13 = vpack.c.bf16 %v1614_v12, %v1614_v12 }
 0x4dc   : > { %1985 = vmatmul.msk.bf16.vlgmr.msra.gmra.mxu2 %vm729_vm0, %v1615_v13 }
 0x55f   : > { %v1648_v6 = vpop.f32.mrf.mxu2 }
 0x560   : > { %v1649_v15 = vadd.f32 %v2080_v14, %v1648_v6 }
 0x562   : > { %v1653_v17 = vadd.f32 %v1649_v15, %v1533_v4 }
 0x564   : > { %v1654_v18 = vmul.f32 %v1653_v17, %v1653_v17 }
 0x566   : > { %v1655_v19 = vsel %vm1506_vm2, %v1654_v18, 0.0 }
 0x567   : > { %v1650_v20 = vpop.f32.mrf.mxu2  ;;  %1656 = vadd.xlane.f32.xlu0 %v1655_v19 }
 0x5da   : > { %v1657_v23 = vpop.xlane.xlu0 %1656 }
 0x5db   : > { %v1658_v24 = vmul.f32 %v1657_v23, %v2554_v16 }
 0x5dd   : > { %v1659_v25 = vadd.f32 1e-05, %v1658_v24 }
 0x5df   : > { %2117 = vrsqrt.f32 %v1659_v25  ;;  %vm1666_vm12 = vweird.f32 %v1659_v25 }
 0x5e5   : > { %v2118_v60 = vpop.eup %2117 }
 0x5e6   : > { %v1661_v26 = vmul.f32 %v2118_v60, %v1659_v25  ;;  %vm1667_vm11 = vweird.f32 %v2118_v60 }
 0x5e7   : > { %vm1668_vm13 = vmor %vm1666_vm12, %vm1667_vm11 }
 0x5e8   : > { %v1662_v27 = vmul.f32 %v2118_v60, %v1661_v26 }
 0x5ea   : > { %v1663_v4 = vmul.f32 0.5, %v1662_v27 }
 0x5ec   : > { %v1664_v28 = vsub.f32 1.5, %v1663_v4 }
 0x5ee   : > { %v1665_v29 = vmul.f32 %v2118_v60, %v1664_v28 }
 0x5f0   : > { %v1669_v16 = vsel %vm1668_vm13, %v2118_v60, %v1665_v29 }
 0x5f1   : > { %v1670_v62 = vmul.f32 %v1669_v16, %v1653_v17 }
 0x5f3   : > { %v1674_v31 = vmul.f32 %v2081_v30, %v1670_v62 }
 0x5f5   : > { %v1676_v32 = vpack.c.bf16 %v1674_v31, %v1674_v31  ;;  %1675 = vst.msk [vmem:[%s691_s27] sm:$0xf] %vm1506_vm2, %v1674_v31 }
 0x5f7   : > { %1994 = vmatmul.msk.bf16.vlgmr.msra.gmra.mxu3 %vm729_vm0, %v1676_v32 }
 0x5f8   : > { %2146 = shalt.err (!%p2143_p3)
}
 0x5f9   : > { %2027 = dma.vmem_to_hbm [thread:$0]  (%p2370_p5), %s1734_s25, 64, %s1736_s26, %s1716_s2   ;;  %vm1713_vm0 = vcmask 125952  }
 0x5fa   : > { %s2715_s22 = sld [smem:[#allocation28_spill]]  ;;  %s2717_s8 = sshll.u32 %s2583_s0, 2 }
 0x5fb   : > { %s2716_s29 = sld [smem:[#allocation26_spill]]  ;;  %s698_s9 = scalar_lea.vmem [#allocation5], %s2717_s8 }
 0x5fc   : > { %s1747_s1 = sshll.u32 %s698_s9, 4  ;;  %s1721_s25 = scalar_lea.sflag [#allocation6], %s2583_s0  ;;  %s1748_s1 = int_to_ptr.vmem [resolvable:$true] %s1747_s1 }
 0x600   : > { %s1745_s24 = scalar_lea.hbm %s2715_s22, %s1997_s30  ;;  %s2167_s4 = scalar_lea.hbm %s2715_s22, 32 }
 0x601   : > { %v2082_v34 = vld [vmem:[%s2716_s29] ss:$0 sm:$0xff]  ;;  %s1749_s3 = sshll.u32 %s1745_s24, 4  ;;  %s1750_s3 = int_to_ptr.hbm [resolvable:$true] %s1749_s3 }
 0x602   : > { %s2161_s26 = sshra.s32 %s1750_s3, 4  ;;  %s2162_s26 = int_to_ptr.hbm [resolvable:$true] %s2161_s26 }
 0x603   : > { %s2163_s2 = scalar_lea.hbm %s2162_s26, 4  ;;  %p2168_p9 = scmp.lt.s32.totalorder %s2162_s26, %s2715_s22 }
 0x604   : > { %p2164_p4 = scmp.ne.s32.totalorder %s2162_s26, %s2163_s2  ;;  %p2169_p10 = scmp.lt.s32.totalorder %s2167_s4, %s2163_s2 }
 0x606   : > { %p2165_p7 = pnand %p2164_p4, %p2370_p5  ;;  %p2170_p11 = por %p2169_p10, %p2168_p9 }
 0x608   : > { %p2166_p8 = pneg %p2165_p7 }
 0x60a   : > { %p2171_p12 = pnand %p2170_p11, %p2166_p8 }
 0x67a   : > { %v1709_v36 = vpop.f32.mrf.mxu3 }
 0x67b   : > { %v1710_v33 = vadd.f32 %v2082_v34, %v1709_v36 }
 0x67d   : > { %1714 = vst.msk [vmem:[%s698_s9] sm:$0xf] %vm1713_vm0, %v1710_v33 }
 0x67e   : > { %2174 = shalt.err (!%p2171_p12)
}
 0x67f   : > { %2028 = dma.vmem_to_hbm [thread:$0]  (%p2370_p5), %s1748_s1, 64, %s1750_s3, %s1721_s25  }
 0x682   : > { %v1711_v37 = vpop.f32.mrf.mxu3 }
 0x683 PF: > { %s2718_s0 = sld [smem:[#allocation11_spill]] }
 0x684   : > { %s2719_s24 = sld [smem:[#allocation9_spill]] }
 0x689   : > { %p2038_p13 = scmp.ge.s32.totalorder %s2718_s0, 2 }
 0x68a   : > { %s1761_s29 = sand.u32 1, %s2719_s24  }
 0x68b   : > { %p2032_p0 = pnand %p2038_p13, %p2374_p6  ;;  %s1762_s8 = scalar_lea.sflag [#allocation4], %s1761_s29 }
 0x68d   : > { %p2033_p1 = pneg %p2032_p0 }
 0x68f   : > { %2192 = dma.done.wait (%p2033_p1), %s1762_s8, 64  }
 0x690   : > { %2194 = vsyncadd (%p2033_p1), %s1762_s8, 4294967232  ;;  %s1772_s9 = scalar_lea.sflag [#allocation6], %s1761_s29 }
 0x691   : > { %2196 = dma.done.wait (%p2033_p1), %s1772_s9, 64  }
 0x692   : > { %2198 = vsyncadd (%p2033_p1), %s1772_s9, 4294967232  ;;  %s2721_s30 = sld [smem:[#allocation12_spill]]  ;;  %s2724_s3 = smov %s2205_s28 }
 0x693   : > { %s2722_s6 = sld [smem:[#allocation10_spill]] }
 0x694   : > { %s2723_s29 = sld [smem:[#allocation13_spill]] }
 0x698   : > { %p36_p5 = scmp.ge.s32.totalorder %s2721_s30, 10  }
 0x699   : > { %s2725_s28 = smov %s2722_s6 }
 0x69a   :  { %38 = sbr.rel (!%p36_p5) target bundleno = 20 (0x14), region = 166 }
 0x69f   :  { %1778 = vsyncpa [#allocation4], 1 }
 0x6a0   :  { %1780 = vsyncpa [#allocation4 + $0x1], 1 }
 0x6a1   :  { %1781 = vsyncpa [#allocation6], 1 }
 0x6a2   :  { %1783 = vsyncpa [#allocation6 + $0x1], 1 }

// kernel: decoder_layer_forward.3
= control target key start
LH: loop header
LB: loop body
LE: loop exit
PB: predicated region body
PF: predicated region fallthrough
CT: control target
= control target key end

     0   :  { %s1701_s24 = smov 0   ;;  %s1889_s0 = inlined_call_operand.vmem [shape: f32[8,4,32], index: 0, kind: input, shape index: {}]   ;;  %s1890_s1 = inlined_call_operand.vmem [shape: bf16[32,64], index: 1, kind: input, shape index: {}]   ;;  %s1891_s2 = inlined_call_operand.vmem [shape: bf16[32,64], index: 2, kind: input, shape index: {}]   ;;  %s1892_s3 = inlined_call_operand.vmem [shape: f32[4,64], index: 3, kind: input, shape index: {}]   ;;  %s1893_s4 = inlined_call_operand.vmem [shape: f32[1,64], index: 4, kind: input, shape index: {}]   ;;  %s1894_s5 = inlined_call_operand.vmem [shape: bf16[64,8], index: 5, kind: input, shape index: {}]   ;;  %s1895_s6 = inlined_call_operand.vmem [shape: bf16[64,8], index: 6, kind: input, shape index: {}]   ;;  %s1896_s7 = inlined_call_operand.vmem [shape: bf16[64,64], index: 7, kind: input, shape index: {}]   ;;  %s1897_s8 = inlined_call_operand.vmem [shape: f32[1,64], index: 8, kind: input, shape index: {}]   ;;  %s1898_s9 = inlined_call_operand.vmem [shape: f32[8,64], index: 9, kind: input, shape index: {}]   ;;  %s1899_s10 = inlined_call_operand.vmem [shape: f32[1,64], index: 10, kind: input, shape index: {}]   ;;  %s1900_s11 = inlined_call_operand.vmem [shape: bf16[64,32], index: 11, kind: input, shape index: {}]   ;;  %s1901_s12 = inlined_call_operand.vmem [shape: f32[1,32], index: 12, kind: input, shape index: {}]   ;;  %s1902_s13 = inlined_call_operand.vmem [shape: bf16[32,64], index: 13, kind: input, shape index: {}]   ;;  %s1903_s14 = inlined_call_operand.vmem [shape: f32[1,64], index: 14, kind: input, shape index: {}]   ;;  %s1904_s15 = inlined_call_operand.vmem [shape: bf16[64,32], index: 15, kind: input, shape index: {}]   ;;  %s1905_s16 = inlined_call_operand.vmem [shape: f32[1,32], index: 16, kind: input, shape index: {}]   ;;  %s1906_s17 = inlined_call_operand.vmem [shape: f32[8,4,32], index: 17, kind: output, shape index: {}]  }
   0x1   :  { %1908 = sst [smem:[#allocation3_spill]] %s1889_s0 }
   0x2   :  { %1909 = sst [smem:[#allocation4_spill]] %s1890_s1 }
   0x3 LB: > { %s1390_s25 = sadd.s32 4294967295, %s1607_s24   ;;  %p1394_p0 = scmp.ge.s32.totalorder %s1607_s24, 1  ;;  %s1607_s24 = sphi %s1701_s24, %s27_s24  }
   0x4   : > { %p486_p1 = scmp.lt.s32.totalorder %s1607_s24, 9 }
   0x6   : > { %p487_p2 = pnand %p1394_p0, %p486_p1 }
   0x7   : > { %s1910_s28 = sld [smem:[#allocation4_spill]] (!%p487_p2)  ;;  %p536_p3 = scmp.lt.s32.totalorder (!%p487_p2), %s1390_s25, 7 }
   0x8   : > { %490 = sbr.rel (%p487_p2) target bundleno = 1483 (0x5cb), region = 88  ;;  %s1911_s1 = sld [smem:[#allocation3_spill]] (!%p487_p2) }
   0xd   : > { %v1531_v0 = vld [vmem:[%s1910_s28 + $0x8] sm:$0xff]  ;;  %v1530_v1 = vld [vmem:[%s1910_s28] sm:$0xff]  ;;  %s1913_s25 = smov (!%p536_p3, %s1390_s25), 7  ;;  %vm565_vm0 = vcmask 261120   ;;  %v613_v4 = vlaneseq  ;;  %vm625_vm3 = vcmask 1043456   ;;  %v1609_v9 = vmov 0.0  }
   0xe   : > { %575 = vmatpush.bf16.msra.mxu0 %v1531_v0  ;;  %s1395_s30 = sshll.u32 %s1913_s25, 2  ;;  %vm621_vm4 = vcmask 31744   ;;  %v1533_v16 = vld [vmem:[%s1891_s2 + $0x8] sm:$0xff]  ;;  %v1532_v17 = vld [vmem:[%s1891_s2] sm:$0xff]  ;;  %v1537_v21 = vld [vmem:[%s1894_s5 + $0x18] sm:$0xff]  ;;  %vm770_vm10 = vcmask 523264  }
   0xf   : > { %s539_s20 = scalar_lea.vmem %s1911_s1, %s1395_s30  ;;  %v614_v5 = vshrl.u32 %v613_v4, 7  ;;  %v616_v6 = vand.u32 127, %v613_v4  ;;  %604 = vmatpush.bf16.msra.mxu1 %v1533_v16  ;;  %v546_v18 = vld [vmem:[%s1892_s3] sm:$0xf]  ;;  %v1541_v22 = vld [vmem:[%s1895_s6 + $0x18] sm:$0xff]  ;;  %v1536_v28 = vld [vmem:[%s1894_s5 + $0x10] sm:$0xff]  ;;  %s543_s21 = scalar_lea.vmem %s1906_s17, %s1395_s30 }
  0x10   : > { %v1723_v2 = vld [vmem:[%s539_s20] sm:$0xf]  ;;  %v649_v20 = vperm.slane %v546_v18, 0  ;;  %v1545_v23 = vld [vmem:[%s1896_s7 + $0x18] sm:$0xff]  ;;  %v611_v24 = vperm.slane %v546_v18, 3  ;;  %v679_v26 = vperm.slane %v546_v18, 1 }
  0x11   : > { %v548_v3 = vpack.c.bf16 %v1723_v2, %v1723_v2  ;;  %1567 = vset.pattern.permute.xlu1 %v614_v5  ;;  %1566 = vset.pattern.permute.xlu0 %v614_v5  ;;  %v1415_v7 = vadd.s32 4294967293, %v614_v5  ;;  %v1423_v8 = vadd.s32 4294967295, %v614_v5  ;;  %v1419_v13 = vadd.s32 4294967294, %v614_v5  ;;  %v1540_v29 = vld [vmem:[%s1895_s6 + $0x10] sm:$0xff]  ;;  %v1535_v37 = vld [vmem:[%s1894_s5 + $0x8] sm:$0xff]  ;;  %v1534_v43 = vld [vmem:[%s1894_s5] sm:$0xff] }
  0x12   : > { %576 = vmatpush.bf16.msra.mxu0 %v1530_v1  ;;  %v709_v27 = vperm.slane %v546_v18, 2  ;;  %v1544_v30 = vld [vmem:[%s1896_s7 + $0x10] sm:$0xff]  ;;  %v1539_v38 = vld [vmem:[%s1895_s6 + $0x8] sm:$0xff]  ;;  %v1568_v41 = vld [vmem:[%s1893_s4] ss:$0 sm:$0xff]  ;;  %vm913_vm13 = vcmask 64512  }
  0x13   : > { %vm618_vm1 = vcmp.eq.s32.totalorder %v616_v6, %v1415_v7  ;;  %vm683_vm2 = vcmp.eq.s32.totalorder %v616_v6, %v1423_v8  ;;  %vm653_vm5 = vcmp.eq.s32.totalorder %v616_v6, %v1419_v13  ;;  %605 = vmatpush.bf16.msra.mxu1 %v1532_v17  ;;  %v1543_v39 = vld [vmem:[%s1896_s7 + $0x8] sm:$0xff]  ;;  %v1538_v44 = vld [vmem:[%s1895_s6] sm:$0xff] }
  0x14   : > { %v1416_v10 = vsel %vm618_vm1, 1.0, %v1609_v9  ;;  %v1424_v11 = vsel %vm683_vm2, 1.0, %v1609_v9  ;;  %v1420_v14 = vsel %vm653_vm5, 1.0, %v1609_v9  ;;  %v1542_v45 = vld [vmem:[%s1896_s7] sm:$0xff] }
  0x15   : > { %1405 = vmatmul.msk.bf16.vlgmr.msra.gmra.mxu0 %vm565_vm0, %v548_v3  ;;  %v1569_v13 = vld [vmem:[%s1897_s8] ss:$0 sm:$0xff] }
  0x16   : > { %1414 = vmatmul.msk.bf16.vlgmr.msra.gmra.mxu1 %vm565_vm0, %v548_v3  ;;  %823 = vmatpush.bf16.msrb.mxu0 %v1541_v22 }
  0x17   : > { %872 = vmatpush.bf16.msrb.mxu1 %v1545_v23 }
  0x1a   : > { %824 = vmatpush.bf16.msrb.mxu0 %v1540_v29 }
  0x1b   : > { %873 = vmatpush.bf16.msrb.mxu1 %v1544_v30 }
  0x1e   : > { %825 = vmatpush.bf16.msrb.mxu0 %v1539_v38 }
  0x1f   : > { %874 = vmatpush.bf16.msrb.mxu1 %v1543_v39 }
  0x22   : > { %826 = vmatpush.bf16.msrb.mxu0 %v1538_v44 }
  0x23   : > { %875 = vmatpush.bf16.msrb.mxu1 %v1542_v45 }
  0x92   : > { %v578_v12 = vpop.f32.mrf.mxu0 }
  0x93   : > { %1417 = vmatpush.msk.msra.mxu3 %vm625_vm3, %v578_v12  ;;  %1425 = vmatpush.msk.msra.mxu2 %vm625_vm3, %v578_v12  ;;  %v612_v32 = vmul.f32 %v611_v24, %v578_v12  ;;  %v1791_v0 = vpop.f32.mrf.mxu1 }
  0x94   : > { %1418 = vmatmul.msk.f32.vlgmr.msra.gmra.mxu3 %vm621_vm4, %v1416_v10  ;;  %1426 = vmatmul.msk.f32.vlgmr.msra.gmra.mxu2 %vm621_vm4, %v1424_v11 }
  0x95   : > { %1421 = vmatpush.msk.msrb.mxu3 %vm625_vm3, %v578_v12  ;;  %vm958_vm3 = vcmask 516096  }
  0x97   : > { %778 = vmatpush.bf16.msra.mxu3 %v1537_v21 }
  0x9a   : > { %v580_v15 = vpop.f32.mrf.mxu0 }
  0x9b   : > { %779 = vmatpush.bf16.msra.mxu3 %v1536_v28  ;;  %v609_v1 = vpop.f32.mrf.mxu1  ;;  %v547_v28 = vld [vmem:[%s1898_s9] sm:$0xff] }
  0x9c   : > { %1422 = vmatmul.msk.f32.vlgmr.msrb.gmra.mxu3 %vm621_vm4, %v1420_v14  ;;  %vm1155_vm4 = vcmask 257024  }
  0x9f   : > { %780 = vmatpush.bf16.msra.mxu3 %v1535_v37 }
  0xa3   : > { %781 = vmatpush.bf16.msra.mxu3 %v1534_v43 }
 0x117   : > { %v646_v19 = vpop.f32.mrf.mxu3  ;;  %v706_v31 = vpop.f32.mrf.mxu2 }
 0x118   : > { %v650_v25 = vmul.f32 %v649_v20, %v646_v19  ;;  %v710_v36 = vmul.f32 %v709_v27, %v706_v31 }
 0x11a   : > { %v651_v34 = vadd.f32 %v650_v25, %v612_v32 }
 0x11f   : > { %v676_v33 = vpop.f32.mrf.mxu3 }
 0x120   : > { %v680_v35 = vmul.f32 %v679_v26, %v676_v33 }
 0x122   : > { %v681_v40 = vadd.f32 %v680_v35, %v651_v34 }
 0x124   : > { %v711_v42 = vadd.f32 %v710_v36, %v681_v40 }
 0x126   : > { %v716_v46 = vadd.f32 %v1568_v41, %v711_v42 }
 0x128   : > { %v1427_v47 = vmul.f32 -1.442695, %v716_v46 }
 0x12a   : > { %1573 = vpow2.f32 %v1427_v47 }
 0x130   : > { %v1574_v48 = vpop.eup %1573 }
 0x131   : > { %v720_v49 = vadd.f32 1.0, %v1574_v48 }
 0x133   : > { %1575 = vrcp.f32 %v720_v49  ;;  %v732_v53 = vand.u32 2147483648, %v720_v49  ;;  %v730_v55 = vand.u32 2147483647, %v720_v49  ;;  %vm726_vm7 = vweird.f32 %v720_v49 }
 0x135   : > { %v733_v57 = vor.u32 1.1754944e-38, %v732_v53  ;;  %vm731_vm9 = vcmp.eq.f32.partialorder %v730_v55, 8.507059e+37 }
 0x139   : > { %v1576_v50 = vpop.eup %1575 }
 0x13a   : > { %v722_v51 = vmul.f32 %v1576_v50, %v720_v49  ;;  %vm727_vm6 = vweird.f32 %v1576_v50 }
 0x13b   : > { %vm728_vm8 = vmor %vm726_vm7, %vm727_vm6 }
 0x13c   : > { %v723_v52 = vsub.f32 1.0, %v722_v51 }
 0x13e   : > { %v724_v54 = vmul.f32 %v1576_v50, %v723_v52 }
 0x140   : > { %v725_v56 = vadd.f32 %v1576_v50, %v724_v54 }
 0x142   : > { %v729_v58 = vsel %vm728_vm8, %v1576_v50, %v725_v56 }
 0x143   : > { %v734_v59 = vsel %vm731_vm9, %v733_v57, %v729_v58 }
 0x144   : > { %v1777_v60 = vmul.f32 %v734_v59, %v716_v46 }
 0x146   : > { %976 = vst [vmem:[#allocation1] sm:$0xff] %v1777_v60  ;;  %v737_v61 = vpack.c.bf16 %v1777_v60, %v1777_v60 }
 0x148   : > { %1444 = vmatmul.msk.bf16.vlgmr.msra.gmra.mxu3 %vm770_vm10, %v737_v61  ;;  %1461 = vmatmul.msk.bf16.vlgmr.msrb.gmra.mxu0 %vm770_vm10, %v737_v61 }
 0x149   : > { %1478 = vmatmul.msk.bf16.vlgmr.msrb.gmra.mxu1 %vm770_vm10, %v737_v61 }
 0x14d   : > { %v1785_v62 = vld [vmem:[#allocation1 + $0x1] ss:$9 sm:$0xff] }
 0x14e   : > { %1024 = vst [vmem:[#allocation1] sm:$0xff] %v1777_v60 }
 0x155   : > { %v1788_v63 = vld [vmem:[#allocation1 + $0x2] ss:$9 sm:$0xff] }
 0x156   : > { %1071 = vst [vmem:[#allocation1] sm:$0xff] %v1777_v60 }
 0x1c5   : > { %v1793_v3 = vpop.f32.mrf.mxu0 }
 0x1c6   : > { %v877_v4 = vpop.f32.mrf.mxu1  ;;  %v981_v56 = vrot.slane %v1793_v3, 1 }
 0x1c7   : > { %v878_v14 = vadd.f32 %v1569_v13, %v877_v4 }
 0x1c9   : > { %v882_v15 = vmin.f32 %v878_v14, 20.0  ;;  %vm881_vm12 = vcmp.gt.f32.partialorder %v878_v14, 20.0 }
 0x1cb   : > { %v783_v5 = vpop.f32.mrf.mxu3  ;;  %v883_v16 = vmul.f32 1.442695, %v882_v15 }
 0x1cc   : > { %v1013_v6 = vperm.slane %v783_v5, 2  ;;  %v901_v7 = vperm.slane %v783_v5, 0  ;;  %v1060_v11 = vperm.slane %v783_v5, 3  ;;  %v964_v12 = vperm.slane %v783_v5, 1 }
 0x1cd   : > { %v830_v8 = vpop.f32.mrf.mxu0  ;;  %1577 = vpow2.f32 %v883_v16  ;;  %v1549_v16 = vld [vmem:[%s1900_s11 + $0x18] sm:$0xff] }
 0x1ce   : > { %v879_v9 = vpop.f32.mrf.mxu1  ;;  %1018 = vperm.xlu1 %1567, %v1013_v6   ;;  %906 = vperm.xlu0 %1566, %v901_v7   ;;  %v1029_v8 = vrot.slane %v1793_v3, 2 }
 0x1cf   : > { %v1076_v9 = vrot.slane %v1793_v3, 3  ;;  %1145 = vmatpush.bf16.msra.mxu0 %v1549_v16 }
 0x1d3   : > { %v785_v10 = vpop.f32.mrf.mxu3  ;;  %v1578_v17 = vpop.eup %1577 }
 0x1d4   : > { %v885_v18 = vadd.f32 1.0, %v1578_v17  ;;  %v888_v19 = vmul.f32 -0.5, %v1578_v17  ;;  %v891_v22 = vand.u32 2147483647, %v1578_v17  ;;  %v1480_v10 = vmul.f32 -1.442695, %v1791_v0 }
 0x1d6   : > { %1065 = vperm.xlu1 %1567, %v1060_v11   ;;  %969 = vperm.xlu0 %1566, %v964_v12   ;;  %1579 = vlog2.f32 %v885_v18  ;;  %v889_v21 = vadd.f32 1.0, %v888_v19  ;;  %vm892_vm11 = vcmp.lt.f32.partialorder %v891_v22, 0.0004427343  ;;  %v1548_v18 = vld [vmem:[%s1900_s11 + $0x10] sm:$0xff] }
 0x1d7   : > { %1146 = vmatpush.bf16.msra.mxu0 %v1548_v18 }
 0x1d8   : > { %v890_v24 = vmul.f32 %v1578_v17, %v889_v21  ;;  %v1547_v21 = vld [vmem:[%s1900_s11 + $0x8] sm:$0xff] }
 0x1db   : > { %1147 = vmatpush.bf16.msra.mxu0 %v1547_v21 }
 0x1dc   : > { %v1580_v20 = vpop.eup %1579 }
 0x1dd   : > { %v887_v23 = vmul.f32 0.6931472, %v1580_v20 }
 0x1df   : > { %v893_v25 = vsel %vm892_vm11, %v890_v24, %v887_v23  ;;  %v895_v24 = vld [vmem:[%s1899_s10] sm:$0x1] }
 0x1e0   : > { %v894_v26 = vsel %vm881_vm12, %v878_v14, %v893_v25  ;;  %v1546_v25 = vld [vmem:[%s1900_s11] sm:$0xff] }
 0x1e1   : > { %v896_v27 = vperm.slane %v894_v26, 0  ;;  %v960_v31 = vperm.slane %v894_v26, 1  ;;  %v1009_v32 = vperm.slane %v894_v26, 2  ;;  %v900_v34 = vmul.f32 %v894_v26, %v1777_v60  ;;  %1148 = vmatpush.bf16.msra.mxu0 %v1546_v25 }
 0x1e2   : > { %v1056_v36 = vperm.slane %v894_v26, 3 }
 0x1e3   : > { %v897_v29 = vmul.f32 %v896_v27, %v547_v28  ;;  %v961_v33 = vmul.f32 %v960_v31, %v547_v28  ;;  %v1010_v38 = vmul.f32 %v1009_v32, %v547_v28  ;;  %v908_v39 = vperm.slane %v900_v34, 0 }
 0x1e4   : > { %v1057_v43 = vmul.f32 %v1056_v36, %v547_v28  ;;  %v971_v48 = vperm.slane %v900_v34, 1  ;;  %v1020_v53 = vperm.slane %v900_v34, 2  ;;  %v1067_v61 = vperm.slane %v900_v34, 3 }
 0x1e5   : > { %v898_v30 = vmul.f32 1.442695, %v897_v29  ;;  %v962_v37 = vmul.f32 1.442695, %v961_v33  ;;  %v1011_v44 = vmul.f32 1.442695, %v1010_v38  ;;  %v912_v27 = vmul.f32 %v895_v24, %v1777_v60 }
 0x1e6   : > { %v1058_v47 = vmul.f32 1.442695, %v1057_v43  ;;  %v980_v32 = vmul.f32 %v1785_v62, %v895_v24  ;;  %v1028_v60 = vmul.f32 %v1788_v63, %v895_v24 }
 0x1e7   : > { %1581 = vpow2.f32 %v898_v30 }
 0x1e8   : > { %1583 = vpow2.f32 %v962_v37  ;;  %v1073_v37 = vld [vmem:[#allocation1 + $0x3] ss:$9 sm:$0xff] }
 0x1e9   : > { %1585 = vpow2.f32 %v1011_v44  ;;  %v1075_v38 = vmul.f32 %v1073_v37, %v895_v24 }
 0x1ea   : > { %1587 = vpow2.f32 %v1058_v47 }
 0x1eb   : > { %1589 = vpow2.f32 %v1480_v10  ;;  %v1849_v10 = vld [vmem:[%s1901_s12] ss:$0 sm:$0xff] }
 0x1ed   : > { %v1582_v35 = vpop.eup %1581 }
 0x1ee   : > { %v910_v42 = vmul.f32 0.0, %v1582_v35  ;;  %v1584_v49 = vpop.eup %1583 }
 0x1ef   : > { %v1586_v55 = vpop.eup %1585 }
 0x1f0   : > { %v1588_v4 = vpop.eup %1587 }
 0x1f1   : > { %v1590_v11 = vpop.eup %1589 }
 0x1f2   : > { %v940_v12 = vadd.f32 1.0, %v1590_v11 }
 0x1f4   : > { %1591 = vrcp.f32 %v940_v12  ;;  %vm946_vm14 = vweird.f32 %v940_v12  ;;  %v950_v20 = vand.u32 2147483647, %v940_v12 }
 0x1f6   : > { %vm951_vm2 = vcmp.eq.f32.partialorder %v950_v20, 8.507059e+37 }
 0x1fa   : > { %v1592_v13 = vpop.eup %1591 }
 0x1fb   : > { %v942_v14 = vmul.f32 %v1592_v13, %v940_v12  ;;  %vm947_vm15 = vweird.f32 %v1592_v13 }
 0x1fc   : > { %vm948_vm1 = vmor %vm946_vm14, %vm947_vm15 }
 0x1fd   : > { %v943_v15 = vsub.f32 1.0, %v942_v14 }
 0x1ff   : > { %v944_v17 = vmul.f32 %v1592_v13, %v943_v15  ;;  %v1571_v15 = vld [vmem:[%s1903_s14] ss:$0 sm:$0xff] }
 0x201   : > { %v945_v19 = vadd.f32 %v1592_v13, %v944_v17 }
 0x203   : > { %v949_v23 = vsel %vm948_vm1, %v1592_v13, %v945_v19 }
 0x240   : > { %v907_v40 = vpop.permute.xlu0 %906  ;;  %v1019_v46 = vpop.permute.xlu1 %1018 }
 0x241   : > { %v909_v41 = vmul.f32 %v908_v39, %v907_v40  ;;  %v1021_v57 = vmul.f32 %v1020_v53, %v1019_v46 }
 0x243   : > { %v911_v45 = vadd.f32 %v910_v42, %v909_v41 }
 0x245   : > { %932 = vmatpush.msrb.mxu2 %v911_v45  ;;  %v973_v51 = vmul.f32 %v1584_v49, %v911_v45 }
 0x246   : > { %1479 = vmatmul.msk.f32.vlgmr.msrb.gmra.mxu2 %vm913_vm13, %v1793_v3  ;;  %v952_v3 = vand.u32 2147483648, %v940_v12 }
 0x248   : > { %v970_v50 = vpop.permute.xlu0 %969  ;;  %v1066_v59 = vpop.permute.xlu1 %1065  ;;  %v953_v22 = vor.u32 1.1754944e-38, %v952_v3 }
 0x249   : > { %v972_v52 = vmul.f32 %v971_v48, %v970_v50  ;;  %v1068_v5 = vmul.f32 %v1067_v61, %v1066_v59 }
 0x24a   : > { %v954_v26 = vsel %vm951_vm2, %v953_v22, %v949_v23  ;;  %v1555_v23 = vld [vmem:[%s1904_s15 + $0x18] sm:$0xff] }
 0x24b   : > { %v974_v54 = vadd.f32 %v973_v51, %v972_v52  ;;  %v956_v29 = vmul.f32 %v954_v26, %v1791_v0  ;;  %v1610_v51 = vmov 32.0  }
 0x24c   : > { %1593 = vrcp.f32 %v1610_v51 }
 0x24d   : > { %v1022_v58 = vmul.f32 %v1586_v55, %v974_v54  ;;  %999 = vmatpush.msra.mxu2 %v974_v54  ;;  %v1005_v35 = vrot.slane %v956_v29, 1  ;;  %v1052_v41 = vrot.slane %v956_v29, 2  ;;  %v1099_v43 = vrot.slane %v956_v29, 3 }
 0x24e   : > { %1481 = vmatmul.msk.f32.vlgmr.msra.gmra.mxu2 %vm913_vm13, %v981_v56  ;;  %v1551_v56 = vld [vmem:[%s1902_s13 + $0x8] sm:$0xff] }
 0x24f   : > { %v1023_v1 = vadd.f32 %v1022_v58, %v1021_v57  ;;  %1213 = vmatpush.bf16.msra.mxu1 %v1551_v56 }
 0x251   : > { %v1069_v6 = vmul.f32 %v1588_v4, %v1023_v1  ;;  %1047 = vmatpush.msrb.mxu2 %v1023_v1 }
 0x252   : > { %v1594_v52 = vpop.eup %1593 }
 0x253   : > { %v1070_v7 = vadd.f32 %v1069_v6, %v1068_v5  ;;  %v1160_v53 = vmul.f32 32.0, %v1594_v52  ;;  %vm1164_vm5 = vweird.f32 %v1594_v52  ;;  %1308 = vmatpush.bf16.msra.mxu2 %v1555_v23 }
 0x255   : > { %1094 = vmatpush.msrb.mxu3 %v1070_v7  ;;  %v1161_v54 = vsub.f32 1.0, %v1160_v53 }
 0x256   : > { %1482 = vmatmul.msk.f32.vlgmr.msrb.gmra.mxu2 %vm913_vm13, %v1029_v8  ;;  %1483 = vmatmul.msk.f32.vlgmr.msrb.gmra.mxu3 %vm913_vm13, %v1076_v9 }
 0x257   : > { %v1162_v55 = vmul.f32 %v1594_v52, %v1161_v54 }
 0x259   : > { %v1163_v57 = vadd.f32 %v1594_v52, %v1162_v55 }
 0x25b   : > { %v1843_v58 = vsel %vm1164_vm5, %v1594_v52, %v1163_v57  ;;  %v1572_v57 = vld [vmem:[%s1905_s16] ss:$0 sm:$0xff] }
 0x2c9   : > { %v934_v28 = vpop.f32.mrf.mxu2 }
 0x2ca   : > { %v935_v30 = vadd.f32 %v934_v28, %v912_v27  ;;  %v1554_v28 = vld [vmem:[%s1904_s15 + $0x10] sm:$0xff] }
 0x2cb   : > { %1309 = vmatpush.bf16.msra.mxu2 %v1554_v28 }
 0x2cc   : > { %v957_v31 = vmul.f32 %v956_v29, %v935_v30 }
 0x2ce   : > { %959 = vst.msk [vmem:[#allocation2] sm:$0x1] %vm958_vm3, %v957_v31 }
 0x2d1   : > { %v1001_v33 = vpop.f32.mrf.mxu2 }
 0x2d2   : > { %v1002_v34 = vadd.f32 %v1001_v33, %v980_v32  ;;  %v1553_v32 = vld [vmem:[%s1904_s15 + $0x8] sm:$0xff] }
 0x2d3   : > { %1310 = vmatpush.bf16.msra.mxu2 %v1553_v32 }
 0x2d4   : > { %v1007_v36 = vmul.f32 %v1005_v35, %v1002_v34 }
 0x2d6   : > { %1008 = vst.msk [vmem:[#allocation2 + $0x1] sm:$0x1] %vm958_vm3, %v1007_v36  ;;  %v1552_v36 = vld [vmem:[%s1904_s15] sm:$0xff] }
 0x2d7   : > { %1311 = vmatpush.bf16.msra.mxu2 %v1552_v36 }
 0x2d9   : > { %v1049_v39 = vpop.f32.mrf.mxu2  ;;  %v1096_v40 = vpop.f32.mrf.mxu3 }
 0x2da   : > { %v1050_v0 = vadd.f32 %v1049_v39, %v1028_v60  ;;  %v1097_v42 = vadd.f32 %v1096_v40, %v1075_v38 }
 0x2dc   : > { %v1054_v44 = vmul.f32 %v1052_v41, %v1050_v0  ;;  %v1101_v45 = vmul.f32 %v1099_v43, %v1097_v42 }
 0x2de   : > { %1055 = vst.msk [vmem:[#allocation2 + $0x2] sm:$0x1] %vm958_vm3, %v1054_v44 }
 0x2df   : > { %1102 = vst.msk [vmem:[#allocation2 + $0x3] sm:$0x1] %vm958_vm3, %v1101_v45 }
 0x2e6   : > { %v1103_v62 = vld [vmem:[#allocation2] sm:$0xf] }
 0x2e7   : > { %v1104_v46 = vpack.c.bf16 %v1103_v62, %v1103_v62 }
 0x2e9   : > { %1500 = vmatmul.msk.bf16.vlgmr.msra.gmra.mxu0 %vm770_vm10, %v1104_v46 }
 0x366   : > { %v1150_v47 = vpop.f32.mrf.mxu0 }
 0x367   : > { %v1151_v63 = vadd.f32 %v1150_v47, %v1723_v2  ;;  %v1550_v2 = vld [vmem:[%s1902_s13] sm:$0xff] }
 0x368   : > { %1214 = vmatpush.bf16.msra.mxu1 %v1550_v2 }
 0x369   : > { %v1154_v48 = vmul.f32 %v1151_v63, %v1151_v63 }
 0x36b   : > { %v1156_v49 = vsel %vm1155_vm4, %v1154_v48, 0.0 }
 0x36c   : > { %1157 = vadd.xlane.f32.xlu2 %v1156_v49 }
 0x36e   : > { %v1152_v50 = vpop.f32.mrf.mxu0 }
 0x3df   : > { %v1158_v59 = vpop.xlane.xlu2 %1157 }
 0x3e0   : > { %v1166_v61 = vmul.f32 %v1843_v58, %v1158_v59 }
 0x3e2   : > { %v1167_v1 = vadd.f32 1e-05, %v1166_v61 }
 0x3e4   : > { %1595 = vrsqrt.f32 %v1167_v1  ;;  %vm1174_vm7 = vweird.f32 %v1167_v1 }
 0x3ea   : > { %v1596_v4 = vpop.eup %1595 }
 0x3eb   : > { %v1169_v5 = vmul.f32 %v1596_v4, %v1167_v1  ;;  %vm1175_vm6 = vweird.f32 %v1596_v4 }
 0x3ec   : > { %vm1176_vm8 = vmor %vm1174_vm7, %vm1175_vm6 }
 0x3ed   : > { %v1170_v6 = vmul.f32 %v1596_v4, %v1169_v5 }
 0x3ef   : > { %v1171_v7 = vmul.f32 0.5, %v1170_v6 }
 0x3f1   : > { %v1172_v8 = vsub.f32 1.5, %v1171_v7 }
 0x3f3   : > { %v1173_v9 = vmul.f32 %v1596_v4, %v1172_v8 }
 0x3f5   : > { %v1177_v11 = vsel %vm1176_vm8, %v1596_v4, %v1173_v9 }
 0x3f6   : > { %v1178_v12 = vmul.f32 %v1177_v11, %v1151_v63 }
 0x3f8   : > { %v1852_v13 = vmul.f32 %v1849_v10, %v1178_v12 }
 0x3fa   : > { %v1183_v14 = vpack.c.bf16 %v1852_v13, %v1852_v13 }
 0x3fc   : > { %1509 = vmatmul.msk.bf16.vlgmr.msra.gmra.mxu1 %vm565_vm0, %v1183_v14 }
 0x479   : > { %v1216_v16 = vpop.f32.mrf.mxu1 }
 0x47a   : > { %v1217_v17 = vadd.f32 %v1571_v15, %v1216_v16 }
 0x47c   : > { %v1221_v3 = vmul.f32 0.70710677, %v1217_v17  ;;  %v1220_v54 = vmul.f32 0.5, %v1217_v17 }
 0x47e   : > { %v1222_v18 = vmul.f32 %v1221_v3, %v1221_v3 }
 0x480   : > { %v1223_v19 = vmin.f32 %v1222_v18, 16.0 }
 0x481   : > { %v1218_v20 = vpop.f32.mrf.mxu1 }
 0x482   : > { %v1224_v21 = vmul.f32 2.1237322e-06, %v1223_v19  ;;  %v1235_v22 = vmul.f32 3.8918573e-05, %v1223_v19 }
 0x484   : > { %v1225_v24 = vadd.f32 0.00028619796, %v1224_v21  ;;  %v1236_v25 = vadd.f32 0.001143296, %v1235_v22 }
 0x486   : > { %v1226_v26 = vmul.f32 %v1225_v24, %v1223_v19  ;;  %v1237_v27 = vmul.f32 %v1236_v25, %v1223_v19 }
 0x488   : > { %v1238_v29 = vadd.f32 0.014752088, %v1237_v27  ;;  %v1227_v30 = vadd.f32 0.0036580483, %v1226_v26 }
 0x48a   : > { %v1239_v31 = vmul.f32 %v1238_v29, %v1223_v19  ;;  %v1228_v34 = vmul.f32 %v1227_v30, %v1223_v19 }
 0x48c   : > { %v1240_v33 = vadd.f32 0.112945676, %v1239_v31  ;;  %v1229_v60 = vadd.f32 0.05243302, %v1228_v34 }
 0x48e   : > { %v1241_v35 = vmul.f32 %v1240_v33, %v1223_v19  ;;  %v1230_v40 = vmul.f32 %v1229_v60, %v1223_v19 }
 0x490   : > { %v1242_v37 = vadd.f32 0.4994258, %v1241_v35  ;;  %v1231_v0 = vadd.f32 0.18741608, %v1230_v40 }
 0x492   : > { %v1243_v38 = vmul.f32 %v1242_v37, %v1223_v19  ;;  %v1232_v42 = vmul.f32 %v1231_v0, %v1223_v19 }
 0x494   : > { %v1244_v39 = vadd.f32 1.0, %v1243_v38  ;;  %v1233_v62 = vadd.f32 1.1283791, %v1232_v42 }
 0x496   : > { %1597 = vrcp.f32 %v1244_v39  ;;  %v1256_v45 = vand.u32 2147483648, %v1244_v39  ;;  %v1254_v47 = vand.u32 2147483647, %v1244_v39  ;;  %vm1250_vm9 = vweird.f32 %v1244_v39 }
 0x497   : > { %v1234_v49 = vmul.f32 %v1233_v62, %v1221_v3 }
 0x498   : > { %v1257_v48 = vor.u32 1.1754944e-38, %v1256_v45  ;;  %vm1255_vm12 = vcmp.eq.f32.partialorder %v1254_v47, 8.507059e+37 }
 0x49c   : > { %v1598_v41 = vpop.eup %1597 }
 0x49d   : > { %v1246_v43 = vmul.f32 %v1598_v41, %v1244_v39  ;;  %vm1251_vm0 = vweird.f32 %v1598_v41 }
 0x49e   : > { %vm1252_vm11 = vmor %vm1250_vm9, %vm1251_vm0 }
 0x49f   : > { %v1247_v44 = vsub.f32 1.0, %v1246_v43 }
 0x4a1   : > { %v1248_v46 = vmul.f32 %v1598_v41, %v1247_v44 }
 0x4a3   : > { %v1249_v63 = vadd.f32 %v1598_v41, %v1248_v46 }
 0x4a5   : > { %v1253_v50 = vsel %vm1252_vm11, %v1598_v41, %v1249_v63 }
 0x4a6   : > { %v1258_v51 = vsel %vm1255_vm12, %v1257_v48, %v1253_v50 }
 0x4a7   : > { %v1259_v52 = vmul.f32 %v1258_v51, %v1234_v49 }
 0x4a9   : > { %v1510_v53 = vclamps-f32 %v1259_v52, 1.0 }
 0x4ab   : > { %v1262_v55 = vadd.f32 1.0, %v1510_v53 }
 0x4ad   : > { %v1263_v56 = vmul.f32 %v1262_v55, %v1220_v54 }
 0x4af   : > { %v1264_v2 = vpack.c.bf16 %v1263_v56, %v1263_v56 }
 0x4b1   : > { %1527 = vmatmul.msk.bf16.vlgmr.msra.gmra.mxu2 %vm770_vm10, %v1264_v2 }
 0x534   : > { %v1313_v59 = vpop.f32.mrf.mxu2 }
 0x535   : > { %v1314_v61 = vadd.f32 %v1572_v57, %v1313_v59 }
 0x537   : > { %v1317_v1 = vadd.f32 %v1314_v61, %v1852_v13 }
 0x539   : > { %v1318_v4 = vmul.f32 %v1317_v1, %v1317_v1 }
 0x53b   : > { %v1319_v5 = vsel %vm1155_vm4, %v1318_v4, 0.0 }
 0x53c   : > { %v1315_v6 = vpop.f32.mrf.mxu2  ;;  %1320 = vadd.xlane.f32.xlu2 %v1319_v5 }
 0x5af   : > { %v1321_v7 = vpop.xlane.xlu2 %1320 }
 0x5b0   : > { %v1322_v8 = vmul.f32 %v1321_v7, %v1843_v58 }
 0x5b2   : > { %v1323_v9 = vadd.f32 1e-05, %v1322_v8 }
 0x5b4   : > { %1599 = vrsqrt.f32 %v1323_v9  ;;  %vm1330_vm13 = vweird.f32 %v1323_v9 }
 0x5ba   : > { %v1600_v11 = vpop.eup %1599 }
 0x5bb   : > { %v1325_v12 = vmul.f32 %v1600_v11, %v1323_v9  ;;  %vm1331_vm10 = vweird.f32 %v1600_v11 }
 0x5bc   : > { %vm1332_vm14 = vmor %vm1330_vm13, %vm1331_vm10 }
 0x5bd   : > { %v1326_v14 = vmul.f32 %v1600_v11, %v1325_v12 }
 0x5bf   : > { %v1327_v15 = vmul.f32 0.5, %v1326_v14 }
 0x5c1   : > { %v1328_v16 = vsub.f32 1.5, %v1327_v15 }
 0x5c3   : > { %v1329_v17 = vmul.f32 %v1600_v11, %v1328_v16 }
 0x5c5   : > { %v1333_v13 = vsel %vm1332_vm14, %v1600_v11, %v1329_v17 }
 0x5c6   : > { %v1334_v3 = vmul.f32 %v1333_v13, %v1317_v1 }
 0x5c8   : > { %v1335_v58 = vmul.f32 %v1849_v10, %v1334_v3 }
 0x5ca   : > { %1336 = vst.msk [vmem:[%s543_s21] sm:$0xf] %vm1155_vm4, %v1335_v58 }
 0x5cb PF: > { %s27_s24 = sadd.s32 1, %s1607_s24  }
 0x5cc   : > { %p24_p4 = scmp.ge.s32.totalorder %s27_s24, 10  }
 0x5ce   :  { %26 = sbr.rel (!%p24_p4) target bundleno = 3 (0x3), region = 121 }

</bundles_post_ra>
